<compile_context>
chip_gen: v6e
topology: v6e:2x2x1
jax: 0.10.0
libtpu: 0.0.40
codegen_flags: <defaults>
</compile_context>

<pallas_src>
import math

import jax
import jax.numpy as jnp
from jax import lax
from jax.experimental import pallas as pl
from jax.experimental.pallas import tpu as pltpu

# ----------------------------- configuration --------------------------------
IMG = 48                      # small stand-in for 224 (divisible by divide_nums)
DIVIDE = 3                    # divide_nums
N_SEQ = DIVIDE ** 2 + 1       # 9 patches + full image = 10
D_FEAT = 128                  # CHANNELS['MOCO']
NUM_CLASSES = 1
K_IN = 3 * IMG * IMG          # flattened image length (channel-major)

IMAGENET_MEAN = jnp.array([0.485, 0.456, 0.406], dtype=jnp.float32)
IMAGENET_STD = jnp.array([0.229, 0.224, 0.225], dtype=jnp.float32)

NEG_INF = -1e30


def _round_up(x, m):
    return (x + m - 1) // m * m


def _pick_group(batch, seq, max_rows=320):
    """Largest divisor g of batch with g*seq rows per grid step <= max_rows."""
    g = 1
    for cand in range(1, batch + 1):
        if batch % cand == 0 and cand * seq <= max_rows:
            g = cand
    return g


def _choose_tk(k, m_tile, d, budget_bytes=10 * 1024 * 1024):
    """Largest lane-aligned K tile whose double-buffered bf16 blocks fit budget.

    Returns k itself (single-step reduction) when the whole K axis fits.
    """
    def buf_bytes(tk):
        return 2 * 2 * (m_tile + d) * tk       # bf16, x2 double buffering
    if buf_bytes(k) <= budget_bytes:
        return k
    best = 128
    t = 128
    while t <= k:
        if k % t == 0 and buf_bytes(t) <= budget_bytes:
            best = t
        t += 128
    return best


# ---------------------- attention-head epilogue (in-kernel) ------------------
def _attention_head(feats, pos, mask, pool, wqkv, bqkv, wh, bh, d):
    """Single-head self-attention + mean pool + linear head on flat (M, D)."""
    scale = 1.0 / math.sqrt(d)
    h = feats + pos                                                  # (M, D)
    # Fused Q|K|V projection: one MXU push instead of three.
    qkv = jnp.dot(h, wqkv, preferred_element_type=jnp.float32) + bqkv  # (M, 3D)
    q = qkv[:, :d]
    k = qkv[:, d:2 * d]
    v = qkv[:, 2 * d:]
    # Flat scores with a block-diagonal batch mask (no (B,S,D) reshapes).
    s = lax.dot_general(q, k, (((1,), (1,)), ((), ())),
                        preferred_element_type=jnp.float32) * scale + mask
    s = s - jnp.max(s, axis=-1, keepdims=True)
    p = jnp.exp(s)
    p = p / jnp.sum(p, axis=-1, keepdims=True)                       # exact softmax
    o = jnp.dot(p, v, preferred_element_type=jnp.float32)            # (M, D)
    pooled = jnp.dot(pool, o, preferred_element_type=jnp.float32)    # (g, D)
    return jnp.dot(pooled, wh, preferred_element_type=jnp.float32) + bh  # (g, C)


# --------------------------- fused forward kernel ----------------------------
def moco_fused_forward(x_flat, w_fold, b_fold, pos_tiled, mask, pool,
                       wqkv, bqkv, wh, bh, *, n_groups, m_tile, g):
    K = x_flat.shape[1]
    D = w_fold.shape[1]
    C = wh.shape[1]

    tk = _choose_tk(K, m_tile, D)
    n_k = K // tk

    if n_k == 1:
        # Whole K axis in one step: no accumulator scratch, no pl.when guards.
        def kernel(x_ref, w_ref, b_ref, pos_ref, mask_ref, pool_ref,
                   wqkv_ref, bqkv_ref, wh_ref, bh_ref, o_ref):
            feats = jnp.dot(x_ref[...], w_ref[...],
                            preferred_element_type=jnp.float32) + b_ref[...]
            out = _attention_head(feats, pos_ref[...], mask_ref[...],
                                  pool_ref[...], wqkv_ref[...], bqkv_ref[...],
                                  wh_ref[...], bh_ref[...], D)
            o_ref[...] = out[None, :, :]

        grid = (n_groups,)
        in_specs = [
            pl.BlockSpec((m_tile, K), lambda bg: (bg, 0)),        # x (bf16)
            pl.BlockSpec((K, D), lambda bg: (0, 0)),              # w_fold (bf16)
            pl.BlockSpec((1, D), lambda bg: (0, 0)),              # b_fold
            pl.BlockSpec((m_tile, D), lambda bg: (0, 0)),         # pos (pre-tiled)
            pl.BlockSpec((m_tile, m_tile), lambda bg: (0, 0)),    # batch mask
            pl.BlockSpec((g, m_tile), lambda bg: (0, 0)),         # mean-pool matrix
            pl.BlockSpec((D, 3 * D), lambda bg: (0, 0)),          # wqkv fused
            pl.BlockSpec((1, 3 * D), lambda bg: (0, 0)),          # bqkv fused
            pl.BlockSpec((D, C), lambda bg: (0, 0)),              # wh
            pl.BlockSpec((1, C), lambda bg: (0, 0)),              # bh
        ]
        out_specs = pl.BlockSpec((1, g, C), lambda bg: (bg, 0, 0))
        scratch = []
        semantics = ("parallel",)
    else:
        # Production-K fallback: K-tiled reduction into an f32 VMEM accumulator,
        # attention head fused into the last K step.
        def kernel(x_ref, w_ref, b_ref, pos_ref, mask_ref, pool_ref,
                   wqkv_ref, bqkv_ref, wh_ref, bh_ref, o_ref, acc_ref):
            kstep = pl.program_id(1)

            @pl.when(kstep == 0)
            def _init():
                acc_ref[...] = jnp.zeros_like(acc_ref)

            acc_ref[...] += jnp.dot(x_ref[...], w_ref[...],
                                    preferred_element_type=jnp.float32)

            @pl.when(kstep == pl.num_programs(1) - 1)
            def _epilogue():
                feats = acc_ref[...] + b_ref[...]
                out = _attention_head(feats, pos_ref[...], mask_ref[...],
                                      pool_ref[...], wqkv_ref[...],
                                      bqkv_ref[...], wh_ref[...], bh_ref[...],
                                      D)
                o_ref[...] = out[None, :, :]

        grid = (n_groups, n_k)
        in_specs = [
            pl.BlockSpec((m_tile, tk), lambda bg, kk: (bg, kk)),
            pl.BlockSpec((tk, D), lambda bg, kk: (kk, 0)),
            pl.BlockSpec((1, D), lambda bg, kk: (0, 0)),
            pl.BlockSpec((m_tile, D), lambda bg, kk: (0, 0)),
            pl.BlockSpec((m_tile, m_tile), lambda bg, kk: (0, 0)),
            pl.BlockSpec((g, m_tile), lambda bg, kk: (0, 0)),
            pl.BlockSpec((D, 3 * D), lambda bg, kk: (0, 0)),
            pl.BlockSpec((1, 3 * D), lambda bg, kk: (0, 0)),
            pl.BlockSpec((D, C), lambda bg, kk: (0, 0)),
            pl.BlockSpec((1, C), lambda bg, kk: (0, 0)),
        ]
        out_specs = pl.BlockSpec((1, g, C), lambda bg, kk: (bg, 0, 0))
        scratch = [pltpu.VMEM((m_tile, D), jnp.float32)]
        semantics = ("parallel", "arbitrary")

    # Advisory cost estimate for XLA scheduling around the custom call.
    flops = (2 * n_groups * m_tile * (K * D + 3 * D * D + 2 * m_tile * D)
             + 2 * n_groups * g * D * (m_tile + C))
    bytes_accessed = (x_flat.size * 2 + w_fold.size * 2
                      + 4 * (b_fold.size + pos_tiled.size + mask.size
                             + pool.size + wqkv.size + bqkv.size
                             + wh.size + bh.size)
                      + 4 * n_groups * g * C)
    cost = pl.CostEstimate(flops=int(flops),
                           transcendentals=int(n_groups * m_tile * m_tile),
                           bytes_accessed=int(bytes_accessed))

    out = pl.pallas_call(
        kernel,
        out_shape=jax.ShapeDtypeStruct((n_groups, g, C), jnp.float32),
        grid=grid,
        in_specs=in_specs,
        out_specs=out_specs,
        scratch_shapes=scratch,
        compiler_params=pltpu.CompilerParams(
            dimension_semantics=semantics,
            vmem_limit_bytes=32 * 1024 * 1024),
        cost_estimate=cost,
    )(x_flat, w_fold, b_fold, pos_tiled, mask, pool, wqkv, bqkv, wh, bh)
    return out.reshape(n_groups * g, C)


# ------------------------------- forward glue --------------------------------
def divide(x):
    """3x3 grid of patches, each resized back to (IMG, IMG). NCHW."""
    B = x.shape[0]
    patch = IMG // DIVIDE
    patches = []
    for i in range(DIVIDE):
        for j in range(DIVIDE):
            p = x[:, :, i * patch:(i + 1) * patch, j * patch:(j + 1) * patch]
            p = jax.image.resize(p, (B, 3, IMG, IMG), method="bilinear")
            patches.append(p)
    return patches


def moco_forward(x, params):
    B = x.shape[0]
    S = N_SEQ
    D = D_FEAT
    C = NUM_CLASSES

    # Stack patches per batch element (patches first, full image last) so the
    # flat row order is already (batch, seq) — matches torch.stack(dim=-2).
    imgs = jnp.stack(divide(x) + [x], axis=1)                # (B, S, 3, H, W)
    x_rows = imgs.reshape(B * S, K_IN)                       # channel-major rows

    # Fold ImageNet normalization into the encoder weights (XLA, once):
    #   (x - mean) * inv_std @ W + b == x @ (inv_std*W) + (b - (mean*inv_std)@W)
    inv_std = 1.0 / jnp.repeat(IMAGENET_STD, IMG * IMG)      # (K,) channel-major
    mean = jnp.repeat(IMAGENET_MEAN, IMG * IMG)              # (K,)
    w_fold = (inv_std[:, None] * params["w_enc"]).astype(jnp.bfloat16)   # (K, D)
    b_fold = params["b_enc"] - (mean * inv_std) @ params["w_enc"]        # (1, D)

    # Batch grouping: g batches per grid step ("parallel" axis; shards across
    # both TensorCores on v7x at production batch).  Rows per group padded to
    # a multiple of 16 so bf16 x tile / f32 features / epilogue stay aligned.
    g = _pick_group(B, S)
    n_groups = B // g
    m_rows = g * S
    m_tile = _round_up(m_rows, 16)

    x_grp = x_rows.reshape(n_groups, m_rows, K_IN)
    x_grp = jnp.pad(x_grp, ((0, 0), (0, m_tile - m_rows), (0, 0)))
    x_flat = x_grp.reshape(n_groups * m_tile, K_IN).astype(jnp.bfloat16)

    # Pre-tiled positional embedding -> no (M,D)<->(B,S,D) reshape in-kernel.
    pos_tiled = jnp.pad(jnp.tile(params["pos"], (g, 1)),
                        ((0, m_tile - m_rows), (0, 0)))      # (m_tile, D)

    # Block-diagonal batch mask (pad rows only attend among themselves, so the
    # softmax stays finite; their output is discarded) + mean-pool matrix.
    row_id = jnp.arange(m_tile) // S
    mask = jnp.where(row_id[:, None] == row_id[None, :],
                     0.0, NEG_INF).astype(jnp.float32)       # (m_tile, m_tile)
    pool = (row_id[None, :] == jnp.arange(g)[:, None]).astype(jnp.float32) / S

    # Fused QKV projection weights: one MXU push inside the kernel.
    wqkv = jnp.concatenate([params["wq"], params["wk"], params["wv"]], axis=1)
    bqkv = jnp.concatenate([params["bq"], params["bk"], params["bv"]], axis=1)

    out = moco_fused_forward(x_flat, w_fold, b_fold, pos_tiled, mask, pool,
                             wqkv, bqkv, params["wh"], params["bh"],
                             n_groups=n_groups, m_tile=m_tile, g=g)
    return out.reshape(B, C)


def init_params(key):
    ks = jax.random.split(key, 6)

    def dense(k, fan_in, fan_out):
        return (jax.random.normal(k, (fan_in, fan_out), jnp.float32)
                * (1.0 / math.sqrt(fan_in)))

    return {
        "w_enc": dense(ks[0], K_IN, D_FEAT),
        "b_enc": jnp.zeros((1, D_FEAT), jnp.float32),
        "pos": jax.random.normal(ks[1], (N_SEQ, D_FEAT), jnp.float32) * 0.02,
        "wq": dense(ks[2], D_FEAT, D_FEAT),
        "wk": dense(ks[3], D_FEAT, D_FEAT),
        "wv": dense(ks[4], D_FEAT, D_FEAT),
        "bq": jnp.zeros((1, D_FEAT), jnp.float32),
        "bk": jnp.zeros((1, D_FEAT), jnp.float32),
        "bv": jnp.zeros((1, D_FEAT), jnp.float32),
        "wh": dense(ks[5], D_FEAT, NUM_CLASSES),
        "bh": jnp.zeros((1, NUM_CLASSES), jnp.float32),
    }


if __name__ == "__main__":
    key = jax.random.PRNGKey(0)
    k_x, k_p = jax.random.split(key)
    x = jax.random.normal(k_x, (2, 3, IMG, IMG), dtype=jnp.float32)  # NCHW
    params = init_params(k_p)

    out = jax.jit(moco_forward)(x, params)
    out = jax.block_until_ready(out)
    assert out.shape == (2, NUM_CLASSES), out.shape
    assert out.dtype == jnp.float32
    assert bool(jnp.all(jnp.isfinite(out)))
    print("KERNEL_OK")
</pallas_src>

<mosaic_0001>
module attributes {stable_mosaic.version = 11 : i64} {
  func.func @kernel(%arg0: i32, %arg1: memref<32x6912xbf16, #tpu.memory_space<vmem>>, %arg2: memref<6912x128xbf16, #tpu.memory_space<vmem>>, %arg3: memref<1x128xf32, #tpu.memory_space<vmem>>, %arg4: memref<32x128xf32, #tpu.memory_space<vmem>>, %arg5: memref<32x32xf32, #tpu.memory_space<vmem>>, %arg6: memref<2x32xf32, #tpu.memory_space<vmem>>, %arg7: memref<128x384xf32, #tpu.memory_space<vmem>>, %arg8: memref<1x384xf32, #tpu.memory_space<vmem>>, %arg9: memref<128x1xf32, #tpu.memory_space<vmem>>, %arg10: memref<1x1xf32, #tpu.memory_space<vmem>>, %arg11: memref<1x2x1xf32, #tpu.memory_space<vmem>>) attributes {dimension_semantics = [#tpu.dimension_semantics<parallel>], iteration_bounds = array<i64: 1>, scalar_prefetch = 0 : i64, scratch_operands = 0 : i64, tpu.core_type = #tpu.core_type<tc>, window_params = [{transform_indices = @transform_0, window_bounds = array<i64: 32, 6912>}, {pipeline_mode = #tpu.pipeline_mode<synchronous>, transform_indices = @transform_1, window_bounds = array<i64: 6912, 128>}, {pipeline_mode = #tpu.pipeline_mode<synchronous>, transform_indices = @transform_2, window_bounds = array<i64: 1, 128>}, {pipeline_mode = #tpu.pipeline_mode<synchronous>, transform_indices = @transform_3, window_bounds = array<i64: 32, 128>}, {pipeline_mode = #tpu.pipeline_mode<synchronous>, transform_indices = @transform_4, window_bounds = array<i64: 32, 32>}, {pipeline_mode = #tpu.pipeline_mode<synchronous>, transform_indices = @transform_5, window_bounds = array<i64: 2, 32>}, {pipeline_mode = #tpu.pipeline_mode<synchronous>, transform_indices = @transform_6, window_bounds = array<i64: 128, 384>}, {pipeline_mode = #tpu.pipeline_mode<synchronous>, transform_indices = @transform_7, window_bounds = array<i64: 1, 384>}, {pipeline_mode = #tpu.pipeline_mode<synchronous>, transform_indices = @transform_8, window_bounds = array<i64: 128, 1>}, {pipeline_mode = #tpu.pipeline_mode<synchronous>, transform_indices = @transform_9, window_bounds = array<i64: 1, 1>}, {transform_indices = @transform_10, window_bounds = array<i64: 1, 2, 1>}]} {
    %c0 = arith.constant 0 : index
    %c0_0 = arith.constant 0 : index
    %0 = vector.load %arg1[%c0, %c0_0] : memref<32x6912xbf16, #tpu.memory_space<vmem>>, vector<32x6912xbf16>
    %c0_1 = arith.constant 0 : index
    %c0_2 = arith.constant 0 : index
    %1 = vector.load %arg2[%c0_1, %c0_2] : memref<6912x128xbf16, #tpu.memory_space<vmem>>, vector<6912x128xbf16>
    %cst = arith.constant dense<0.000000e+00> : vector<32x128xf32>
    %2 = tpu.matmul %0, %1, %cst {dimension_numbers = #tpu.dot_dimension_numbers<[1], [0], [0], [1], [0, 0, 1, 1], [], []>} : vector<32x6912xbf16>, vector<6912x128xbf16>, vector<32x128xf32> -> vector<32x128xf32>
    %c0_3 = arith.constant 0 : index
    %c0_4 = arith.constant 0 : index
    %3 = vector.load %arg3[%c0_3, %c0_4] : memref<1x128xf32, #tpu.memory_space<vmem>>, vector<1x128xf32>
    %4 = vector.broadcast %3 : vector<1x128xf32> to vector<32x128xf32>
    %5 = arith.addf %2, %4 : vector<32x128xf32>
    %c0_5 = arith.constant 0 : index
    %c0_6 = arith.constant 0 : index
    %6 = vector.load %arg4[%c0_5, %c0_6] : memref<32x128xf32, #tpu.memory_space<vmem>>, vector<32x128xf32>
    %c0_7 = arith.constant 0 : index
    %c0_8 = arith.constant 0 : index
    %7 = vector.load %arg5[%c0_7, %c0_8] : memref<32x32xf32, #tpu.memory_space<vmem>>, vector<32x32xf32>
    %c0_9 = arith.constant 0 : index
    %c0_10 = arith.constant 0 : index
    %8 = vector.load %arg6[%c0_9, %c0_10] : memref<2x32xf32, #tpu.memory_space<vmem>>, vector<2x32xf32>
    %c0_11 = arith.constant 0 : index
    %c0_12 = arith.constant 0 : index
    %9 = vector.load %arg7[%c0_11, %c0_12] : memref<128x384xf32, #tpu.memory_space<vmem>>, vector<128x384xf32>
    %c0_13 = arith.constant 0 : index
    %c0_14 = arith.constant 0 : index
    %10 = vector.load %arg8[%c0_13, %c0_14] : memref<1x384xf32, #tpu.memory_space<vmem>>, vector<1x384xf32>
    %c0_15 = arith.constant 0 : index
    %c0_16 = arith.constant 0 : index
    %11 = vector.load %arg9[%c0_15, %c0_16] : memref<128x1xf32, #tpu.memory_space<vmem>>, vector<128x1xf32>
    %c0_17 = arith.constant 0 : index
    %c0_18 = arith.constant 0 : index
    %12 = vector.load %arg10[%c0_17, %c0_18] : memref<1x1xf32, #tpu.memory_space<vmem>>, vector<1x1xf32>
    %13 = arith.addf %5, %6 : vector<32x128xf32>
    %cst_19 = arith.constant dense<0.000000e+00> : vector<32x384xf32>
    %14 = tpu.matmul %13, %9, %cst_19 {dimension_numbers = #tpu.dot_dimension_numbers<[1], [0], [0], [1], [0, 0, 1, 1], [], []>} : vector<32x128xf32>, vector<128x384xf32>, vector<32x384xf32> -> vector<32x384xf32>
    %15 = vector.broadcast %10 : vector<1x384xf32> to vector<32x384xf32>
    %16 = arith.addf %14, %15 : vector<32x384xf32>
    %17 = vector.extract_strided_slice %16 {offsets = [0, 0], sizes = [32, 128], strides = [1, 1]} : vector<32x384xf32> to vector<32x128xf32>
    %18 = vector.extract_strided_slice %16 {offsets = [0, 128], sizes = [32, 128], strides = [1, 1]} : vector<32x384xf32> to vector<32x128xf32>
    %19 = vector.extract_strided_slice %16 {offsets = [0, 256], sizes = [32, 128], strides = [1, 1]} : vector<32x384xf32> to vector<32x128xf32>
    %cst_20 = arith.constant dense<0.000000e+00> : vector<32x32xf32>
    %20 = tpu.matmul %17, %18, %cst_20 {dimension_numbers = #tpu.dot_dimension_numbers<[1], [1], [0], [0], [0, 0, 1, 0], [], []>} : vector<32x128xf32>, vector<32x128xf32>, vector<32x32xf32> -> vector<32x32xf32>
    %cst_21 = arith.constant 0.0883883461 : f32
    %21 = vector.broadcast %cst_21 : f32 to vector<32x32xf32>
    %22 = arith.mulf %20, %21 : vector<32x32xf32>
    %23 = arith.addf %22, %7 : vector<32x32xf32>
    %cst_22 = arith.constant dense<0xFF800000> : vector<32xf32>
    %24 = vector.multi_reduction <maximumf>, %23, %cst_22 [1] : vector<32x32xf32> to vector<32xf32>
    %25 = vector.shape_cast %24 : vector<32xf32> to vector<32x1xf32>
    %26 = vector.broadcast %25 : vector<32x1xf32> to vector<32x32xf32>
    %27 = arith.subf %23, %26 : vector<32x32xf32>
    %28 = math.exp %27 : vector<32x32xf32>
    %cst_23 = arith.constant dense<0.000000e+00> : vector<32xf32>
    %29 = vector.multi_reduction <add>, %28, %cst_23 [1] : vector<32x32xf32> to vector<32xf32>
    %30 = vector.shape_cast %29 : vector<32xf32> to vector<32x1xf32>
    %31 = vector.broadcast %30 : vector<32x1xf32> to vector<32x32xf32>
    %32 = arith.divf %28, %31 : vector<32x32xf32>
    %cst_24 = arith.constant dense<0.000000e+00> : vector<32x128xf32>
    %33 = tpu.matmul %32, %19, %cst_24 {dimension_numbers = #tpu.dot_dimension_numbers<[1], [0], [0], [1], [0, 0, 1, 1], [], []>} : vector<32x32xf32>, vector<32x128xf32>, vector<32x128xf32> -> vector<32x128xf32>
    %cst_25 = arith.constant dense<0.000000e+00> : vector<2x128xf32>
    %34 = tpu.matmul %8, %33, %cst_25 {dimension_numbers = #tpu.dot_dimension_numbers<[1], [0], [0], [1], [0, 0, 1, 1], [], []>} : vector<2x32xf32>, vector<32x128xf32>, vector<2x128xf32> -> vector<2x128xf32>
    %cst_26 = arith.constant dense<0.000000e+00> : vector<2x1xf32>
    %35 = tpu.matmul %34, %11, %cst_26 {dimension_numbers = #tpu.dot_dimension_numbers<[1], [0], [0], [1], [0, 0, 1, 1], [], []>} : vector<2x128xf32>, vector<128x1xf32>, vector<2x1xf32> -> vector<2x1xf32>
    %36 = vector.broadcast %12 : vector<1x1xf32> to vector<2x1xf32>
    %37 = arith.addf %35, %36 : vector<2x1xf32>
    %38 = vector.shape_cast %37 : vector<2x1xf32> to vector<1x2x1xf32>
    %c0_27 = arith.constant 0 : index
    %c0_28 = arith.constant 0 : index
    %c0_29 = arith.constant 0 : index
    %39 = vector.load %arg11[%c0_27, %c0_28, %c0_29] : memref<1x2x1xf32, #tpu.memory_space<vmem>>, vector<1x2x1xf32>
    tpu.vector_store %arg11[%c0_27, %c0_28, %c0_29], %38 {strides = array<i32>} : memref<1x2x1xf32, #tpu.memory_space<vmem>>, vector<1x2x1xf32>,
    return
  }
  func.func @transform_0(%arg0: i32) -> (i32, i32) {
    %c0_i32 = arith.constant 0 : i32
    %c0_i32_0 = arith.constant 0 : i32
    return %arg0, %c0_i32 : i32, i32
  }
  func.func @transform_1(%arg0: i32) -> (i32, i32) {
    %c0_i32 = arith.constant 0 : i32
    %c0_i32_0 = arith.constant 0 : i32
    %c0_i32_1 = arith.constant 0 : i32
    return %c0_i32, %c0_i32_0 : i32, i32
  }
  func.func @transform_2(%arg0: i32) -> (i32, i32) {
    %c0_i32 = arith.constant 0 : i32
    %c0_i32_0 = arith.constant 0 : i32
    %c0_i32_1 = arith.constant 0 : i32
    return %c0_i32, %c0_i32_0 : i32, i32
  }
  func.func @transform_3(%arg0: i32) -> (i32, i32) {
    %c0_i32 = arith.constant 0 : i32
    %c0_i32_0 = arith.constant 0 : i32
    %c0_i32_1 = arith.constant 0 : i32
    return %c0_i32, %c0_i32_0 : i32, i32
  }
  func.func @transform_4(%arg0: i32) -> (i32, i32) {
    %c0_i32 = arith.constant 0 : i32
    %c0_i32_0 = arith.constant 0 : i32
    %c0_i32_1 = arith.constant 0 : i32
    return %c0_i32, %c0_i32_0 : i32, i32
  }
  func.func @transform_5(%arg0: i32) -> (i32, i32) {
    %c0_i32 = arith.constant 0 : i32
    %c0_i32_0 = arith.constant 0 : i32
    %c0_i32_1 = arith.constant 0 : i32
    return %c0_i32, %c0_i32_0 : i32, i32
  }
  func.func @transform_6(%arg0: i32) -> (i32, i32) {
    %c0_i32 = arith.constant 0 : i32
    %c0_i32_0 = arith.constant 0 : i32
    %c0_i32_1 = arith.constant 0 : i32
    return %c0_i32, %c0_i32_0 : i32, i32
  }
  func.func @transform_7(%arg0: i32) -> (i32, i32) {
    %c0_i32 = arith.constant 0 : i32
    %c0_i32_0 = arith.constant 0 : i32
    %c0_i32_1 = arith.constant 0 : i32
    return %c0_i32, %c0_i32_0 : i32, i32
  }
  func.func @transform_8(%arg0: i32) -> (i32, i32) {
    %c0_i32 = arith.constant 0 : i32
    %c0_i32_0 = arith.constant 0 : i32
    %c0_i32_1 = arith.constant 0 : i32
    return %c0_i32, %c0_i32_0 : i32, i32
  }
  func.func @transform_9(%arg0: i32) -> (i32, i32) {
    %c0_i32 = arith.constant 0 : i32
    %c0_i32_0 = arith.constant 0 : i32
    %c0_i32_1 = arith.constant 0 : i32
    return %c0_i32, %c0_i32_0 : i32, i32
  }
  func.func @transform_10(%arg0: i32) -> (i32, i32, i32) {
    %c0_i32 = arith.constant 0 : i32
    %c0_i32_0 = arith.constant 0 : i32
    %c0_i32_1 = arith.constant 0 : i32
    return %arg0, %c0_i32, %c0_i32_0 : i32, i32, i32
  }
}

</mosaic_0001>

<bundles_post_ra>
// kernel: mul.13
= control target key start
LH: loop header
LB: loop body
LE: loop exit
PB: predicated region body
PF: predicated region fallthrough
CT: control target
= control target key end

     0   :  { %s166_s0 = inlined_call_operand.vmem [shape: f32[6912], index: 0, kind: input, shape index: {}]   ;;  %s167_s1 = inlined_call_operand.vmem [shape: f32[6912], index: 1, kind: input, shape index: {}]   ;;  %s168_s2 = inlined_call_operand.vmem [shape: f32[6912], index: 2, kind: output, shape index: {}]  }
   0x1   :  { %v3_v0 = vld [vmem:[%s166_s0] sm:$0xff]  ;;  %v70_v2 = vld [vmem:[%s166_s0 + $0x8] sm:$0xff]  ;;  %v73_v5 = vld [vmem:[%s166_s0 + $0x10] sm:$0xff] }
   0x2   :  { %v4_v1 = vld [vmem:[%s167_s1] sm:$0xff]  ;;  %v71_v4 = vld [vmem:[%s167_s1 + $0x8] sm:$0xff]  ;;  %v74_v6 = vld [vmem:[%s167_s1 + $0x10] sm:$0xff] }
   0x3   :  { %v7_v3 = vmul.f32 %v4_v1, %v3_v0  ;;  %v16_v7 = vmul.f32 %v71_v4, %v70_v2  ;;  %v26_v8 = vmul.f32 %v74_v6, %v73_v5  ;;  %v76_v9 = vld [vmem:[%s166_s0 + $0x18] sm:$0xff]  ;;  %v79_v11 = vld [vmem:[%s166_s0 + $0x20] sm:$0xff]  ;;  %v82_v14 = vld [vmem:[%s166_s0 + $0x28] sm:$0xff] }
   0x4   :  { %v77_v10 = vld [vmem:[%s167_s1 + $0x18] sm:$0xff]  ;;  %v80_v13 = vld [vmem:[%s167_s1 + $0x20] sm:$0xff]  ;;  %v83_v15 = vld [vmem:[%s167_s1 + $0x28] sm:$0xff] }
   0x5   :  { %9 = vst [vmem:[%s168_s2] sm:$0xff] %v7_v3  ;;  %v36_v12 = vmul.f32 %v77_v10, %v76_v9  ;;  %72 = vst [vmem:[%s168_s2 + $0x8] sm:$0xff] %v16_v7  ;;  %v46_v16 = vmul.f32 %v80_v13, %v79_v11  ;;  %v56_v17 = vmul.f32 %v83_v15, %v82_v14  ;;  %v85_v18 = vld [vmem:[%s166_s0 + $0x30] sm:$0xff] }
   0x6   :  { %75 = vst [vmem:[%s168_s2 + $0x10] sm:$0xff] %v26_v8  ;;  %v86_v19 = vld [vmem:[%s167_s1 + $0x30] sm:$0xff] }
   0x7   :  { %78 = vst [vmem:[%s168_s2 + $0x18] sm:$0xff] %v36_v12  ;;  %v66_v20 = vmul.f32 %v86_v19, %v85_v18  ;;  %81 = vst [vmem:[%s168_s2 + $0x20] sm:$0xff] %v46_v16 }
   0x8   :  { %84 = vst [vmem:[%s168_s2 + $0x28] sm:$0xff] %v56_v17 }
   0x9   :  { %87 = vst [vmem:[%s168_s2 + $0x30] sm:$0xff] %v66_v20 }

// kernel: tile.9
= control target key start
LH: loop header
LB: loop body
LE: loop exit
PB: predicated region body
PF: predicated region fallthrough
CT: control target
= control target key end

     0   :  { %s56_s0 = inlined_call_operand.vmem [shape: f32[2,10,128], index: 0, kind: input, shape index: {}]   ;;  %s57_s1 = inlined_call_operand.vmem [shape: f32[20,128], index: 1, kind: output, shape index: {}]  }
   0x1   :  { %v2_v0 = vld [vmem:[%s56_s0] sm:$0xff]   ;;  %v16_v1 = vld [vmem:[%s56_s0 + $0x8] sm:$0x3]   ;;  %v18_v2 = vld [vmem:[%s56_s0 + $0x10] sm:$0xff]  }
   0x2   :  { %3 = vst [vmem:[%s57_s1] sm:$0xff] %v2_v0   ;;  %17 = vst [vmem:[%s57_s1 + $0x8] sm:$0x3] %v16_v1   ;;  %v20_v3 = vld [vmem:[%s56_s0 + $0x18] sm:$0x3]  }
   0x3   :  { %19 = vst [vmem:[%s57_s1 + $0xa] sm:$0xff] %v18_v2   ;;  %21 = vst [vmem:[%s57_s1 + $0x12] sm:$0x3] %v20_v3  }

// kernel: moco_forward.1
= control target key start
LH: loop header
LB: loop body
LE: loop exit
PB: predicated region body
PF: predicated region fallthrough
CT: control target
= control target key end

     0   :  { %vm5834_vm0 = vcmask 261120   ;;  %vm8217_vm1 = vmmov 0   ;;  %vm6125_vm2 = vcmask 1024   ;;  %s10466_s1 = inlined_call_operand.vmem [shape: bf16[6912,128], index: 1, kind: input, shape index: {}]   ;;  %s10467_s0 = inlined_call_operand.vmem [shape: bf16[32,6912], index: 0, kind: input, shape index: {}]   ;;  %s10468_s2 = inlined_call_operand.vmem [shape: f32[1,128], index: 2, kind: input, shape index: {}]   ;;  %s10469_s6 = inlined_call_operand.vmem [shape: f32[128,384], index: 6, kind: input, shape index: {}]   ;;  %s10470_s3 = inlined_call_operand.vmem [shape: f32[32,128], index: 3, kind: input, shape index: {}]   ;;  %s10471_s7 = inlined_call_operand.vmem [shape: f32[1,384], index: 7, kind: input, shape index: {}]   ;;  %s10472_s4 = inlined_call_operand.vmem [shape: f32[32,32], index: 4, kind: input, shape index: {}]   ;;  %s10473_s8 = inlined_call_operand.vmem [shape: f32[128,1], index: 8, kind: input, shape index: {}]   ;;  %s10474_s5 = inlined_call_operand.vmem [shape: f32[2,32], index: 5, kind: input, shape index: {}]   ;;  %s10475_s9 = inlined_call_operand.<no memory space> [shape: f32[1,1], index: 9, kind: input, shape index: {}]   ;;  %s10476_s10 = inlined_call_operand.vmem [shape: f32[1,2,1], index: 10, kind: output, shape index: {}]  }
   0x1   :  { %v7606_v0 = vld [vmem:[%s10466_s1 + $0x78] sm:$0xff]   ;;  %v7610_v4 = vld [vmem:[%s10466_s1 + $0x70] sm:$0xff]   ;;  %v7614_v8 = vld [vmem:[%s10466_s1 + $0x68] sm:$0xff]  }
   0x2   :  { %v7607_v1 = vld [vmem:[%s10466_s1 + $0x38] sm:$0xff]   ;;  %6678 = vmatprep.subr.bf16.mxu0 %v7606_v0  ;;  %v7611_v5 = vld [vmem:[%s10466_s1 + $0x30] sm:$0xff]   ;;  %v7615_v9 = vld [vmem:[%s10466_s1 + $0x28] sm:$0xff]  }
   0x3   :  { %v7608_v2 = vld [vmem:[%s10466_s1 + $0xf8] sm:$0xff]   ;;  %6679 = vmatpush3.bf16.msra.mxu0 %v7607_v1  ;;  %v7612_v6 = vld [vmem:[%s10466_s1 + $0xf0] sm:$0xff]   ;;  %v7616_v10 = vld [vmem:[%s10466_s1 + $0xe8] sm:$0xff]  }
   0x4   :  { %v7609_v3 = vld [vmem:[%s10466_s1 + $0xb8] sm:$0xff]   ;;  %6706 = vmatprep.subr.bf16.mxu1 %v7608_v2  ;;  %6680 = vmatprep.subr.bf16.mxu0 %v7610_v4  ;;  %v7613_v7 = vld [vmem:[%s10466_s1 + $0xb0] sm:$0xff]   ;;  %v7617_v11 = vld [vmem:[%s10466_s1 + $0xa8] sm:$0xff]  }
   0x5   :  { %6707 = vmatpush3.bf16.msra.mxu1 %v7609_v3  ;;  %v7618_v12 = vld [vmem:[%s10466_s1 + $0x60] sm:$0xff]   ;;  %v7622_v16 = vld [vmem:[%s10466_s1 + $0x58] sm:$0xff]   ;;  %v7626_v20 = vld [vmem:[%s10466_s1 + $0x50] sm:$0xff]  }
   0x6   :  { %6708 = vmatprep.subr.bf16.mxu1 %v7612_v6  ;;  %v7619_v13 = vld [vmem:[%s10466_s1 + $0x20] sm:$0xff]   ;;  %v7623_v17 = vld [vmem:[%s10466_s1 + $0x18] sm:$0xff]   ;;  %v7627_v21 = vld [vmem:[%s10466_s1 + $0x10] sm:$0xff]  }
   0x7   :  { %6681 = vmatpush3.bf16.msra.mxu0 %v7611_v5  ;;  %v7620_v14 = vld [vmem:[%s10466_s1 + $0xe0] sm:$0xff]   ;;  %v7624_v18 = vld [vmem:[%s10466_s1 + $0xd8] sm:$0xff]   ;;  %v7628_v22 = vld [vmem:[%s10466_s1 + $0xd0] sm:$0xff]  }
   0x8   :  { %6682 = vmatprep.subr.bf16.mxu0 %v7614_v8  ;;  %v7621_v15 = vld [vmem:[%s10466_s1 + $0xa0] sm:$0xff]   ;;  %v7625_v19 = vld [vmem:[%s10466_s1 + $0x98] sm:$0xff]   ;;  %v7629_v23 = vld [vmem:[%s10466_s1 + $0x90] sm:$0xff]  }
   0x9   :  { %6709 = vmatpush3.bf16.msra.mxu1 %v7613_v7  ;;  %v7630_v24 = vld [vmem:[%s10466_s1 + $0x48] sm:$0xff]   ;;  %v7634_v28 = vld [vmem:[%s10466_s1 + $0x40] sm:$0xff]   ;;  %v7641_v34 = vld [vmem:[%s10466_s1 + $0x178] sm:$0xff]  }
   0xa   :  { %6710 = vmatprep.subr.bf16.mxu1 %v7616_v10  ;;  %v7631_v25 = vld [vmem:[%s10466_s1 + $0x8] sm:$0xff]   ;;  %v7635_v29 = vld [vmem:[%s10466_s1] sm:$0xff]   ;;  %v7645_v37 = vld [vmem:[%s10466_s1 + $0x138] sm:$0xff]  }
   0xb   :  { %6683 = vmatpush3.bf16.msra.mxu0 %v7615_v9  ;;  %v7632_v26 = vld [vmem:[%s10466_s1 + $0xc8] sm:$0xff]   ;;  %v7636_v30 = vld [vmem:[%s10466_s1 + $0xc0] sm:$0xff]   ;;  %v7646_v38 = vld [vmem:[%s10466_s1 + $0x1f8] sm:$0xff]  }
   0xc   :  { %6684 = vmatprep.subr.bf16.mxu0 %v7618_v12  ;;  %v7633_v27 = vld [vmem:[%s10466_s1 + $0x88] sm:$0xff]   ;;  %v7637_v31 = vld [vmem:[%s10467_s0] ss:$216 sps:$4 sm:$0xff]   ;;  %v7639_v32 = vld [vmem:[%s10467_s0 + $0x4] ss:$216 sps:$4 sm:$0xff]  }
   0xd   :  { %6711 = vmatpush3.bf16.msra.mxu1 %v7617_v11  ;;  %v7640_v33 = vld [vmem:[%s10466_s1 + $0x80] sm:$0xff]   ;;  %4181 = vmatprep.mubr.bf16.mxu0 %v7639_v32  ;;  %v7647_v39 = vld [vmem:[%s10466_s1 + $0x1b8] sm:$0xff]   ;;  %v7648_v40 = vld [vmem:[%s10466_s1 + $0x170] sm:$0xff]  }
   0xe   :  { %6712 = vmatprep.subr.bf16.mxu1 %v7620_v14  ;;  %v7642_v35 = vld [vmem:[%s10467_s0 + $0x8] ss:$216 sps:$4 sm:$0xff]   ;;  %v7644_v36 = vld [vmem:[%s10467_s0 + $0xc] ss:$216 sps:$4 sm:$0xff]   ;;  %v7649_v41 = vld [vmem:[%s10466_s1 + $0x130] sm:$0xff]  }
   0xf   :  { %6685 = vmatpush3.bf16.msra.mxu0 %v7619_v13  ;;  %4230 = vmatprep.mubr.bf16.mxu1 %v7644_v36  ;;  %v7650_v42 = vld [vmem:[%s10466_s1 + $0x1f0] sm:$0xff]   ;;  %v7652_v44 = vld [vmem:[%s10466_s1 + $0x168] sm:$0xff]   ;;  %v7656_v48 = vld [vmem:[%s10466_s1 + $0x160] sm:$0xff]  }
  0x10   :  { %6686 = vmatprep.subr.bf16.mxu0 %v7622_v16  ;;  %v7651_v43 = vld [vmem:[%s10466_s1 + $0x1b0] sm:$0xff]   ;;  %v7653_v45 = vld [vmem:[%s10466_s1 + $0x128] sm:$0xff]   ;;  %v7657_v49 = vld [vmem:[%s10466_s1 + $0x120] sm:$0xff]  }
  0x11   :  { %6713 = vmatpush3.bf16.msra.mxu1 %v7621_v15  ;;  %v7654_v46 = vld [vmem:[%s10466_s1 + $0x1e8] sm:$0xff]   ;;  %v7658_v50 = vld [vmem:[%s10466_s1 + $0x1e0] sm:$0xff]   ;;  %v7660_v52 = vld [vmem:[%s10466_s1 + $0x158] sm:$0xff]  }
  0x12   :  { %6714 = vmatprep.subr.bf16.mxu1 %v7624_v18  ;;  %v7655_v47 = vld [vmem:[%s10466_s1 + $0x1a8] sm:$0xff]   ;;  %v7659_v51 = vld [vmem:[%s10466_s1 + $0x1a0] sm:$0xff]   ;;  %v7661_v53 = vld [vmem:[%s10466_s1 + $0x118] sm:$0xff]  }
  0x13   :  { %6687 = vmatpush3.bf16.msra.mxu0 %v7623_v17  ;;  %v7662_v54 = vld [vmem:[%s10467_s0 + $0x1b4] ss:$216 sps:$4 sm:$0xff]   ;;  %v7664_v55 = vld [vmem:[%s10466_s1 + $0x1d8] sm:$0xff]   ;;  %v7665_v56 = vld [vmem:[%s10467_s0 + $0x1b0] ss:$216 sps:$4 sm:$0xff]  }
  0x14   :  { %6688 = vmatprep.subr.bf16.mxu0 %v7626_v20  ;;  %v7666_v57 = vld [vmem:[%s10466_s1 + $0x198] sm:$0xff]   ;;  %v7669_v59 = vld [vmem:[%s10466_s1 + $0x150] sm:$0xff]   ;;  %v7674_v0 = vld [vmem:[%s10466_s1 + $0x148] sm:$0xff]  }
  0x15   :  { %6715 = vmatpush3.bf16.msra.mxu1 %v7625_v19  ;;  %v7667_v58 = vld [vmem:[%s10467_s0 + $0x1bc] ss:$216 sps:$4 sm:$0xff]   ;;  %v7670_v60 = vld [vmem:[%s10467_s0 + $0x1b8] ss:$216 sps:$4 sm:$0xff]   ;;  %v7675_v1 = vld [vmem:[%s10466_s1 + $0x108] sm:$0xff]  }
  0x16   :  { %6716 = vmatprep.subr.bf16.mxu1 %v7628_v22  ;;  %v7671_v61 = vld [vmem:[%s10466_s1 + $0x110] sm:$0xff]   ;;  %v7676_v2 = vld [vmem:[%s10466_s1 + $0x1c8] sm:$0xff]   ;;  %v7678_v4 = vld [vmem:[%s10466_s1 + $0x140] sm:$0xff]  }
  0x17   :  { %6689 = vmatpush3.bf16.msra.mxu0 %v7627_v21  ;;  %v7672_v62 = vld [vmem:[%s10466_s1 + $0x1d0] sm:$0xff]   ;;  %v7677_v3 = vld [vmem:[%s10466_s1 + $0x188] sm:$0xff]   ;;  %v7679_v5 = vld [vmem:[%s10466_s1 + $0x100] sm:$0xff]  }
  0x18   :  { %6690 = vmatprep.subr.bf16.mxu0 %v7630_v24  ;;  %v7673_v63 = vld [vmem:[%s10466_s1 + $0x190] sm:$0xff]   ;;  %v7680_v6 = vld [vmem:[%s10466_s1 + $0x1c0] sm:$0xff]   ;;  %v7685_v10 = vld [vmem:[%s10466_s1 + $0x278] sm:$0xff]  }
  0x19   :  { %6717 = vmatpush3.bf16.msra.mxu1 %v7629_v23  ;;  %v7681_v7 = vld [vmem:[%s10467_s0 + $0x10] ss:$216 sps:$4 sm:$0xff]   ;;  %v7683_v8 = vld [vmem:[%s10467_s0 + $0x14] ss:$216 sps:$4 sm:$0xff]   ;;  %v7684_v9 = vld [vmem:[%s10466_s1 + $0x180] sm:$0xff]  }
  0x1a   :  { %6718 = vmatprep.subr.bf16.mxu1 %v7632_v26  ;;  %v7686_v11 = vld [vmem:[%s10467_s0 + $0x18] ss:$216 sps:$4 sm:$0xff]   ;;  %v7688_v12 = vld [vmem:[%s10467_s0 + $0x1c] ss:$216 sps:$4 sm:$0xff]   ;;  %v7699_v22 = vld [vmem:[%s10466_s1 + $0x268] sm:$0xff]  }
  0x1b   :  { %6691 = vmatpush3.bf16.msra.mxu0 %v7631_v25  ;;  %v7689_v13 = vld [vmem:[%s10466_s1 + $0x238] sm:$0xff]   ;;  %v7692_v16 = vld [vmem:[%s10466_s1 + $0x270] sm:$0xff]   ;;  %v7700_v23 = vld [vmem:[%s10467_s0 + $0x1cc] ss:$216 sps:$4 sm:$0xff]  }
  0x1c   :  { %6692 = vmatprep.subr.bf16.mxu0 %v7634_v28  ;;  %v7690_v14 = vld [vmem:[%s10466_s1 + $0x2f8] sm:$0xff]   ;;  %v7693_v17 = vld [vmem:[%s10466_s1 + $0x230] sm:$0xff]   ;;  %v7702_v24 = vld [vmem:[%s10466_s1 + $0x228] sm:$0xff]  }
  0x1d   :  { %6719 = vmatpush3.bf16.msra.mxu1 %v7633_v27  ;;  %v7691_v15 = vld [vmem:[%s10466_s1 + $0x2b8] sm:$0xff]   ;;  %v7694_v18 = vld [vmem:[%s10466_s1 + $0x2f0] sm:$0xff]   ;;  %v7703_v25 = vld [vmem:[%s10467_s0 + $0x1c8] ss:$216 sps:$4 sm:$0xff]  }
  0x1e   :  { %6720 = vmatprep.subr.bf16.mxu1 %v7636_v30  ;;  %v7695_v19 = vld [vmem:[%s10467_s0 + $0x1c4] ss:$216 sps:$4 sm:$0xff]   ;;  %v7697_v20 = vld [vmem:[%s10466_s1 + $0x2b0] sm:$0xff]   ;;  %v7698_v21 = vld [vmem:[%s10467_s0 + $0x1c0] ss:$216 sps:$4 sm:$0xff]  }
  0x1f   :  { %6693 = vmatpush3.bf16.msra.mxu0 %v7635_v29  ;;  %v7704_v26 = vld [vmem:[%s10466_s1 + $0x2e8] sm:$0xff]   ;;  %v7706_v28 = vld [vmem:[%s10466_s1 + $0x260] sm:$0xff]   ;;  %v7710_v32 = vld [vmem:[%s10466_s1 + $0x258] sm:$0xff]  }
  0x20   :  { %6734 = vmatprep.subr.bf16.mxu0 %v7641_v34  ;;  %v7705_v27 = vld [vmem:[%s10466_s1 + $0x2a8] sm:$0xff]   ;;  %v7707_v29 = vld [vmem:[%s10466_s1 + $0x220] sm:$0xff]   ;;  %v7712_v34 = vld [vmem:[%s10466_s1 + $0x2d8] sm:$0xff]  }
  0x21   :  { %6721 = vmatpush3.bf16.msra.mxu1 %v7640_v33  ;;  %v7708_v30 = vld [vmem:[%s10466_s1 + $0x2e0] sm:$0xff]   ;;  %v7711_v33 = vld [vmem:[%s10466_s1 + $0x218] sm:$0xff]   ;;  %v7714_v36 = vld [vmem:[%s10466_s1 + $0x250] sm:$0xff]  }
  0x22   :  { %4182 = vmatmul.mubr.bf16.vlgmr.msra.gmra.mxu0 %v7637_v31  ;;  %6762 = vmatprep.subr.bf16.mxu1 %v7646_v38  ;;  %v7709_v31 = vld [vmem:[%s10466_s1 + $0x2a0] sm:$0xff]   ;;  %v7716_v38 = vld [vmem:[%s10466_s1 + $0x2d0] sm:$0xff]  }
  0x23   :  { %6735 = vmatpush3.bf16.msra.mxu0 %v7645_v37  ;;  %4189 = vmatprep.mubr.bf16.mxu0 %v7662_v54  ;;  %v7715_v37 = vld [vmem:[%s10466_s1 + $0x210] sm:$0xff]   ;;  %v7734_v54 = vld [vmem:[%s10466_s1 + $0x3f8] sm:$0xff]  }
  0x24   :  { %4231 = vmatmul.mubr.bf16.vlgmr.msra.gmra.mxu1 %v7642_v35  ;;  %6736 = vmatprep.subr.bf16.mxu0 %v7648_v40  ;;  %v7713_v35 = vld [vmem:[%s10466_s1 + $0x298] sm:$0xff]   ;;  %v7718_v40 = vld [vmem:[%s10466_s1 + $0x248] sm:$0xff]  }
  0x25   :  { %6763 = vmatpush3.bf16.msra.mxu1 %v7647_v39  ;;  %4238 = vmatprep.mubr.bf16.mxu1 %v7667_v58  ;;  %v7717_v39 = vld [vmem:[%s10466_s1 + $0x290] sm:$0xff]  }
  0x26   :  { %6764 = vmatprep.subr.bf16.mxu1 %v7650_v42  ;;  %v7720_v42 = vld [vmem:[%s10466_s1 + $0x2c8] sm:$0xff]   ;;  %v7738_v58 = vld [vmem:[%s10466_s1 + $0x3f0] sm:$0xff]  }
  0x27   :  { %6737 = vmatpush3.bf16.msra.mxu0 %v7649_v41  ;;  %v7719_v41 = vld [vmem:[%s10466_s1 + $0x208] sm:$0xff]  }
  0x28   :  { %6738 = vmatprep.subr.bf16.mxu0 %v7652_v44  ;;  %v7722_v44 = vld [vmem:[%s10466_s1 + $0x240] sm:$0xff]  }
  0x29   :  { %6765 = vmatpush3.bf16.msra.mxu1 %v7651_v43  ;;  %v7721_v43 = vld [vmem:[%s10466_s1 + $0x288] sm:$0xff]  }
  0x2a   :  { %6766 = vmatprep.subr.bf16.mxu1 %v7654_v46  ;;  %4190 = vmatmul.mubr.bf16.gmra.mxu0 %v7665_v56  ;;  %v7724_v46 = vld [vmem:[%s10466_s1 + $0x2c0] sm:$0xff]   ;;  %v7736_v56 = vld [vmem:[%s10466_s1 + $0x370] sm:$0xff]  }
  0x2b   :  { %6739 = vmatpush3.bf16.msra.mxu0 %v7653_v45  ;;  %4279 = vmatprep.mubr.bf16.mxu0 %v7683_v8  ;;  %v7723_v45 = vld [vmem:[%s10466_s1 + $0x200] sm:$0xff]   ;;  %v7754_v8 = vld [vmem:[%s10466_s1 + $0x358] sm:$0xff]  }
  0x2c   :  { %6740 = vmatprep.subr.bf16.mxu0 %v7656_v48  ;;  %4239 = vmatmul.mubr.bf16.gmra.mxu1 %v7670_v60  ;;  %v7727_v48 = vld [vmem:[%s10467_s0 + $0x24] ss:$216 sps:$4 sm:$0xff]   ;;  %v7741_v60 = vld [vmem:[%s10466_s1 + $0x3b0] sm:$0xff]  }
  0x2d   :  { %6767 = vmatpush3.bf16.msra.mxu1 %v7655_v47  ;;  %4328 = vmatprep.mubr.bf16.mxu1 %v7688_v12  ;;  %v7725_v47 = vld [vmem:[%s10467_s0 + $0x20] ss:$216 sps:$4 sm:$0xff]   ;;  %v7758_v12 = vld [vmem:[%s10466_s1 + $0x350] sm:$0xff]  }
  0x2e   :  { %6768 = vmatprep.subr.bf16.mxu1 %v7658_v50  ;;  %v7729_v50 = vld [vmem:[%s10466_s1 + $0x378] sm:$0xff]  }
  0x2f   :  { %6741 = vmatpush3.bf16.msra.mxu0 %v7657_v49  ;;  %v7728_v49 = vld [vmem:[%s10466_s1 + $0x280] sm:$0xff]  }
  0x30   :  { %6742 = vmatprep.subr.bf16.mxu0 %v7660_v52  ;;  %v7732_v52 = vld [vmem:[%s10467_s0 + $0x2c] ss:$216 sps:$4 sm:$0xff]  }
  0x31   :  { %6769 = vmatpush3.bf16.msra.mxu1 %v7659_v51  ;;  %v7730_v51 = vld [vmem:[%s10467_s0 + $0x28] ss:$216 sps:$4 sm:$0xff]  }
  0x32   :  { %6770 = vmatprep.subr.bf16.mxu1 %v7664_v55  ;;  %v7735_v55 = vld [vmem:[%s10466_s1 + $0x3b8] sm:$0xff]  }
  0x33   :  { %6743 = vmatpush3.bf16.msra.mxu0 %v7661_v53  ;;  %v7733_v53 = vld [vmem:[%s10466_s1 + $0x338] sm:$0xff]  }
  0x34   :  { %6744 = vmatprep.subr.bf16.mxu0 %v7669_v59  ;;  %v7739_v59 = vld [vmem:[%s10467_s0 + $0x1d4] ss:$216 sps:$4 sm:$0xff]  }
  0x35   :  { %6771 = vmatpush3.bf16.msra.mxu1 %v7666_v57  ;;  %v7737_v57 = vld [vmem:[%s10466_s1 + $0x330] sm:$0xff]  }
  0x36   :  { %6772 = vmatprep.subr.bf16.mxu1 %v7672_v62  ;;  %v7743_v62 = vld [vmem:[%s10466_s1 + $0x368] sm:$0xff]  }
  0x37   :  { %6745 = vmatpush3.bf16.msra.mxu0 %v7671_v61  ;;  %v7742_v61 = vld [vmem:[%s10467_s0 + $0x1d0] ss:$216 sps:$4 sm:$0xff]  }
  0x38   :  { %6746 = vmatprep.subr.bf16.mxu0 %v7674_v0  ;;  %v7746_v0 = vld [vmem:[%s10466_s1 + $0x328] sm:$0xff]  }
  0x39   :  { %6773 = vmatpush3.bf16.msra.mxu1 %v7673_v63  ;;  %v7744_v63 = vld [vmem:[%s10467_s0 + $0x1dc] ss:$216 sps:$4 sm:$0xff]  }
  0x3a   :  { %6774 = vmatprep.subr.bf16.mxu1 %v7676_v2  ;;  %v7748_v2 = vld [vmem:[%s10466_s1 + $0x3e8] sm:$0xff]  }
  0x3b   :  { %6747 = vmatpush3.bf16.msra.mxu0 %v7675_v1  ;;  %v7747_v1 = vld [vmem:[%s10467_s0 + $0x1d8] ss:$216 sps:$4 sm:$0xff]  }
  0x3c   :  { %6748 = vmatprep.subr.bf16.mxu0 %v7678_v4  ;;  %v7750_v4 = vld [vmem:[%s10466_s1 + $0x360] sm:$0xff]  }
  0x3d   :  { %6775 = vmatpush3.bf16.msra.mxu1 %v7677_v3  ;;  %v7749_v3 = vld [vmem:[%s10466_s1 + $0x3a8] sm:$0xff]  }
  0x3e   :  { %6776 = vmatprep.subr.bf16.mxu1 %v7680_v6  ;;  %v7752_v6 = vld [vmem:[%s10466_s1 + $0x3e0] sm:$0xff]  }
  0x3f   :  { %6749 = vmatpush3.bf16.msra.mxu0 %v7679_v5  ;;  %v7751_v5 = vld [vmem:[%s10466_s1 + $0x320] sm:$0xff]  }
  0x40   :  { %6790 = vmatprep.subr.bf16.mxu0 %v7685_v10  ;;  %v7756_v10 = vld [vmem:[%s10466_s1 + $0x3d8] sm:$0xff]  }
  0x41   :  { %6777 = vmatpush3.bf16.msra.mxu1 %v7684_v9  ;;  %v7755_v9 = vld [vmem:[%s10466_s1 + $0x318] sm:$0xff]  }
  0x42   :  { %4280 = vmatmul.mubr.bf16.vlgmr.msra.gmra.mxu0 %v7681_v7  ;;  %6818 = vmatprep.subr.bf16.mxu1 %v7690_v14  ;;  %v7753_v7 = vld [vmem:[%s10466_s1 + $0x3a0] sm:$0xff]   ;;  %v7760_v14 = vld [vmem:[%s10466_s1 + $0x3d0] sm:$0xff]  }
  0x43   :  { %6791 = vmatpush3.bf16.msra.mxu0 %v7689_v13  ;;  %4287 = vmatprep.mubr.bf16.mxu0 %v7695_v19  ;;  %v7759_v13 = vld [vmem:[%s10466_s1 + $0x310] sm:$0xff]   ;;  %v7765_v19 = vld [vmem:[%s10466_s1 + $0x388] sm:$0xff]  }
  0x44   :  { %4329 = vmatmul.mubr.bf16.vlgmr.msra.gmra.mxu1 %v7686_v11  ;;  %6792 = vmatprep.subr.bf16.mxu0 %v7692_v16  ;;  %v7757_v11 = vld [vmem:[%s10466_s1 + $0x398] sm:$0xff]   ;;  %v7762_v16 = vld [vmem:[%s10466_s1 + $0x348] sm:$0xff]  }
  0x45   :  { %6819 = vmatpush3.bf16.msra.mxu1 %v7691_v15  ;;  %4336 = vmatprep.mubr.bf16.mxu1 %v7700_v23  ;;  %v7761_v15 = vld [vmem:[%s10466_s1 + $0x390] sm:$0xff]  }
  0x46   :  { %6820 = vmatprep.subr.bf16.mxu1 %v7694_v18  ;;  %v7764_v18 = vld [vmem:[%s10466_s1 + $0x3c8] sm:$0xff]  }
  0x47   :  { %6793 = vmatpush3.bf16.msra.mxu0 %v7693_v17  ;;  %v7763_v17 = vld [vmem:[%s10466_s1 + $0x308] sm:$0xff]  }
  0x48   :  { %6794 = vmatprep.subr.bf16.mxu0 %v7699_v22  ;;  %v7768_v22 = vld [vmem:[%s10466_s1 + $0x3c0] sm:$0xff]   ;;  %v7769_v23 = vld [vmem:[%s10467_s0 + $0x30] ss:$216 sps:$4 sm:$0xff]  }
  0x49   :  { %6821 = vmatpush3.bf16.msra.mxu1 %v7697_v20  ;;  %v7766_v20 = vld [vmem:[%s10466_s1 + $0x340] sm:$0xff]  }
  0x4a   :  { %4288 = vmatmul.mubr.bf16.gmra.mxu0 %v7698_v21  ;;  %6822 = vmatprep.subr.bf16.mxu1 %v7704_v26  ;;  %v7767_v21 = vld [vmem:[%s10466_s1 + $0x300] sm:$0xff]   ;;  %v7773_v26 = vld [vmem:[%s10466_s1 + $0x478] sm:$0xff]  }
  0x4b   :  { %6795 = vmatpush3.bf16.msra.mxu0 %v7702_v24  ;;  %4377 = vmatprep.mubr.bf16.mxu0 %v7727_v48  ;;  %v7771_v24 = vld [vmem:[%s10467_s0 + $0x34] ss:$216 sps:$4 sm:$0xff]   ;;  %v7798_v48 = vld [vmem:[%s10466_s1 + $0x458] sm:$0xff]  }
  0x4c   :  { %4337 = vmatmul.mubr.bf16.gmra.mxu1 %v7703_v25  ;;  %6796 = vmatprep.subr.bf16.mxu0 %v7706_v28  ;;  %v7772_v25 = vld [vmem:[%s10466_s1 + $0x380] sm:$0xff]   ;;  %v7776_v28 = vld [vmem:[%s10467_s0 + $0x3c] ss:$216 sps:$4 sm:$0xff]  }
  0x4d   :  { %6823 = vmatpush3.bf16.msra.mxu1 %v7705_v27  ;;  %4426 = vmatprep.mubr.bf16.mxu1 %v7732_v52  ;;  %v7774_v27 = vld [vmem:[%s10467_s0 + $0x38] ss:$216 sps:$4 sm:$0xff]  }
  0x4e   :  { %6824 = vmatprep.subr.bf16.mxu1 %v7708_v30  ;;  %v7778_v30 = vld [vmem:[%s10466_s1 + $0x4f8] sm:$0xff]   ;;  %v7802_v52 = vld [vmem:[%s10466_s1 + $0x450] sm:$0xff]  }
  0x4f   :  { %6797 = vmatpush3.bf16.msra.mxu0 %v7707_v29  ;;  %v7777_v29 = vld [vmem:[%s10466_s1 + $0x438] sm:$0xff]  }
  0x50   :  { %6798 = vmatprep.subr.bf16.mxu0 %v7710_v32  ;;  %v7780_v32 = vld [vmem:[%s10466_s1 + $0x470] sm:$0xff]  }
  0x51   :  { %6825 = vmatpush3.bf16.msra.mxu1 %v7709_v31  ;;  %v7779_v31 = vld [vmem:[%s10466_s1 + $0x4b8] sm:$0xff]  }
  0x52   :  { %6826 = vmatprep.subr.bf16.mxu1 %v7712_v34  ;;  %v7782_v34 = vld [vmem:[%s10466_s1 + $0x4f0] sm:$0xff]  }
  0x53   :  { %6799 = vmatpush3.bf16.msra.mxu0 %v7711_v33  ;;  %v7781_v33 = vld [vmem:[%s10466_s1 + $0x430] sm:$0xff]  }
  0x54   :  { %6800 = vmatprep.subr.bf16.mxu0 %v7714_v36  ;;  %v7785_v36 = vld [vmem:[%s10466_s1 + $0x4b0] sm:$0xff]  }
  0x55   :  { %6827 = vmatpush3.bf16.msra.mxu1 %v7713_v35  ;;  %v7783_v35 = vld [vmem:[%s10467_s0 + $0x1e4] ss:$216 sps:$4 sm:$0xff]  }
  0x56   :  { %6828 = vmatprep.subr.bf16.mxu1 %v7716_v38  ;;  %v7787_v38 = vld [vmem:[%s10466_s1 + $0x468] sm:$0xff]  }
  0x57   :  { %6801 = vmatpush3.bf16.msra.mxu0 %v7715_v37  ;;  %v7786_v37 = vld [vmem:[%s10467_s0 + $0x1e0] ss:$216 sps:$4 sm:$0xff]  }
  0x58   :  { %6802 = vmatprep.subr.bf16.mxu0 %v7718_v40  ;;  %v7790_v40 = vld [vmem:[%s10466_s1 + $0x428] sm:$0xff]  }
  0x59   :  { %6829 = vmatpush3.bf16.msra.mxu1 %v7717_v39  ;;  %v7788_v39 = vld [vmem:[%s10467_s0 + $0x1ec] ss:$216 sps:$4 sm:$0xff]  }
  0x5a   :  { %6830 = vmatprep.subr.bf16.mxu1 %v7720_v42  ;;  %v7792_v42 = vld [vmem:[%s10466_s1 + $0x4e8] sm:$0xff]  }
  0x5b   :  { %6803 = vmatpush3.bf16.msra.mxu0 %v7719_v41  ;;  %v7791_v41 = vld [vmem:[%s10467_s0 + $0x1e8] ss:$216 sps:$4 sm:$0xff]  }
  0x5c   :  { %6804 = vmatprep.subr.bf16.mxu0 %v7722_v44  ;;  %v7794_v44 = vld [vmem:[%s10466_s1 + $0x460] sm:$0xff]  }
  0x5d   :  { %6831 = vmatpush3.bf16.msra.mxu1 %v7721_v43  ;;  %v7793_v43 = vld [vmem:[%s10466_s1 + $0x4a8] sm:$0xff]  }
  0x5e   :  { %6832 = vmatprep.subr.bf16.mxu1 %v7724_v46  ;;  %v7796_v46 = vld [vmem:[%s10466_s1 + $0x4e0] sm:$0xff]  }
  0x5f   :  { %6805 = vmatpush3.bf16.msra.mxu0 %v7723_v45  ;;  %v7795_v45 = vld [vmem:[%s10466_s1 + $0x420] sm:$0xff]  }
  0x60   :  { %6846 = vmatprep.subr.bf16.mxu0 %v7729_v50  ;;  %v7800_v50 = vld [vmem:[%s10466_s1 + $0x4d8] sm:$0xff]  }
  0x61   :  { %6833 = vmatpush3.bf16.msra.mxu1 %v7728_v49  ;;  %v7799_v49 = vld [vmem:[%s10466_s1 + $0x418] sm:$0xff]  }
  0x62   :  { %4378 = vmatmul.mubr.bf16.vlgmr.msra.gmra.mxu0 %v7725_v47  ;;  %6874 = vmatprep.subr.bf16.mxu1 %v7734_v54  ;;  %v7797_v47 = vld [vmem:[%s10466_s1 + $0x4a0] sm:$0xff]   ;;  %v7804_v54 = vld [vmem:[%s10466_s1 + $0x4d0] sm:$0xff]  }
  0x63   :  { %6847 = vmatpush3.bf16.msra.mxu0 %v7733_v53  ;;  %4385 = vmatprep.mubr.bf16.mxu0 %v7739_v59  ;;  %v7803_v53 = vld [vmem:[%s10466_s1 + $0x410] sm:$0xff]   ;;  %v7809_v59 = vld [vmem:[%s10466_s1 + $0x488] sm:$0xff]  }
  0x64   :  { %4427 = vmatmul.mubr.bf16.vlgmr.msra.gmra.mxu1 %v7730_v51  ;;  %6848 = vmatprep.subr.bf16.mxu0 %v7736_v56  ;;  %v7801_v51 = vld [vmem:[%s10466_s1 + $0x498] sm:$0xff]   ;;  %v7806_v56 = vld [vmem:[%s10466_s1 + $0x448] sm:$0xff]  }
  0x65   :  { %6875 = vmatpush3.bf16.msra.mxu1 %v7735_v55  ;;  %4434 = vmatprep.mubr.bf16.mxu1 %v7744_v63  ;;  %v7805_v55 = vld [vmem:[%s10466_s1 + $0x490] sm:$0xff]   ;;  %v7813_v63 = vld [vmem:[%s10467_s0 + $0x40] ss:$216 sps:$4 sm:$0xff]  }
  0x66   :  { %6876 = vmatprep.subr.bf16.mxu1 %v7738_v58  ;;  %v7808_v58 = vld [vmem:[%s10466_s1 + $0x4c8] sm:$0xff]  }
  0x67   :  { %6849 = vmatpush3.bf16.msra.mxu0 %v7737_v57  ;;  %v7807_v57 = vld [vmem:[%s10466_s1 + $0x408] sm:$0xff]  }
  0x68   :  { %6850 = vmatprep.subr.bf16.mxu0 %v7743_v62  ;;  %v7812_v62 = vld [vmem:[%s10466_s1 + $0x4c0] sm:$0xff]  }
  0x69   :  { %6877 = vmatpush3.bf16.msra.mxu1 %v7741_v60  ;;  %v7810_v60 = vld [vmem:[%s10466_s1 + $0x440] sm:$0xff]  }
  0x6a   :  { %4386 = vmatmul.mubr.bf16.gmra.mxu0 %v7742_v61  ;;  %6878 = vmatprep.subr.bf16.mxu1 %v7748_v2  ;;  %v7811_v61 = vld [vmem:[%s10466_s1 + $0x400] sm:$0xff]   ;;  %v7817_v2 = vld [vmem:[%s10466_s1 + $0x578] sm:$0xff]  }
  0x6b   :  { %6851 = vmatpush3.bf16.msra.mxu0 %v7746_v0  ;;  %4475 = vmatprep.mubr.bf16.mxu0 %v7771_v24  ;;  %v7815_v0 = vld [vmem:[%s10467_s0 + $0x44] ss:$216 sps:$4 sm:$0xff]  }
  0x6c   :  { %4435 = vmatmul.mubr.bf16.gmra.mxu1 %v7747_v1  ;;  %6852 = vmatprep.subr.bf16.mxu0 %v7750_v4  ;;  %v7816_v1 = vld [vmem:[%s10466_s1 + $0x480] sm:$0xff]   ;;  %v7842_v24 = vld [vmem:[%s10466_s1 + $0x558] sm:$0xff]  }
  0x6d   :  { %6879 = vmatpush3.bf16.msra.mxu1 %v7749_v3  ;;  %4524 = vmatprep.mubr.bf16.mxu1 %v7776_v28  ;;  %v7818_v3 = vld [vmem:[%s10467_s0 + $0x48] ss:$216 sps:$4 sm:$0xff]   ;;  %v7820_v4 = vld [vmem:[%s10467_s0 + $0x4c] ss:$216 sps:$4 sm:$0xff]   ;;  %v7846_v28 = vld [vmem:[%s10466_s1 + $0x550] sm:$0xff]  }
  0x6e   :  { %6880 = vmatprep.subr.bf16.mxu1 %v7752_v6  ;;  %v7822_v6 = vld [vmem:[%s10466_s1 + $0x5f8] sm:$0xff]  }
  0x6f   :  { %6853 = vmatpush3.bf16.msra.mxu0 %v7751_v5  ;;  %v7821_v5 = vld [vmem:[%s10466_s1 + $0x538] sm:$0xff]  }
  0x70   :  { %6854 = vmatprep.subr.bf16.mxu0 %v7754_v8  ;;  %v7824_v8 = vld [vmem:[%s10466_s1 + $0x570] sm:$0xff]  }
  0x71   :  { %6881 = vmatpush3.bf16.msra.mxu1 %v7753_v7  ;;  %v7823_v7 = vld [vmem:[%s10466_s1 + $0x5b8] sm:$0xff]  }
  0x72   :  { %6882 = vmatprep.subr.bf16.mxu1 %v7756_v10  ;;  %v7826_v10 = vld [vmem:[%s10466_s1 + $0x5f0] sm:$0xff]  }
  0x73   :  { %6855 = vmatpush3.bf16.msra.mxu0 %v7755_v9  ;;  %v7825_v9 = vld [vmem:[%s10466_s1 + $0x530] sm:$0xff]  }
  0x74   :  { %6856 = vmatprep.subr.bf16.mxu0 %v7758_v12  ;;  %v7829_v12 = vld [vmem:[%s10466_s1 + $0x5b0] sm:$0xff]  }
  0x75   :  { %6883 = vmatpush3.bf16.msra.mxu1 %v7757_v11  ;;  %v7827_v11 = vld [vmem:[%s10467_s0 + $0x1f4] ss:$216 sps:$4 sm:$0xff]  }
  0x76   :  { %6884 = vmatprep.subr.bf16.mxu1 %v7760_v14  ;;  %v7831_v14 = vld [vmem:[%s10466_s1 + $0x568] sm:$0xff]  }
  0x77   :  { %6857 = vmatpush3.bf16.msra.mxu0 %v7759_v13  ;;  %v7830_v13 = vld [vmem:[%s10467_s0 + $0x1f0] ss:$216 sps:$4 sm:$0xff]  }
  0x78   :  { %6858 = vmatprep.subr.bf16.mxu0 %v7762_v16  ;;  %v7834_v16 = vld [vmem:[%s10466_s1 + $0x528] sm:$0xff]  }
  0x79   :  { %6885 = vmatpush3.bf16.msra.mxu1 %v7761_v15  ;;  %v7832_v15 = vld [vmem:[%s10467_s0 + $0x1fc] ss:$216 sps:$4 sm:$0xff]  }
  0x7a   :  { %6886 = vmatprep.subr.bf16.mxu1 %v7764_v18  ;;  %v7836_v18 = vld [vmem:[%s10466_s1 + $0x5e8] sm:$0xff]  }
  0x7b   :  { %6859 = vmatpush3.bf16.msra.mxu0 %v7763_v17  ;;  %v7835_v17 = vld [vmem:[%s10467_s0 + $0x1f8] ss:$216 sps:$4 sm:$0xff]  }
  0x7c   :  { %6860 = vmatprep.subr.bf16.mxu0 %v7766_v20  ;;  %v7838_v20 = vld [vmem:[%s10466_s1 + $0x560] sm:$0xff]  }
  0x7d   :  { %6887 = vmatpush3.bf16.msra.mxu1 %v7765_v19  ;;  %v7837_v19 = vld [vmem:[%s10466_s1 + $0x5a8] sm:$0xff]  }
  0x7e   :  { %6888 = vmatprep.subr.bf16.mxu1 %v7768_v22  ;;  %v7840_v22 = vld [vmem:[%s10466_s1 + $0x5e0] sm:$0xff]  }
  0x7f   :  { %6861 = vmatpush3.bf16.msra.mxu0 %v7767_v21  ;;  %v7839_v21 = vld [vmem:[%s10466_s1 + $0x520] sm:$0xff]  }
  0x80   :  { %6902 = vmatprep.subr.bf16.mxu0 %v7773_v26  ;;  %v7844_v26 = vld [vmem:[%s10466_s1 + $0x5d8] sm:$0xff]  }
  0x81   :  { %6889 = vmatpush3.bf16.msra.mxu1 %v7772_v25  ;;  %v7843_v25 = vld [vmem:[%s10466_s1 + $0x518] sm:$0xff]  }
  0x82   :  { %4476 = vmatmul.mubr.bf16.vlgmr.msra.gmra.mxu0 %v7769_v23  ;;  %6930 = vmatprep.subr.bf16.mxu1 %v7778_v30  ;;  %v7841_v23 = vld [vmem:[%s10466_s1 + $0x5a0] sm:$0xff]   ;;  %v7848_v30 = vld [vmem:[%s10466_s1 + $0x5d0] sm:$0xff]  }
  0x83   :  { %6903 = vmatpush3.bf16.msra.mxu0 %v7777_v29  ;;  %4483 = vmatprep.mubr.bf16.mxu0 %v7783_v35  ;;  %v7847_v29 = vld [vmem:[%s10466_s1 + $0x510] sm:$0xff]   ;;  %v7853_v35 = vld [vmem:[%s10466_s1 + $0x588] sm:$0xff]  }
  0x84   :  { %4525 = vmatmul.mubr.bf16.vlgmr.msra.gmra.mxu1 %v7774_v27  ;;  %6904 = vmatprep.subr.bf16.mxu0 %v7780_v32  ;;  %v7845_v27 = vld [vmem:[%s10466_s1 + $0x598] sm:$0xff]   ;;  %v7850_v32 = vld [vmem:[%s10466_s1 + $0x548] sm:$0xff]  }
  0x85   :  { %6931 = vmatpush3.bf16.msra.mxu1 %v7779_v31  ;;  %4532 = vmatprep.mubr.bf16.mxu1 %v7788_v39  ;;  %v7849_v31 = vld [vmem:[%s10466_s1 + $0x590] sm:$0xff]  }
  0x86   :  { %6932 = vmatprep.subr.bf16.mxu1 %v7782_v34  ;;  %v7852_v34 = vld [vmem:[%s10466_s1 + $0x5c8] sm:$0xff]  }
  0x87   :  { %6905 = vmatpush3.bf16.msra.mxu0 %v7781_v33  ;;  %v7851_v33 = vld [vmem:[%s10466_s1 + $0x508] sm:$0xff]  }
  0x88   :  { %6906 = vmatprep.subr.bf16.mxu0 %v7787_v38  ;;  %v7856_v38 = vld [vmem:[%s10466_s1 + $0x5c0] sm:$0xff]   ;;  %v7857_v39 = vld [vmem:[%s10467_s0 + $0x50] ss:$216 sps:$4 sm:$0xff]  }
  0x89   :  { %6933 = vmatpush3.bf16.msra.mxu1 %v7785_v36  ;;  %v7854_v36 = vld [vmem:[%s10466_s1 + $0x540] sm:$0xff]  }
  0x8a   :  { %4484 = vmatmul.mubr.bf16.gmra.mxu0 %v7786_v37  ;;  %6934 = vmatprep.subr.bf16.mxu1 %v7792_v42  ;;  %v7855_v37 = vld [vmem:[%s10466_s1 + $0x500] sm:$0xff]   ;;  %v7861_v42 = vld [vmem:[%s10466_s1 + $0x678] sm:$0xff]  }
  0x8b   :  { %6907 = vmatpush3.bf16.msra.mxu0 %v7790_v40  ;;  %4573 = vmatprep.mubr.bf16.mxu0 %v7815_v0  ;;  %v7859_v40 = vld [vmem:[%s10467_s0 + $0x54] ss:$216 sps:$4 sm:$0xff]  }
  0x8c   :  { %4533 = vmatmul.mubr.bf16.gmra.mxu1 %v7791_v41  ;;  %6908 = vmatprep.subr.bf16.mxu0 %v7794_v44  ;;  %v7860_v41 = vld [vmem:[%s10466_s1 + $0x580] sm:$0xff]   ;;  %v7864_v44 = vld [vmem:[%s10467_s0 + $0x5c] ss:$216 sps:$4 sm:$0xff]  }
  0x8d   :  { %6935 = vmatpush3.bf16.msra.mxu1 %v7793_v43  ;;  %4622 = vmatprep.mubr.bf16.mxu1 %v7820_v4  ;;  %v7862_v43 = vld [vmem:[%s10467_s0 + $0x58] ss:$216 sps:$4 sm:$0xff]  }
  0x8e   :  { %6936 = vmatprep.subr.bf16.mxu1 %v7796_v46  ;;  %v7866_v46 = vld [vmem:[%s10466_s1 + $0x6f8] sm:$0xff]  }
  0x8f   :  { %6909 = vmatpush3.bf16.msra.mxu0 %v7795_v45  ;;  %v7865_v45 = vld [vmem:[%s10466_s1 + $0x638] sm:$0xff]  }
  0x90   :  { %6910 = vmatprep.subr.bf16.mxu0 %v7798_v48  ;;  %v7868_v48 = vld [vmem:[%s10466_s1 + $0x670] sm:$0xff]   ;;  %v7887_v4 = vld [vmem:[%s10466_s1 + $0x618] sm:$0xff]  }
  0x91   :  { %6937 = vmatpush3.bf16.msra.mxu1 %v7797_v47  ;;  %v7867_v47 = vld [vmem:[%s10466_s1 + $0x6b8] sm:$0xff]  }
  0x92   :  { %6938 = vmatprep.subr.bf16.mxu1 %v7800_v50  ;;  %v7870_v50 = vld [vmem:[%s10466_s1 + $0x6f0] sm:$0xff]  }
  0x93   :  { %6911 = vmatpush3.bf16.msra.mxu0 %v7799_v49  ;;  %v7869_v49 = vld [vmem:[%s10466_s1 + $0x630] sm:$0xff]  }
  0x94   :  { %6912 = vmatprep.subr.bf16.mxu0 %v7802_v52  ;;  %v7873_v52 = vld [vmem:[%s10466_s1 + $0x6b0] sm:$0xff]  }
  0x95   :  { %6939 = vmatpush3.bf16.msra.mxu1 %v7801_v51  ;;  %v7871_v51 = vld [vmem:[%s10467_s0 + $0x204] ss:$216 sps:$4 sm:$0xff]  }
  0x96   :  { %6940 = vmatprep.subr.bf16.mxu1 %v7804_v54  ;;  %v7875_v54 = vld [vmem:[%s10466_s1 + $0x668] sm:$0xff]  }
  0x97   :  { %6913 = vmatpush3.bf16.msra.mxu0 %v7803_v53  ;;  %v7874_v53 = vld [vmem:[%s10467_s0 + $0x200] ss:$216 sps:$4 sm:$0xff]  }
  0x98   :  { %6914 = vmatprep.subr.bf16.mxu0 %v7806_v56  ;;  %v7878_v56 = vld [vmem:[%s10466_s1 + $0x628] sm:$0xff]  }
  0x99   :  { %6941 = vmatpush3.bf16.msra.mxu1 %v7805_v55  ;;  %v7876_v55 = vld [vmem:[%s10467_s0 + $0x20c] ss:$216 sps:$4 sm:$0xff]  }
  0x9a   :  { %6942 = vmatprep.subr.bf16.mxu1 %v7808_v58  ;;  %v7880_v58 = vld [vmem:[%s10466_s1 + $0x6e8] sm:$0xff]  }
  0x9b   :  { %6915 = vmatpush3.bf16.msra.mxu0 %v7807_v57  ;;  %v7879_v57 = vld [vmem:[%s10467_s0 + $0x208] ss:$216 sps:$4 sm:$0xff]  }
  0x9c   :  { %6916 = vmatprep.subr.bf16.mxu0 %v7810_v60  ;;  %v7881_v60 = vld [vmem:[%s10466_s1 + $0x6a8] sm:$0xff]  }
  0x9d   :  { %6943 = vmatpush3.bf16.msra.mxu1 %v7809_v59 }
  0x9e   :  { %6944 = vmatprep.subr.bf16.mxu1 %v7812_v62  ;;  %v7883_v62 = vld [vmem:[%s10466_s1 + $0x620] sm:$0xff]  }
  0x9f   :  { %6917 = vmatpush3.bf16.msra.mxu0 %v7811_v61  ;;  %v7882_v61 = vld [vmem:[%s10466_s1 + $0x660] sm:$0xff]  }
  0xa0   :  { %6958 = vmatprep.subr.bf16.mxu0 %v7817_v2  ;;  %v7885_v2 = vld [vmem:[%s10466_s1 + $0x6a0] sm:$0xff]  }
  0xa1   :  { %6945 = vmatpush3.bf16.msra.mxu1 %v7816_v1 }
  0xa2   :  { %4574 = vmatmul.mubr.bf16.vlgmr.msra.gmra.mxu0 %v7813_v63  ;;  %6986 = vmatprep.subr.bf16.mxu1 %v7822_v6  ;;  %v7884_v63 = vld [vmem:[%s10466_s1 + $0x6e0] sm:$0xff]  }
  0xa3   :  { %6959 = vmatpush3.bf16.msra.mxu0 %v7821_v5  ;;  %4581 = vmatprep.mubr.bf16.mxu0 %v7827_v11  ;;  %v7888_v5 = vld [vmem:[%s10466_s1 + $0x6d8] sm:$0xff]   ;;  %v7892_v11 = vld [vmem:[%s10466_s1 + $0x6d0] sm:$0xff]  }
  0xa4   :  { %4623 = vmatmul.mubr.bf16.vlgmr.msra.gmra.mxu1 %v7818_v3  ;;  %6960 = vmatprep.subr.bf16.mxu0 %v7824_v8  ;;  %v7886_v3 = vld [vmem:[%s10466_s1 + $0x658] sm:$0xff]  }
  0xa5   :  { %6987 = vmatpush3.bf16.msra.mxu1 %v7823_v7  ;;  %4630 = vmatprep.mubr.bf16.mxu1 %v7832_v15  ;;  %v7889_v8 = vld [vmem:[%s10466_s1 + $0x698] sm:$0xff]   ;;  %v7894_v15 = vld [vmem:[%s10466_s1 + $0x648] sm:$0xff]  }
  0xa6   :  { %6988 = vmatprep.subr.bf16.mxu1 %v7826_v10  ;;  %v7891_v10 = vld [vmem:[%s10466_s1 + $0x610] sm:$0xff]  }
  0xa7   :  { %6961 = vmatpush3.bf16.msra.mxu0 %v7825_v9  ;;  %v7890_v9 = vld [vmem:[%s10466_s1 + $0x650] sm:$0xff]  }
  0xa8   :  { %6962 = vmatprep.subr.bf16.mxu0 %v7831_v14  ;;  %v7893_v14 = vld [vmem:[%s10466_s1 + $0x690] sm:$0xff]  }
  0xa9   :  { %6989 = vmatpush3.bf16.msra.mxu1 %v7829_v12 }
  0xaa   :  { %4582 = vmatmul.mubr.bf16.gmra.mxu0 %v7830_v13  ;;  %6990 = vmatprep.subr.bf16.mxu1 %v7836_v18  ;;  %v7896_v18 = vld [vmem:[%s10466_s1 + $0x6c8] sm:$0xff]  }
  0xab   :  { %6963 = vmatpush3.bf16.msra.mxu0 %v7834_v16  ;;  %4671 = vmatprep.mubr.bf16.mxu0 %v7859_v40  ;;  %v7906_v40 = vld [vmem:[%s10467_s0 + $0x68] ss:$216 sps:$4 sm:$0xff]  }
  0xac   :  { %4631 = vmatmul.mubr.bf16.gmra.mxu1 %v7835_v17  ;;  %6964 = vmatprep.subr.bf16.mxu0 %v7838_v20  ;;  %v7895_v17 = vld [vmem:[%s10466_s1 + $0x608] sm:$0xff]  }
  0xad   :  { %6991 = vmatpush3.bf16.msra.mxu1 %v7837_v19  ;;  %4720 = vmatprep.mubr.bf16.mxu1 %v7864_v44 }
  0xae   :  { %6992 = vmatprep.subr.bf16.mxu1 %v7840_v22  ;;  %v7898_v22 = vld [vmem:[%s10466_s1 + $0x640] sm:$0xff]  }
  0xaf   :  { %6965 = vmatpush3.bf16.msra.mxu0 %v7839_v21  ;;  %v7897_v21 = vld [vmem:[%s10466_s1 + $0x688] sm:$0xff]  }
  0xb0   :  { %6966 = vmatprep.subr.bf16.mxu0 %v7842_v24 }
  0xb1   :  { %6993 = vmatpush3.bf16.msra.mxu1 %v7841_v23 }
  0xb2   :  { %6994 = vmatprep.subr.bf16.mxu1 %v7844_v26  ;;  %v7900_v26 = vld [vmem:[%s10466_s1 + $0x6c0] sm:$0xff]  }
  0xb3   :  { %6967 = vmatpush3.bf16.msra.mxu0 %v7843_v25  ;;  %v7899_v25 = vld [vmem:[%s10466_s1 + $0x600] sm:$0xff]  }
  0xb4   :  { %6968 = vmatprep.subr.bf16.mxu0 %v7846_v28 }
  0xb5   :  { %6995 = vmatpush3.bf16.msra.mxu1 %v7845_v27 }
  0xb6   :  { %6996 = vmatprep.subr.bf16.mxu1 %v7848_v30 }
  0xb7   :  { %6969 = vmatpush3.bf16.msra.mxu0 %v7847_v29  ;;  %v7901_v29 = vld [vmem:[%s10467_s0 + $0x60] ss:$216 sps:$4 sm:$0xff]  }
  0xb8   :  { %6970 = vmatprep.subr.bf16.mxu0 %v7850_v32 }
  0xb9   :  { %6997 = vmatpush3.bf16.msra.mxu1 %v7849_v31  ;;  %v7903_v31 = vld [vmem:[%s10467_s0 + $0x64] ss:$216 sps:$4 sm:$0xff]  }
  0xba   :  { %6998 = vmatprep.subr.bf16.mxu1 %v7852_v34 }
  0xbb   :  { %6971 = vmatpush3.bf16.msra.mxu0 %v7851_v33  ;;  %v7904_v33 = vld [vmem:[%s10466_s1 + $0x680] sm:$0xff]  }
  0xbc   :  { %6972 = vmatprep.subr.bf16.mxu0 %v7854_v36 }
  0xbd   :  { %6999 = vmatpush3.bf16.msra.mxu1 %v7853_v35 }
  0xbe   :  { %7000 = vmatprep.subr.bf16.mxu1 %v7856_v38 }
  0xbf   :  { %6973 = vmatpush3.bf16.msra.mxu0 %v7855_v37  ;;  %v7905_v37 = vld [vmem:[%s10466_s1 + $0x778] sm:$0xff]  }
  0xc0   :  { %7014 = vmatprep.subr.bf16.mxu0 %v7861_v42 }
  0xc1   :  { %7001 = vmatpush3.bf16.msra.mxu1 %v7860_v41  ;;  %v7908_v41 = vld [vmem:[%s10467_s0 + $0x6c] ss:$216 sps:$4 sm:$0xff]  }
  0xc2   :  { %4672 = vmatmul.mubr.bf16.vlgmr.msra.gmra.mxu0 %v7857_v39  ;;  %7042 = vmatprep.subr.bf16.mxu1 %v7866_v46  ;;  %v6131_v46 = vld [vmem:[%s10468_s2] ss:$0 sm:$0xff] }
  0xc3   :  { %7015 = vmatpush3.bf16.msra.mxu0 %v7865_v45  ;;  %4679 = vmatprep.mubr.bf16.mxu0 %v7871_v51  ;;  %v7909_v45 = vld [vmem:[%s10466_s1 + $0x738] sm:$0xff]  }
  0xc4   :  { %4721 = vmatmul.mubr.bf16.vlgmr.msra.gmra.mxu1 %v7862_v43  ;;  %7016 = vmatprep.subr.bf16.mxu0 %v7868_v48  ;;  %v7910_v48 = vld [vmem:[%s10466_s1 + $0x7f8] sm:$0xff]  }
  0xc5   :  { %7043 = vmatpush3.bf16.msra.mxu1 %v7867_v47  ;;  %4728 = vmatprep.mubr.bf16.mxu1 %v7876_v55 }
  0xc6   :  { %7044 = vmatprep.subr.bf16.mxu1 %v7870_v50 }
  0xc7   :  { %7017 = vmatpush3.bf16.msra.mxu0 %v7869_v49 }
  0xc8   :  { %7018 = vmatprep.subr.bf16.mxu0 %v7875_v54  ;;  %v7912_v54 = vld [vmem:[%s10466_s1 + $0x770] sm:$0xff]  }
  0xc9   :  { %7045 = vmatpush3.bf16.msra.mxu1 %v7873_v52  ;;  %v7911_v52 = vld [vmem:[%s10466_s1 + $0x7b8] sm:$0xff]  }
  0xca   :  { %4680 = vmatmul.mubr.bf16.gmra.mxu0 %v7874_v53  ;;  %7046 = vmatprep.subr.bf16.mxu1 %v7880_v58  ;;  %v7913_v58 = vld [vmem:[%s10466_s1 + $0x730] sm:$0xff]  }
  0xcb   :  { %7019 = vmatpush3.bf16.msra.mxu0 %v7878_v56  ;;  %4769 = vmatprep.mubr.bf16.mxu0 %v7903_v31 }
  0xcc   :  { %4729 = vmatmul.mubr.bf16.gmra.mxu1 %v7879_v57  ;;  %7020 = vmatprep.subr.bf16.mxu0 %v7882_v61  ;;  %v7915_v61 = vld [vmem:[%s10467_s0 + $0x214] ss:$216 sps:$4 sm:$0xff]  }
  0xcd   :  { %7047 = vmatpush3.bf16.msra.mxu1 %v7881_v60  ;;  %4818 = vmatprep.mubr.bf16.mxu1 %v7908_v41  ;;  %v7914_v60 = vld [vmem:[%s10466_s1 + $0x7f0] sm:$0xff]  }
  0xce   :  { %7048 = vmatprep.subr.bf16.mxu1 %v7884_v63  ;;  %v7917_v63 = vld [vmem:[%s10466_s1 + $0x7b0] sm:$0xff]  }
  0xcf   :  { %7021 = vmatpush3.bf16.msra.mxu0 %v7883_v62  ;;  %v7935_v41 = vld [vmem:[%s10466_s1 + $0x710] sm:$0xff]  }
  0xd0   :  { %7022 = vmatprep.subr.bf16.mxu0 %v7886_v3 }
  0xd1   :  { %7049 = vmatpush3.bf16.msra.mxu1 %v7885_v2  ;;  %v7918_v2 = vld [vmem:[%s10467_s0 + $0x210] ss:$216 sps:$4 sm:$0xff]  }
  0xd2   :  { %7050 = vmatprep.subr.bf16.mxu1 %v7888_v5 }
  0xd3   :  { %7023 = vmatpush3.bf16.msra.mxu0 %v7887_v4  ;;  %v7919_v4 = vld [vmem:[%s10466_s1 + $0x768] sm:$0xff]  }
  0xd4   :  { %7024 = vmatprep.subr.bf16.mxu0 %v7890_v9 }
  0xd5   :  { %7051 = vmatpush3.bf16.msra.mxu1 %v7889_v8 }
  0xd6   :  { %7052 = vmatprep.subr.bf16.mxu1 %v7892_v11  ;;  %v7923_v11 = vld [vmem:[%s10467_s0 + $0x218] ss:$216 sps:$4 sm:$0xff]  }
  0xd7   :  { %7025 = vmatpush3.bf16.msra.mxu0 %v7891_v10  ;;  %v7922_v10 = vld [vmem:[%s10466_s1 + $0x728] sm:$0xff]  }
  0xd8   :  { %7026 = vmatprep.subr.bf16.mxu0 %v7894_v15 }
  0xd9   :  { %7053 = vmatpush3.bf16.msra.mxu1 %v7893_v14  ;;  %v7924_v14 = vld [vmem:[%s10466_s1 + $0x7e8] sm:$0xff]  }
  0xda   :  { %7054 = vmatprep.subr.bf16.mxu1 %v7896_v18 }
  0xdb   :  { %7027 = vmatpush3.bf16.msra.mxu0 %v7895_v17 }
  0xdc   :  { %7028 = vmatprep.subr.bf16.mxu0 %v7898_v22 }
  0xdd   :  { %7055 = vmatpush3.bf16.msra.mxu1 %v7897_v21  ;;  %v7927_v21 = vld [vmem:[%s10466_s1 + $0x720] sm:$0xff]  }
  0xde   :  { %7056 = vmatprep.subr.bf16.mxu1 %v7900_v26 }
  0xdf   :  { %7029 = vmatpush3.bf16.msra.mxu0 %v7899_v25  ;;  %v7929_v25 = vld [vmem:[%s10466_s1 + $0x7a0] sm:$0xff]  }
  0xe0   :  { %7070 = vmatprep.subr.bf16.mxu0 %v7905_v37 }
  0xe1   :  { %7057 = vmatpush3.bf16.msra.mxu1 %v7904_v33 }
  0xe2   :  { %v9026_v59 = vpop.f32.mrf.mxu0  ;;  %4770 = vmatmul.mubr.bf16.vlgmr.msra.gmra.mxu0 %v7901_v29  ;;  %7098 = vmatprep.subr.bf16.mxu1 %v7910_v48  ;;  %v7938_v48 = vld [vmem:[%s10466_s1 + $0x748] sm:$0xff]  }
  0xe3   :  { %7071 = vmatpush3.bf16.msra.mxu0 %v7909_v45  ;;  %4777 = vmatprep.mubr.bf16.mxu0 %v7915_v61  ;;  %v7952_v61 = vld [vmem:[%s10467_s0 + $0x7c] ss:$216 sps:$4 sm:$0xff]  }
  0xe4   :  { %v6695_v0 = vpop.f32.mrf.mxu0  ;;  %v6722_v1 = vpop.f32.mrf.mxu1  ;;  %4819 = vmatmul.mubr.bf16.vlgmr.msra.gmra.mxu1 %v7906_v40  ;;  %7072 = vmatprep.subr.bf16.mxu0 %v7912_v54  ;;  %v7943_v54 = vld [vmem:[%s10466_s1 + $0x700] sm:$0xff]  }
  0xe5   :  { %v6696_v34 = vadd.f32 %v6695_v0, %v9026_v59  ;;  %7099 = vmatpush3.bf16.msra.mxu1 %v7911_v52  ;;  %v7941_v52 = vld [vmem:[%s10466_s1 + $0x788] sm:$0xff]  }
  0xe6   :  { %v6697_v6 = vpop.f32.mrf.mxu0  ;;  %v6723_v7 = vpop.f32.mrf.mxu1  ;;  %7100 = vmatprep.subr.bf16.mxu1 %v7914_v60  ;;  %v7950_v60 = vld [vmem:[%s10467_s0 + $0x78] ss:$216 sps:$4 sm:$0xff]  }
  0xe7   :  { %v6724_v38 = vadd.f32 %v6723_v7, %v6722_v1  ;;  %v4184_v47 = vadd.f32 %v6696_v34, %v6131_v46  ;;  %7073 = vmatpush3.bf16.msra.mxu0 %v7913_v58  ;;  %v7920_v7 = vld [vmem:[%s10467_s0 + $0x21c] ss:$216 sps:$4 sm:$0xff]   ;;  %v7948_v58 = vld [vmem:[%s10466_s1 + $0x780] sm:$0xff]  }
  0xe8   :  { %v6698_v12 = vpop.f32.mrf.mxu0  ;;  %v6725_v13 = vpop.f32.mrf.mxu1  ;;  %7074 = vmatprep.subr.bf16.mxu0 %v7919_v4  ;;  %4826 = vmatprep.mubr.bf16.mxu1 %v7920_v7  ;;  %v7958_v4 = vld [vmem:[%s10466_s1 + $0x8f0] sm:$0xff]  }
  0xe9   :  { %v6699_v35 = vadd.f32 %v6698_v12, %v6697_v6  ;;  %v4233_v53 = vadd.f32 %v6724_v38, %v4184_v47  ;;  %7101 = vmatpush3.bf16.msra.mxu1 %v7917_v63  ;;  %v7934_v38 = vld [vmem:[%s10466_s1 + $0x750] sm:$0xff]   ;;  %v7954_v63 = vld [vmem:[%s10466_s1 + $0x8f8] sm:$0xff]  }
  0xea   :  { %v6700_v16 = vpop.f32.mrf.mxu0  ;;  %v6726_v19 = vpop.f32.mrf.mxu1  ;;  %4778 = vmatmul.mubr.bf16.gmra.mxu0 %v7918_v2  ;;  %7102 = vmatprep.subr.bf16.mxu1 %v7924_v14  ;;  %v7964_v14 = vld [vmem:[%s10467_s0 + $0x22c] ss:$216 sps:$4 sm:$0xff]  }
  0xeb   :  { %v6727_v42 = vadd.f32 %v6726_v19, %v6725_v13  ;;  %v4187_v49 = vadd.f32 %v6699_v35, %v6131_v46  ;;  %7075 = vmatpush3.bf16.msra.mxu0 %v7922_v10  ;;  %v7926_v19 = vld [vmem:[%s10466_s1 + $0x760] sm:$0xff]   ;;  %v7933_v35 = vld [vmem:[%s10466_s1 + $0x798] sm:$0xff]  }
  0xec   :  { %v6701_v20 = vpop.f32.mrf.mxu0  ;;  %v6728_v23 = vpop.f32.mrf.mxu1  ;;  %4827 = vmatmul.mubr.bf16.gmra.mxu1 %v7923_v11  ;;  %7076 = vmatprep.subr.bf16.mxu0 %v7926_v19  ;;  %v7967_v19 = vld [vmem:[%s10467_s0 + $0x228] ss:$216 sps:$4 sm:$0xff]  }
  0xed   :  { %v6702_v36 = vadd.f32 %v6701_v20, %v6700_v16  ;;  %v4236_v55 = vadd.f32 %v6727_v42, %v4187_v49  ;;  %v7925_v16 = vld [vmem:[%s10466_s1 + $0x7a8] sm:$0xff]   ;;  %4916 = vmatprep.mubr.bf16.mxu1 %v7952_v61  ;;  %v7986_v61 = vld [vmem:[%s10466_s1 + $0x840] sm:$0xff]  }
  0xee   :  { %v6703_v24 = vpop.f32.mrf.mxu0  ;;  %v6729_v27 = vpop.f32.mrf.mxu1  ;;  %7103 = vmatpush3.bf16.msra.mxu1 %v7925_v16  ;;  %v7939_v49 = vld [vmem:[%s10466_s1 + $0x708] sm:$0xff]  }
  0xef   :  { %v6730_v43 = vadd.f32 %v6729_v27, %v6728_v23  ;;  %v4192_v50 = vadd.f32 %v6702_v36, %v6131_v46  ;;  %v7928_v23 = vld [vmem:[%s10466_s1 + $0x7e0] sm:$0xff]   ;;  %7077 = vmatpush3.bf16.msra.mxu0 %v7927_v21  ;;  %v7930_v27 = vld [vmem:[%s10466_s1 + $0x758] sm:$0xff]  }
  0xf0   :  { %v6704_v28 = vpop.f32.mrf.mxu0  ;;  %v6731_v32 = vpop.f32.mrf.mxu1  ;;  %7104 = vmatprep.subr.bf16.mxu1 %v7928_v23  ;;  %7078 = vmatprep.subr.bf16.mxu0 %v7930_v27  ;;  %v7969_v23 = vld [vmem:[%s10466_s1 + $0x8a8] sm:$0xff]   ;;  %v7970_v27 = vld [vmem:[%s10466_s1 + $0x860] sm:$0xff]  }
  0xf1   :  { %v6705_v30 = vadd.f32 %v6704_v28, %v6703_v24  ;;  %v4241_v56 = vadd.f32 %v6730_v43, %v4192_v50  ;;  %v7936_v43 = vld [vmem:[%s10466_s1 + $0x7d0] sm:$0xff]  }
  0xf2   :  { %v6732_v39 = vpop.f32.mrf.mxu1  ;;  %7105 = vmatpush3.bf16.msra.mxu1 %v7929_v25 }
  0xf3   :  { %v6733_v44 = vadd.f32 %v6732_v39, %v6731_v32  ;;  %v4195_v51 = vadd.f32 %v6705_v30, %v6131_v46  ;;  %v7931_v30 = vld [vmem:[%s10466_s1 + $0x718] sm:$0xff]   ;;  %v7937_v46 = vld [vmem:[%s10466_s1 + $0x790] sm:$0xff]  }
  0xf4   :  { %v7932_v32 = vld [vmem:[%s10466_s1 + $0x7d8] sm:$0xff]   ;;  %7079 = vmatpush3.bf16.msra.mxu0 %v7931_v30 }
  0xf5   :  { %v9122_v57 = vadd.f32 %v6733_v44, %v4195_v51  ;;  %7106 = vmatprep.subr.bf16.mxu1 %v7932_v32  ;;  %7080 = vmatprep.subr.bf16.mxu0 %v7934_v38  ;;  %v7940_v51 = vld [vmem:[%s10466_s1 + $0x7c8] sm:$0xff]   ;;  %v7972_v32 = vld [vmem:[%s10466_s1 + $0x8e0] sm:$0xff]   ;;  %v7975_v38 = vld [vmem:[%s10466_s1 + $0x818] sm:$0xff]  }
  0xf6   :  { %7107 = vmatpush3.bf16.msra.mxu1 %v7933_v35  ;;  %v7974_v35 = vld [vmem:[%s10466_s1 + $0x858] sm:$0xff]  }
  0xf7   :  { %7108 = vmatprep.subr.bf16.mxu1 %v7936_v43 }
  0xf8   :  { %7081 = vmatpush3.bf16.msra.mxu0 %v7935_v41 }
  0xf9   :  { %7082 = vmatprep.subr.bf16.mxu0 %v7938_v48 }
  0xfa   :  { %7109 = vmatpush3.bf16.msra.mxu1 %v7937_v46 }
  0xfb   :  { %7110 = vmatprep.subr.bf16.mxu1 %v7940_v51 }
  0xfc   :  { %7083 = vmatpush3.bf16.msra.mxu0 %v7939_v49 }
  0xfe   :  { %7111 = vmatpush3.bf16.msra.mxu1 %v7941_v52  ;;  %v7980_v52 = vld [vmem:[%s10466_s1 + $0x8d0] sm:$0xff]  }
 0x102   :  { %v6750_v59 = vpop.f32.mrf.mxu0 }
 0x104   :  { %v6751_v62 = vpop.f32.mrf.mxu0  ;;  %v6778_v1 = vpop.f32.mrf.mxu1 }
 0x105   :  { %v6752_v0 = vadd.f32 %v6751_v62, %v6750_v59  ;;  %v7949_v59 = vld [vmem:[%s10466_s1 + $0x878] sm:$0xff]  }
 0x106   :  { %v6753_v3 = vpop.f32.mrf.mxu0  ;;  %v6779_v6 = vpop.f32.mrf.mxu1  ;;  %v7953_v62 = vld [vmem:[%s10466_s1 + $0x838] sm:$0xff]  }
 0x107   :  { %v4282_v5 = vadd.f32 %v6752_v0, %v4233_v53  ;;  %v6780_v8 = vadd.f32 %v6779_v6, %v6778_v1  ;;  %v7942_v53 = vld [vmem:[%s10466_s1 + $0x740] sm:$0xff]   ;;  %v7955_v0 = vld [vmem:[%s10466_s1 + $0x8b8] sm:$0xff]   ;;  %v7956_v1 = vld [vmem:[%s10466_s1 + $0x870] sm:$0xff]  }
 0x108   :  { %v6754_v9 = vpop.f32.mrf.mxu0  ;;  %v6781_v13 = vpop.f32.mrf.mxu1  ;;  %7084 = vmatprep.subr.bf16.mxu0 %v7942_v53  ;;  %v7959_v6 = vld [vmem:[%s10467_s0 + $0x224] ss:$216 sps:$4 sm:$0xff]  }
 0x109   :  { %v6755_v12 = vadd.f32 %v6754_v9, %v6753_v3  ;;  %v9154_v15 = vadd.f32 %v6780_v8, %v4282_v5  ;;  %7085 = vmatpush3.bf16.msra.mxu0 %v7943_v54  ;;  %v7957_v3 = vld [vmem:[%s10466_s1 + $0x830] sm:$0xff]   ;;  %v7962_v9 = vld [vmem:[%s10467_s0 + $0x220] ss:$216 sps:$4 sm:$0xff]  }
 0x10a   :  { %v6782_v18 = vpop.f32.mrf.mxu1  ;;  %v6756_v22 = vpop.f32.mrf.mxu0  ;;  %7126 = vmatprep.subr.bf16.mxu0 %v7949_v59  ;;  %v7961_v8 = vld [vmem:[%s10466_s1 + $0x8b0] sm:$0xff]  }
 0x10b   :  { %v4285_v17 = vadd.f32 %v6755_v12, %v4236_v55  ;;  %v6783_v20 = vadd.f32 %v6782_v18, %v6781_v13  ;;  %v7944_v55 = vld [vmem:[%s10466_s1 + $0x7c0] sm:$0xff]   ;;  %v7963_v12 = vld [vmem:[%s10466_s1 + $0x868] sm:$0xff]  }
 0x10c   :  { %v6757_v26 = vpop.f32.mrf.mxu0  ;;  %v6784_v29 = vpop.f32.mrf.mxu1  ;;  %7112 = vmatprep.subr.bf16.mxu1 %v7944_v55  ;;  %v7966_v18 = vld [vmem:[%s10466_s1 + $0x828] sm:$0xff]   ;;  %v7981_v55 = vld [vmem:[%s10466_s1 + $0x890] sm:$0xff]  }
 0x10d   :  { %v9168_v24 = vadd.f32 %v6783_v20, %v4285_v17  ;;  %v6758_v28 = vadd.f32 %v6757_v26, %v6756_v22  ;;  %7113 = vmatpush3.bf16.msra.mxu1 %v7948_v58  ;;  %v7983_v58 = vld [vmem:[%s10466_s1 + $0x808] sm:$0xff]  }
 0x10e   :  { %v6759_v31 = vpop.f32.mrf.mxu0  ;;  %v6785_v34 = vpop.f32.mrf.mxu1  ;;  %7154 = vmatprep.subr.bf16.mxu1 %v7954_v63  ;;  %v7988_v63 = vld [vmem:[%s10466_s1 + $0x8c0] sm:$0xff]  }
 0x10f   :  { %v4290_v33 = vadd.f32 %v6758_v28, %v4241_v56  ;;  %v6786_v36 = vadd.f32 %v6785_v34, %v6784_v29  ;;  %v7945_v56 = vld [vmem:[%s10467_s0 + $0x70] ss:$216 sps:$4 sm:$0xff]   ;;  %v7971_v29 = vld [vmem:[%s10466_s1 + $0x820] sm:$0xff]  }
 0x110   :  { %v6760_v37 = vpop.f32.mrf.mxu0  ;;  %v6787_v40 = vpop.f32.mrf.mxu1  ;;  %4917 = vmatmul.mubr.bf16.vlgmr.msra.gmra.mxu1 %v7950_v60  ;;  %v7985_v60 = vld [vmem:[%s10466_s1 + $0x888] sm:$0xff]  }
 0x111   :  { %v6761_v39 = vadd.f32 %v6760_v37, %v6759_v31  ;;  %v9191_v42 = vadd.f32 %v6786_v36, %v4290_v33  ;;  %7155 = vmatpush3.bf16.msra.mxu1 %v7955_v0  ;;  %4924 = vmatprep.mubr.bf16.mxu1 %v7964_v14  ;;  %v7989_v0 = vld [vmem:[%s10467_s0 + $0x80] ss:$216 sps:$4 sm:$0xff]  }
 0x112   :  { %v6788_v45 = vpop.f32.mrf.mxu1  ;;  %7156 = vmatprep.subr.bf16.mxu1 %v7958_v4  ;;  %v7994_v4 = vld [vmem:[%s10467_s0 + $0x88] ss:$216 sps:$4 sm:$0xff]  }
 0x113   :  { %v4293_v44 = vadd.f32 %v6761_v39, %v9122_v57  ;;  %v6789_v47 = vadd.f32 %v6788_v45, %v6787_v40  ;;  %v7947_v57 = vld [vmem:[%s10467_s0 + $0x74] ss:$216 sps:$4 sm:$0xff]   ;;  %v7976_v40 = vld [vmem:[%s10466_s1 + $0x8d8] sm:$0xff]  }
 0x114   :  { %4867 = vmatprep.mubr.bf16.mxu0 %v7947_v57  ;;  %v7982_v57 = vld [vmem:[%s10466_s1 + $0x848] sm:$0xff]  }
 0x115   :  { %v9206_v50 = vadd.f32 %v6789_v47, %v4293_v44  ;;  %4868 = vmatmul.mubr.bf16.vlgmr.msra.gmra.mxu0 %v7945_v56  ;;  %7157 = vmatpush3.bf16.msra.mxu1 %v7961_v8  ;;  %v7977_v44 = vld [vmem:[%s10466_s1 + $0x898] sm:$0xff]   ;;  %v7978_v47 = vld [vmem:[%s10466_s1 + $0x850] sm:$0xff]  }
 0x116   :  { %7127 = vmatpush3.bf16.msra.mxu0 %v7953_v62  ;;  %4875 = vmatprep.mubr.bf16.mxu0 %v7959_v6  ;;  %v7987_v62 = vld [vmem:[%s10466_s1 + $0x800] sm:$0xff]   ;;  %v7997_v6 = vld [vmem:[%s10466_s1 + $0x938] sm:$0xff]  }
 0x117   :  { %7128 = vmatprep.subr.bf16.mxu0 %v7956_v1  ;;  %v7991_v1 = vld [vmem:[%s10467_s0 + $0x84] ss:$216 sps:$4 sm:$0xff]  }
 0x118   :  { %4925 = vmatmul.mubr.bf16.gmra.mxu1 %v7967_v19  ;;  %v7999_v8 = vld [vmem:[%s10466_s1 + $0x9b8] sm:$0xff]  }
 0x11a   :  { %7129 = vmatpush3.bf16.msra.mxu0 %v7957_v3  ;;  %v7993_v3 = vld [vmem:[%s10466_s1 + $0x978] sm:$0xff]  }
 0x11b   :  { %7130 = vmatprep.subr.bf16.mxu0 %v7963_v12  ;;  %v8002_v12 = vld [vmem:[%s10466_s1 + $0x9f0] sm:$0xff]  }
 0x11d   :  { %4876 = vmatmul.mubr.bf16.gmra.mxu0 %v7962_v9  ;;  %v8000_v9 = vld [vmem:[%s10466_s1 + $0x970] sm:$0xff]  }
 0x11e   :  { %7131 = vmatpush3.bf16.msra.mxu0 %v7966_v18  ;;  %4965 = vmatprep.mubr.bf16.mxu0 %v7991_v1  ;;  %v8026_v1 = vld [vmem:[%s10466_s1 + $0x948] sm:$0xff]  }
 0x11f   :  { %7132 = vmatprep.subr.bf16.mxu0 %v7970_v27 }
 0x122   :  { %v6806_v2 = vpop.f32.mrf.mxu0  ;;  %7133 = vmatpush3.bf16.msra.mxu0 %v7971_v29  ;;  %v8011_v29 = vld [vmem:[%s10467_s0 + $0x238] ss:$216 sps:$4 sm:$0xff]  }
 0x123   :  { %7134 = vmatprep.subr.bf16.mxu0 %v7974_v35 }
 0x124   :  { %v6807_v5 = vpop.f32.mrf.mxu0  ;;  %v6834_v10 = vpop.f32.mrf.mxu1 }
 0x125   :  { %v6808_v7 = vadd.f32 %v6807_v5, %v6806_v2  ;;  %v7992_v2 = vld [vmem:[%s10466_s1 + $0x880] sm:$0xff]  }
 0x126   :  { %v6809_v11 = vpop.f32.mrf.mxu0  ;;  %v6835_v16 = vpop.f32.mrf.mxu1  ;;  %7135 = vmatpush3.bf16.msra.mxu0 %v7975_v38  ;;  %v7996_v5 = vld [vmem:[%s10467_s0 + $0x8c] ss:$216 sps:$4 sm:$0xff]  }
 0x127   :  { %v4380_v13 = vadd.f32 %v6808_v7, %v9154_v15  ;;  %v6836_v20 = vadd.f32 %v6835_v16, %v6834_v10  ;;  %v7968_v15 = vld [vmem:[%s10466_s1 + $0x8e8] sm:$0xff]   ;;  %7136 = vmatprep.subr.bf16.mxu0 %v7978_v47  ;;  %5014 = vmatprep.mubr.bf16.mxu1 %v7996_v5  ;;  %v7998_v7 = vld [vmem:[%s10466_s1 + $0x9f8] sm:$0xff]   ;;  %v8001_v10 = vld [vmem:[%s10466_s1 + $0x930] sm:$0xff]  }
 0x128   :  { %v6810_v17 = vpop.f32.mrf.mxu0  ;;  %v6837_v22 = vpop.f32.mrf.mxu1  ;;  %7158 = vmatprep.subr.bf16.mxu1 %v7968_v15  ;;  %v8005_v16 = vld [vmem:[%s10466_s1 + $0x9b0] sm:$0xff]   ;;  %v8030_v5 = vld [vmem:[%s10466_s1 + $0x940] sm:$0xff]  }
 0x129   :  { %v6811_v21 = vadd.f32 %v6810_v17, %v6809_v11  ;;  %v9287_v25 = vadd.f32 %v6836_v20, %v4380_v13  ;;  %7159 = vmatpush3.bf16.msra.mxu1 %v7969_v23  ;;  %v8003_v13 = vld [vmem:[%s10467_s0 + $0x234] ss:$216 sps:$4 sm:$0xff]   ;;  %v8006_v17 = vld [vmem:[%s10467_s0 + $0x230] ss:$216 sps:$4 sm:$0xff]  }
 0x12a   :  { %v6838_v28 = vpop.f32.mrf.mxu1  ;;  %v6812_v30 = vpop.f32.mrf.mxu0  ;;  %7160 = vmatprep.subr.bf16.mxu1 %v7972_v32  ;;  %v8007_v20 = vld [vmem:[%s10466_s1 + $0x968] sm:$0xff]   ;;  %v8008_v15 = vld [vmem:[%s10467_s0 + $0x23c] ss:$216 sps:$4 sm:$0xff]  }
 0x12b   :  { %v4383_v26 = vadd.f32 %v6811_v21, %v9168_v24  ;;  %v6839_v31 = vadd.f32 %v6838_v28, %v6837_v22  ;;  %v7973_v24 = vld [vmem:[%s10466_s1 + $0x8a0] sm:$0xff]  }
 0x12c   :  { %v6813_v34 = vpop.f32.mrf.mxu0  ;;  %v6840_v37 = vpop.f32.mrf.mxu1 }
 0x12d   :  { %v9302_v33 = vadd.f32 %v6839_v31, %v4383_v26  ;;  %v6814_v36 = vadd.f32 %v6813_v34, %v6812_v30  ;;  %7161 = vmatpush3.bf16.msra.mxu1 %v7973_v24  ;;  %v8010_v26 = vld [vmem:[%s10466_s1 + $0x928] sm:$0xff]  }
 0x12e   :  { %v6815_v39 = vpop.f32.mrf.mxu0  ;;  %v6841_v43 = vpop.f32.mrf.mxu1  ;;  %7162 = vmatprep.subr.bf16.mxu1 %v7976_v40  ;;  %v8013_v24 = vld [vmem:[%s10466_s1 + $0x9a8] sm:$0xff]   ;;  %v8016_v40 = vld [vmem:[%s10466_s1 + $0x9e0] sm:$0xff]  }
 0x12f   :  { %v4388_v41 = vadd.f32 %v6814_v36, %v9191_v42  ;;  %v6842_v45 = vadd.f32 %v6841_v43, %v6840_v37  ;;  %v7979_v42 = vld [vmem:[%s10466_s1 + $0x810] sm:$0xff]   ;;  %v8014_v36 = vld [vmem:[%s10466_s1 + $0x960] sm:$0xff]  }
 0x130   :  { %v6816_v46 = vpop.f32.mrf.mxu0  ;;  %v6843_v49 = vpop.f32.mrf.mxu1  ;;  %7137 = vmatpush3.bf16.msra.mxu0 %v7979_v42  ;;  %v8017_v43 = vld [vmem:[%s10466_s1 + $0x9a0] sm:$0xff]   ;;  %v8020_v42 = vld [vmem:[%s10466_s1 + $0x9d8] sm:$0xff]  }
 0x131   :  { %v6817_v48 = vadd.f32 %v6816_v46, %v6815_v39  ;;  %7163 = vmatpush3.bf16.msra.mxu1 %v7977_v44  ;;  %v9323_v51 = vadd.f32 %v6842_v45, %v4388_v41  ;;  %7138 = vmatprep.subr.bf16.mxu0 %v7982_v57  ;;  %v8015_v39 = vld [vmem:[%s10466_s1 + $0x920] sm:$0xff]   ;;  %v8018_v45 = vld [vmem:[%s10466_s1 + $0x958] sm:$0xff]   ;;  %v8022_v57 = vld [vmem:[%s10466_s1 + $0x950] sm:$0xff]  }
 0x132   :  { %v6844_v54 = vpop.f32.mrf.mxu1  ;;  %7164 = vmatprep.subr.bf16.mxu1 %v7980_v52 }
 0x133   :  { %v4391_v53 = vadd.f32 %v6817_v48, %v9206_v50  ;;  %v6845_v56 = vadd.f32 %v6844_v54, %v6843_v49  ;;  %v7984_v50 = vld [vmem:[%s10466_s1 + $0x8c8] sm:$0xff]   ;;  %v8019_v48 = vld [vmem:[%s10466_s1 + $0x918] sm:$0xff]  }
 0x134   :  { %7139 = vmatpush3.bf16.msra.mxu0 %v7983_v58  ;;  %v8021_v54 = vld [vmem:[%s10466_s1 + $0x998] sm:$0xff]   ;;  %v8023_v58 = vld [vmem:[%s10466_s1 + $0x910] sm:$0xff]  }
 0x135   :  { %7165 = vmatpush3.bf16.msra.mxu1 %v7981_v55  ;;  %v9338_v59 = vadd.f32 %v6845_v56, %v4391_v53  ;;  %7140 = vmatprep.subr.bf16.mxu0 %v7986_v61  ;;  %v8024_v61 = vld [vmem:[%s10466_s1 + $0x9d0] sm:$0xff]  }
 0x136   :  { %7166 = vmatprep.subr.bf16.mxu1 %v7984_v50 }
 0x138   :  { %7141 = vmatpush3.bf16.msra.mxu0 %v7987_v62 }
 0x139   :  { %7167 = vmatpush3.bf16.msra.mxu1 %v7985_v60  ;;  %7182 = vmatprep.subr.bf16.mxu0 %v7993_v3  ;;  %v8028_v3 = vld [vmem:[%s10466_s1 + $0x9c8] sm:$0xff]  }
 0x13a   :  { %7168 = vmatprep.subr.bf16.mxu1 %v7988_v63  ;;  %v8025_v63 = vld [vmem:[%s10466_s1 + $0x990] sm:$0xff]  }
 0x13b   :  { %4966 = vmatmul.mubr.bf16.vlgmr.msra.gmra.mxu0 %v7989_v0 }
 0x13c   :  { %7183 = vmatpush3.bf16.msra.mxu0 %v7997_v6  ;;  %4973 = vmatprep.mubr.bf16.mxu0 %v8003_v13  ;;  %v8031_v6 = vld [vmem:[%s10466_s1 + $0x900] sm:$0xff]   ;;  %v8040_v13 = vld [vmem:[%s10467_s0 + $0x9c] ss:$216 sps:$4 sm:$0xff]  }
 0x13d   :  { %7169 = vmatpush3.bf16.msra.mxu1 %v7992_v2  ;;  %7184 = vmatprep.subr.bf16.mxu0 %v8000_v9  ;;  %v8035_v9 = vld [vmem:[%s10467_s0 + $0x94] ss:$216 sps:$4 sm:$0xff]  }
 0x13e   :  { %7210 = vmatprep.subr.bf16.mxu1 %v7998_v7  ;;  %v8032_v7 = vld [vmem:[%s10466_s1 + $0x9c0] sm:$0xff]  }
 0x140   :  { %5015 = vmatmul.mubr.bf16.vlgmr.msra.gmra.mxu1 %v7994_v4  ;;  %7185 = vmatpush3.bf16.msra.mxu0 %v8001_v10  ;;  %v8029_v4 = vld [vmem:[%s10466_s1 + $0x988] sm:$0xff]   ;;  %v8036_v10 = vld [vmem:[%s10466_s1 + $0x980] sm:$0xff]  }
 0x141   :  { %7211 = vmatpush3.bf16.msra.mxu1 %v7999_v8  ;;  %7186 = vmatprep.subr.bf16.mxu0 %v8007_v20  ;;  %v8033_v8 = vld [vmem:[%s10467_s0 + $0x90] ss:$216 sps:$4 sm:$0xff]  }
 0x142   :  { %v6862_v11 = vpop.f32.mrf.mxu0  ;;  %7212 = vmatprep.subr.bf16.mxu1 %v8002_v12  ;;  %5022 = vmatprep.mubr.bf16.mxu1 %v8008_v15  ;;  %v8038_v12 = vld [vmem:[%s10467_s0 + $0x98] ss:$216 sps:$4 sm:$0xff]   ;;  %v8047_v15 = vld [vmem:[%s10467_s0 + $0x244] ss:$216 sps:$4 sm:$0xff]  }
 0x143   :  { %4974 = vmatmul.mubr.bf16.gmra.mxu0 %v8006_v17  ;;  %v8043_v17 = vld [vmem:[%s10466_s1 + $0xab8] sm:$0xff]  }
 0x144   :  { %v6863_v14 = vpop.f32.mrf.mxu0  ;;  %v6890_v19 = vpop.f32.mrf.mxu1  ;;  %7187 = vmatpush3.bf16.msra.mxu0 %v8010_v26  ;;  %5063 = vmatprep.mubr.bf16.mxu0 %v8035_v9  ;;  %v8070_v9 = vld [vmem:[%s10466_s1 + $0xa48] sm:$0xff]  }
 0x145   :  { %v6864_v18 = vadd.f32 %v6863_v14, %v6862_v11  ;;  %7213 = vmatpush3.bf16.msra.mxu1 %v8005_v16  ;;  %7188 = vmatprep.subr.bf16.mxu0 %v8014_v36  ;;  %v8037_v11 = vld [vmem:[%s10466_s1 + $0xa78] sm:$0xff]   ;;  %v8054_v36 = vld [vmem:[%s10466_s1 + $0xa28] sm:$0xff]  }
 0x146   :  { %v6865_v21 = vpop.f32.mrf.mxu0  ;;  %v6891_v23 = vpop.f32.mrf.mxu1  ;;  %v8041_v14 = vld [vmem:[%s10466_s1 + $0xa38] sm:$0xff]  }
 0x147   :  { %v4478_v22 = vadd.f32 %v6864_v18, %v9287_v25  ;;  %v6892_v27 = vadd.f32 %v6891_v23, %v6890_v19  ;;  %v8012_v25 = vld [vmem:[%s10466_s1 + $0x9e8] sm:$0xff]   ;;  %v8042_v16 = vld [vmem:[%s10466_s1 + $0xaf8] sm:$0xff]   ;;  %v8044_v18 = vld [vmem:[%s10466_s1 + $0xa70] sm:$0xff]  }
 0x148   :  { %v6866_v28 = vpop.f32.mrf.mxu0  ;;  %v6893_v31 = vpop.f32.mrf.mxu1  ;;  %5023 = vmatmul.mubr.bf16.gmra.mxu1 %v8011_v29  ;;  %7214 = vmatprep.subr.bf16.mxu1 %v8012_v25  ;;  %v8045_v19 = vld [vmem:[%s10466_s1 + $0xa30] sm:$0xff]  }
 0x149   :  { %v6867_v30 = vadd.f32 %v6866_v28, %v6865_v21  ;;  %v9416_v32 = vadd.f32 %v6892_v27, %v4478_v22  ;;  %7215 = vmatpush3.bf16.msra.mxu1 %v8013_v24  ;;  %7189 = vmatpush3.bf16.msra.mxu0 %v8015_v39  ;;  %v8046_v21 = vld [vmem:[%s10466_s1 + $0xaf0] sm:$0xff]   ;;  %v8050_v28 = vld [vmem:[%s10467_s0 + $0x240] ss:$216 sps:$4 sm:$0xff]   ;;  %v8052_v24 = vld [vmem:[%s10467_s0 + $0x24c] ss:$216 sps:$4 sm:$0xff]  }
 0x14a   :  { %v6894_v35 = vpop.f32.mrf.mxu1  ;;  %v6868_v37 = vpop.f32.mrf.mxu0  ;;  %7216 = vmatprep.subr.bf16.mxu1 %v8016_v40  ;;  %7190 = vmatprep.subr.bf16.mxu0 %v8018_v45  ;;  %v8049_v23 = vld [vmem:[%s10466_s1 + $0xab0] sm:$0xff]   ;;  %v8058_v45 = vld [vmem:[%s10466_s1 + $0xa60] sm:$0xff]  }
 0x14b   :  { %v4481_v34 = vadd.f32 %v6867_v30, %v9302_v33  ;;  %v6895_v38 = vadd.f32 %v6894_v35, %v6893_v31  ;;  %5112 = vmatprep.mubr.bf16.mxu1 %v8040_v13  ;;  %v8051_v30 = vld [vmem:[%s10466_s1 + $0xa68] sm:$0xff]   ;;  %v8074_v13 = vld [vmem:[%s10466_s1 + $0xa40] sm:$0xff]  }
 0x14c   :  { %v6869_v33 = vpop.f32.mrf.mxu0  ;;  %v6896_v46 = vpop.f32.mrf.mxu1 }
 0x14d   :  { %v9431_v41 = vadd.f32 %v6895_v38, %v4481_v34  ;;  %v6870_v44 = vadd.f32 %v6869_v33, %v6868_v37  ;;  %7217 = vmatpush3.bf16.msra.mxu1 %v8017_v43  ;;  %7191 = vmatpush3.bf16.msra.mxu0 %v8019_v48  ;;  %v8055_v37 = vld [vmem:[%s10467_s0 + $0x248] ss:$216 sps:$4 sm:$0xff]  }
 0x14e   :  { %v6871_v47 = vpop.f32.mrf.mxu0  ;;  %v6897_v52 = vpop.f32.mrf.mxu1  ;;  %7218 = vmatprep.subr.bf16.mxu1 %v8020_v42  ;;  %7192 = vmatprep.subr.bf16.mxu0 %v8022_v57  ;;  %v8057_v33 = vld [vmem:[%s10466_s1 + $0xaa8] sm:$0xff]  }
 0x14f   :  { %v4486_v49 = vadd.f32 %v6870_v44, %v9323_v51  ;;  %v6898_v55 = vadd.f32 %v6897_v52, %v6896_v46 }
 0x150   :  { %v6872_v53 = vpop.f32.mrf.mxu0  ;;  %v6899_v51 = vpop.f32.mrf.mxu1 }
 0x151   :  { %v6873_v56 = vadd.f32 %v6872_v53, %v6871_v47  ;;  %7219 = vmatpush3.bf16.msra.mxu1 %v8021_v54  ;;  %v9455_v50 = vadd.f32 %v6898_v55, %v4486_v49  ;;  %7193 = vmatpush3.bf16.msra.mxu0 %v8023_v58  ;;  %v8059_v47 = vld [vmem:[%s10466_s1 + $0xa20] sm:$0xff]   ;;  %v8062_v53 = vld [vmem:[%s10466_s1 + $0xa58] sm:$0xff]  }
 0x152   :  { %v6900_v62 = vpop.f32.mrf.mxu1  ;;  %7220 = vmatprep.subr.bf16.mxu1 %v8024_v61  ;;  %7194 = vmatprep.subr.bf16.mxu0 %v8026_v1  ;;  %v8060_v49 = vld [vmem:[%s10466_s1 + $0xae0] sm:$0xff]   ;;  %v8065_v61 = vld [vmem:[%s10466_s1 + $0xa98] sm:$0xff]  }
 0x153   :  { %v4489_v60 = vadd.f32 %v6873_v56, %v9338_v59  ;;  %v6901_v0 = vadd.f32 %v6900_v62, %v6899_v51  ;;  %v8027_v59 = vld [vmem:[%s10466_s1 + $0x908] sm:$0xff]   ;;  %v8063_v56 = vld [vmem:[%s10466_s1 + $0xa18] sm:$0xff]  }
 0x154   :  { %v8064_v51 = vld [vmem:[%s10466_s1 + $0xad8] sm:$0xff]  }
 0x155   :  { %7221 = vmatpush3.bf16.msra.mxu1 %v8025_v63  ;;  %v9470_v2 = vadd.f32 %v6901_v0, %v4489_v60  ;;  %7195 = vmatpush3.bf16.msra.mxu0 %v8027_v59  ;;  %v8066_v0 = vld [vmem:[%s10466_s1 + $0xa50] sm:$0xff]  }
 0x156   :  { %7222 = vmatprep.subr.bf16.mxu1 %v8028_v3  ;;  %7196 = vmatprep.subr.bf16.mxu0 %v8030_v5 }
 0x159   :  { %7223 = vmatpush3.bf16.msra.mxu1 %v8029_v4  ;;  %7197 = vmatpush3.bf16.msra.mxu0 %v8031_v6  ;;  %v8068_v4 = vld [vmem:[%s10466_s1 + $0xad0] sm:$0xff]  }
 0x15a   :  { %7224 = vmatprep.subr.bf16.mxu1 %v8032_v7  ;;  %7238 = vmatprep.subr.bf16.mxu0 %v8037_v11  ;;  %v8069_v7 = vld [vmem:[%s10466_s1 + $0xa90] sm:$0xff]  }
 0x15c   :  { %5064 = vmatmul.mubr.bf16.vlgmr.msra.gmra.mxu0 %v8033_v8 }
 0x15d   :  { %7225 = vmatpush3.bf16.msra.mxu1 %v8036_v10  ;;  %7239 = vmatpush3.bf16.msra.mxu0 %v8041_v14  ;;  %v8071_v10 = vld [vmem:[%s10466_s1 + $0xa08] sm:$0xff]   ;;  %v8075_v14 = vld [vmem:[%s10466_s1 + $0xa00] sm:$0xff]  }
 0x15e   :  { %7266 = vmatprep.subr.bf16.mxu1 %v8042_v16  ;;  %7240 = vmatprep.subr.bf16.mxu0 %v8044_v18  ;;  %v8076_v16 = vld [vmem:[%s10466_s1 + $0xac0] sm:$0xff]  }
 0x15f   :  { %5071 = vmatprep.mubr.bf16.mxu0 %v8047_v15  ;;  %v8079_v18 = vld [vmem:[%s10467_s0 + $0xa4] ss:$216 sps:$4 sm:$0xff]  }
 0x160   :  { %5113 = vmatmul.mubr.bf16.vlgmr.msra.gmra.mxu1 %v8038_v12  ;;  %v8073_v12 = vld [vmem:[%s10466_s1 + $0xa88] sm:$0xff]  }
 0x161   :  { %7267 = vmatpush3.bf16.msra.mxu1 %v8043_v17  ;;  %7241 = vmatpush3.bf16.msra.mxu0 %v8045_v19  ;;  %v8077_v17 = vld [vmem:[%s10467_s0 + $0xa0] ss:$216 sps:$4 sm:$0xff]   ;;  %v8084_v15 = vld [vmem:[%s10467_s0 + $0xac] ss:$216 sps:$4 sm:$0xff]  }
 0x162   :  { %v6918_v20 = vpop.f32.mrf.mxu0  ;;  %7268 = vmatprep.subr.bf16.mxu1 %v8046_v21  ;;  %7242 = vmatprep.subr.bf16.mxu0 %v8051_v30  ;;  %v8080_v19 = vld [vmem:[%s10466_s1 + $0xa80] sm:$0xff]   ;;  %v8090_v30 = vld [vmem:[%s10466_s1 + $0xbf0] sm:$0xff]  }
 0x163   :  { %5120 = vmatprep.mubr.bf16.mxu1 %v8052_v24  ;;  %v8082_v21 = vld [vmem:[%s10467_s0 + $0xa8] ss:$216 sps:$4 sm:$0xff]  }
 0x164   :  { %v6919_v22 = vpop.f32.mrf.mxu0  ;;  %v6946_v27 = vpop.f32.mrf.mxu1  ;;  %5072 = vmatmul.mubr.bf16.gmra.mxu0 %v8050_v28 }
 0x165   :  { %v6920_v26 = vadd.f32 %v6919_v22, %v6918_v20  ;;  %7269 = vmatpush3.bf16.msra.mxu1 %v8049_v23  ;;  %7243 = vmatpush3.bf16.msra.mxu0 %v8054_v36  ;;  %v8081_v20 = vld [vmem:[%s10466_s1 + $0xb78] sm:$0xff]  }
 0x166   :  { %v6921_v29 = vpop.f32.mrf.mxu0  ;;  %v6947_v25 = vpop.f32.mrf.mxu1  ;;  %7244 = vmatprep.subr.bf16.mxu0 %v8058_v45  ;;  %5161 = vmatprep.mubr.bf16.mxu0 %v8079_v18  ;;  %v8085_v22 = vld [vmem:[%s10466_s1 + $0xb38] sm:$0xff]   ;;  %v8114_v18 = vld [vmem:[%s10466_s1 + $0xb48] sm:$0xff]  }
 0x167   :  { %v4576_v31 = vadd.f32 %v6920_v26, %v9416_v32  ;;  %v6948_v34 = vadd.f32 %v6947_v25, %v6946_v27  ;;  %v8056_v32 = vld [vmem:[%s10466_s1 + $0xae8] sm:$0xff]   ;;  %v8086_v23 = vld [vmem:[%s10466_s1 + $0xbf8] sm:$0xff]   ;;  %v8088_v27 = vld [vmem:[%s10466_s1 + $0xb70] sm:$0xff]  }
 0x168   :  { %v6922_v35 = vpop.f32.mrf.mxu0  ;;  %v6949_v39 = vpop.f32.mrf.mxu1  ;;  %5121 = vmatmul.mubr.bf16.gmra.mxu1 %v8055_v37  ;;  %7270 = vmatprep.subr.bf16.mxu1 %v8056_v32  ;;  %v8087_v26 = vld [vmem:[%s10466_s1 + $0xbb8] sm:$0xff]   ;;  %v8091_v25 = vld [vmem:[%s10467_s0 + $0x254] ss:$216 sps:$4 sm:$0xff]  }
 0x169   :  { %v6923_v38 = vadd.f32 %v6922_v35, %v6921_v29  ;;  %v9548_v40 = vadd.f32 %v6948_v34, %v4576_v31  ;;  %7271 = vmatpush3.bf16.msra.mxu1 %v8057_v33  ;;  %7245 = vmatpush3.bf16.msra.mxu0 %v8059_v47  ;;  %v8089_v29 = vld [vmem:[%s10466_s1 + $0xb30] sm:$0xff]  }
 0x16a   :  { %v6950_v44 = vpop.f32.mrf.mxu1  ;;  %v6924_v48 = vpop.f32.mrf.mxu0  ;;  %7272 = vmatprep.subr.bf16.mxu1 %v8060_v49  ;;  %7246 = vmatprep.subr.bf16.mxu0 %v8062_v53  ;;  %v8093_v34 = vld [vmem:[%s10466_s1 + $0xbb0] sm:$0xff]   ;;  %v8101_v49 = vld [vmem:[%s10466_s1 + $0xba8] sm:$0xff]   ;;  %v8102_v53 = vld [vmem:[%s10466_s1 + $0xb60] sm:$0xff]  }
 0x16b   :  { %v4579_v43 = vadd.f32 %v6923_v38, %v9431_v41  ;;  %v6951_v46 = vadd.f32 %v6950_v44, %v6949_v39  ;;  %v8061_v41 = vld [vmem:[%s10466_s1 + $0xaa0] sm:$0xff]   ;;  %5210 = vmatprep.mubr.bf16.mxu1 %v8084_v15  ;;  %v8094_v35 = vld [vmem:[%s10467_s0 + $0x250] ss:$216 sps:$4 sm:$0xff]   ;;  %v8096_v32 = vld [vmem:[%s10467_s0 + $0x25c] ss:$216 sps:$4 sm:$0xff]  }
 0x16c   :  { %v6925_v52 = vpop.f32.mrf.mxu0  ;;  %v6952_v55 = vpop.f32.mrf.mxu1  ;;  %v8095_v38 = vld [vmem:[%s10466_s1 + $0xb68] sm:$0xff]   ;;  %v8099_v45 = vld [vmem:[%s10467_s0 + $0x258] ss:$216 sps:$4 sm:$0xff]   ;;  %v8118_v15 = vld [vmem:[%s10466_s1 + $0xb40] sm:$0xff]  }
 0x16d   :  { %v9563_v42 = vadd.f32 %v6951_v46, %v4579_v43  ;;  %v6926_v54 = vadd.f32 %v6925_v52, %v6924_v48  ;;  %7273 = vmatpush3.bf16.msra.mxu1 %v8061_v41  ;;  %7247 = vmatpush3.bf16.msra.mxu0 %v8063_v56  ;;  %v8098_v44 = vld [vmem:[%s10466_s1 + $0xb28] sm:$0xff]  }
 0x16e   :  { %v6927_v57 = vpop.f32.mrf.mxu0  ;;  %v6953_v60 = vpop.f32.mrf.mxu1  ;;  %7274 = vmatprep.subr.bf16.mxu1 %v8064_v51  ;;  %7248 = vmatprep.subr.bf16.mxu0 %v8066_v0  ;;  %v8104_v51 = vld [vmem:[%s10466_s1 + $0xbe0] sm:$0xff]   ;;  %v8107_v0 = vld [vmem:[%s10466_s1 + $0xb18] sm:$0xff]  }
 0x16f   :  { %v4584_v58 = vadd.f32 %v6926_v54, %v9455_v50  ;;  %v6954_v62 = vadd.f32 %v6953_v60, %v6952_v55  ;;  %v8067_v50 = vld [vmem:[%s10466_s1 + $0xa10] sm:$0xff]   ;;  %v8103_v55 = vld [vmem:[%s10466_s1 + $0xb20] sm:$0xff]  }
 0x170   :  { %v6928_v63 = vpop.f32.mrf.mxu0  ;;  %v6955_v59 = vpop.f32.mrf.mxu1 }
 0x171   :  { %v6929_v1 = vadd.f32 %v6928_v63, %v6927_v57  ;;  %7275 = vmatpush3.bf16.msra.mxu1 %v8065_v61  ;;  %v9587_v3 = vadd.f32 %v6954_v62, %v4584_v58  ;;  %7249 = vmatpush3.bf16.msra.mxu0 %v8067_v50  ;;  %v8106_v61 = vld [vmem:[%s10466_s1 + $0xb58] sm:$0xff]  }
 0x172   :  { %v6956_v6 = vpop.f32.mrf.mxu1  ;;  %7276 = vmatprep.subr.bf16.mxu1 %v8068_v4  ;;  %7250 = vmatprep.subr.bf16.mxu0 %v8070_v9 }
 0x173   :  { %v4587_v5 = vadd.f32 %v6929_v1, %v9470_v2  ;;  %v6957_v8 = vadd.f32 %v6956_v6, %v6955_v59  ;;  %v8072_v2 = vld [vmem:[%s10466_s1 + $0xac8] sm:$0xff]   ;;  %v8108_v59 = vld [vmem:[%s10466_s1 + $0xbd8] sm:$0xff]  }
 0x175   :  { %7277 = vmatpush3.bf16.msra.mxu1 %v8069_v7  ;;  %v9602_v11 = vadd.f32 %v6957_v8, %v4587_v5  ;;  %7251 = vmatpush3.bf16.msra.mxu0 %v8071_v10  ;;  %v8109_v5 = vld [vmem:[%s10466_s1 + $0xb98] sm:$0xff]   ;;  %v8110_v8 = vld [vmem:[%s10466_s1 + $0xb50] sm:$0xff]  }
 0x176   :  { %7278 = vmatprep.subr.bf16.mxu1 %v8072_v2  ;;  %7252 = vmatprep.subr.bf16.mxu0 %v8074_v13 }
 0x179   :  { %7279 = vmatpush3.bf16.msra.mxu1 %v8073_v12  ;;  %7253 = vmatpush3.bf16.msra.mxu0 %v8075_v14  ;;  %v8112_v12 = vld [vmem:[%s10466_s1 + $0xbd0] sm:$0xff]  }
 0x17a   :  { %7280 = vmatprep.subr.bf16.mxu1 %v8076_v16  ;;  %7294 = vmatprep.subr.bf16.mxu0 %v8081_v20  ;;  %v8113_v16 = vld [vmem:[%s10466_s1 + $0xb90] sm:$0xff]  }
 0x17c   :  { %5162 = vmatmul.mubr.bf16.vlgmr.msra.gmra.mxu0 %v8077_v17 }
 0x17d   :  { %7281 = vmatpush3.bf16.msra.mxu1 %v8080_v19  ;;  %7295 = vmatpush3.bf16.msra.mxu0 %v8085_v22  ;;  %v8115_v19 = vld [vmem:[%s10466_s1 + $0xb08] sm:$0xff]   ;;  %v8119_v22 = vld [vmem:[%s10466_s1 + $0xb00] sm:$0xff]  }
 0x17e   :  { %7322 = vmatprep.subr.bf16.mxu1 %v8086_v23  ;;  %7296 = vmatprep.subr.bf16.mxu0 %v8088_v27  ;;  %v8120_v23 = vld [vmem:[%s10466_s1 + $0xbc0] sm:$0xff]   ;;  %v8123_v27 = vld [vmem:[%s10467_s0 + $0xb4] ss:$216 sps:$4 sm:$0xff]  }
 0x17f   :  { %5169 = vmatprep.mubr.bf16.mxu0 %v8091_v25  ;;  %v8129_v25 = vld [vmem:[%s10466_s1 + $0xc38] sm:$0xff]  }
 0x180   :  { %5211 = vmatmul.mubr.bf16.vlgmr.msra.gmra.mxu1 %v8082_v21  ;;  %v8117_v21 = vld [vmem:[%s10466_s1 + $0xb88] sm:$0xff]  }
 0x181   :  { %7323 = vmatpush3.bf16.msra.mxu1 %v8087_v26  ;;  %7297 = vmatpush3.bf16.msra.mxu0 %v8089_v29  ;;  %v8121_v26 = vld [vmem:[%s10467_s0 + $0xb0] ss:$216 sps:$4 sm:$0xff]   ;;  %v8125_v29 = vld [vmem:[%s10466_s1 + $0xc78] sm:$0xff]  }
 0x182   :  { %v6974_v28 = vpop.f32.mrf.mxu0  ;;  %7324 = vmatprep.subr.bf16.mxu1 %v8090_v30  ;;  %7298 = vmatprep.subr.bf16.mxu0 %v8095_v38  ;;  %v8126_v30 = vld [vmem:[%s10467_s0 + $0xb8] ss:$216 sps:$4 sm:$0xff]  }
 0x183   :  { %5218 = vmatprep.mubr.bf16.mxu1 %v8096_v32  ;;  %v8134_v38 = vld [vmem:[%s10466_s1 + $0xcf0] sm:$0xff]  }
 0x184   :  { %v6975_v31 = vpop.f32.mrf.mxu0  ;;  %v7002_v36 = vpop.f32.mrf.mxu1  ;;  %5170 = vmatmul.mubr.bf16.gmra.mxu0 %v8094_v35  ;;  %v8132_v35 = vld [vmem:[%s10466_s1 + $0xc70] sm:$0xff]  }
 0x185   :  { %v6976_v24 = vadd.f32 %v6975_v31, %v6974_v28  ;;  %7325 = vmatpush3.bf16.msra.mxu1 %v8093_v34  ;;  %7299 = vmatpush3.bf16.msra.mxu0 %v8098_v44  ;;  %v8124_v28 = vld [vmem:[%s10466_s1 + $0xb80] sm:$0xff]   ;;  %v8128_v31 = vld [vmem:[%s10467_s0 + $0xbc] ss:$216 sps:$4 sm:$0xff]  }
 0x186   :  { %v6977_v37 = vpop.f32.mrf.mxu0  ;;  %v7003_v33 = vpop.f32.mrf.mxu1  ;;  %7300 = vmatprep.subr.bf16.mxu0 %v8102_v53  ;;  %5259 = vmatprep.mubr.bf16.mxu0 %v8123_v27  ;;  %v8131_v34 = vld [vmem:[%s10466_s1 + $0xcb8] sm:$0xff]   ;;  %v8158_v27 = vld [vmem:[%s10466_s1 + $0xc48] sm:$0xff]  }
 0x187   :  { %v4674_v39 = vadd.f32 %v6976_v24, %v9548_v40  ;;  %v7004_v46 = vadd.f32 %v7003_v33, %v7002_v36  ;;  %v8100_v40 = vld [vmem:[%s10466_s1 + $0xbe8] sm:$0xff]   ;;  %v8130_v24 = vld [vmem:[%s10466_s1 + $0xcf8] sm:$0xff]   ;;  %v8133_v36 = vld [vmem:[%s10466_s1 + $0xc30] sm:$0xff]  }
 0x188   :  { %v6978_v43 = vpop.f32.mrf.mxu0  ;;  %v7005_v48 = vpop.f32.mrf.mxu1  ;;  %5219 = vmatmul.mubr.bf16.gmra.mxu1 %v8099_v45  ;;  %7326 = vmatprep.subr.bf16.mxu1 %v8100_v40  ;;  %v8137_v33 = vld [vmem:[%s10466_s1 + $0xcb0] sm:$0xff]   ;;  %v8140_v40 = vld [vmem:[%s10467_s0 + $0x26c] ss:$216 sps:$4 sm:$0xff]  }
 0x189   :  { %v6979_v47 = vadd.f32 %v6978_v43, %v6977_v37  ;;  %v9683_v41 = vadd.f32 %v7004_v46, %v4674_v39  ;;  %7327 = vmatpush3.bf16.msra.mxu1 %v8101_v49  ;;  %7301 = vmatpush3.bf16.msra.mxu0 %v8103_v55  ;;  %v8135_v39 = vld [vmem:[%s10467_s0 + $0x264] ss:$216 sps:$4 sm:$0xff]   ;;  %v8138_v43 = vld [vmem:[%s10467_s0 + $0x260] ss:$216 sps:$4 sm:$0xff]   ;;  %v8139_v46 = vld [vmem:[%s10466_s1 + $0xc68] sm:$0xff]  }
 0x18a   :  { %v7006_v54 = vpop.f32.mrf.mxu1  ;;  %v6980_v56 = vpop.f32.mrf.mxu0  ;;  %7328 = vmatprep.subr.bf16.mxu1 %v8104_v51  ;;  %7302 = vmatprep.subr.bf16.mxu0 %v8106_v61  ;;  %v8143_v55 = vld [vmem:[%s10467_s0 + $0x268] ss:$216 sps:$4 sm:$0xff]  }
 0x18b   :  { %v4677_v52 = vadd.f32 %v6979_v47, %v9563_v42  ;;  %v7007_v57 = vadd.f32 %v7006_v54, %v7005_v48  ;;  %v8105_v42 = vld [vmem:[%s10466_s1 + $0xba0] sm:$0xff]   ;;  %5308 = vmatprep.mubr.bf16.mxu1 %v8128_v31 }
 0x18c   :  { %v6981_v60 = vpop.f32.mrf.mxu0  ;;  %v7008_v63 = vpop.f32.mrf.mxu1  ;;  %v8162_v31 = vld [vmem:[%s10466_s1 + $0xc40] sm:$0xff]  }
 0x18d   :  { %v9698_v58 = vadd.f32 %v7007_v57, %v4677_v52  ;;  %v6982_v62 = vadd.f32 %v6981_v60, %v6980_v56  ;;  %7329 = vmatpush3.bf16.msra.mxu1 %v8105_v42  ;;  %7303 = vmatpush3.bf16.msra.mxu0 %v8107_v0  ;;  %v8142_v52 = vld [vmem:[%s10466_s1 + $0xc28] sm:$0xff]   ;;  %v8147_v0 = vld [vmem:[%s10466_s1 + $0xc20] sm:$0xff]  }
 0x18e   :  { %v6983_v1 = vpop.f32.mrf.mxu0  ;;  %v7009_v4 = vpop.f32.mrf.mxu1  ;;  %7330 = vmatprep.subr.bf16.mxu1 %v8108_v59  ;;  %7304 = vmatprep.subr.bf16.mxu0 %v8110_v8  ;;  %v8145_v42 = vld [vmem:[%s10466_s1 + $0xca8] sm:$0xff]   ;;  %v8148_v59 = vld [vmem:[%s10466_s1 + $0xce0] sm:$0xff]   ;;  %v8151_v8 = vld [vmem:[%s10466_s1 + $0xc18] sm:$0xff]  }
 0x18f   :  { %v4682_v50 = vadd.f32 %v6982_v62, %v9587_v3  ;;  %v7010_v6 = vadd.f32 %v7009_v4, %v7008_v63  ;;  %v8111_v3 = vld [vmem:[%s10466_s1 + $0xb10] sm:$0xff]   ;;  %v8146_v62 = vld [vmem:[%s10466_s1 + $0xc60] sm:$0xff]  }
 0x190   :  { %v6984_v7 = vpop.f32.mrf.mxu0  ;;  %v7011_v10 = vpop.f32.mrf.mxu1 }
 0x191   :  { %v6985_v9 = vadd.f32 %v6984_v7, %v6983_v1  ;;  %7331 = vmatpush3.bf16.msra.mxu1 %v8109_v5  ;;  %v9719_v2 = vadd.f32 %v7010_v6, %v4682_v50  ;;  %7305 = vmatpush3.bf16.msra.mxu0 %v8111_v3  ;;  %v8150_v5 = vld [vmem:[%s10466_s1 + $0xc58] sm:$0xff]  }
 0x192   :  { %v7012_v14 = vpop.f32.mrf.mxu1  ;;  %7332 = vmatprep.subr.bf16.mxu1 %v8112_v12  ;;  %7306 = vmatprep.subr.bf16.mxu0 %v8114_v18 }
 0x193   :  { %v4685_v13 = vadd.f32 %v6985_v9, %v9602_v11  ;;  %v7013_v17 = vadd.f32 %v7012_v14, %v7011_v10  ;;  %v8116_v11 = vld [vmem:[%s10466_s1 + $0xbc8] sm:$0xff]   ;;  %v8152_v10 = vld [vmem:[%s10466_s1 + $0xcd8] sm:$0xff]  }
 0x195   :  { %7333 = vmatpush3.bf16.msra.mxu1 %v8113_v16  ;;  %v9734_v20 = vadd.f32 %v7013_v17, %v4685_v13  ;;  %7307 = vmatpush3.bf16.msra.mxu0 %v8115_v19  ;;  %v8153_v13 = vld [vmem:[%s10466_s1 + $0xc98] sm:$0xff]   ;;  %v8154_v17 = vld [vmem:[%s10466_s1 + $0xc50] sm:$0xff]  }
 0x196   :  { %7334 = vmatprep.subr.bf16.mxu1 %v8116_v11  ;;  %7308 = vmatprep.subr.bf16.mxu0 %v8118_v15 }
 0x199   :  { %7335 = vmatpush3.bf16.msra.mxu1 %v8117_v21  ;;  %7309 = vmatpush3.bf16.msra.mxu0 %v8119_v22  ;;  %v8156_v21 = vld [vmem:[%s10466_s1 + $0xcd0] sm:$0xff]  }
 0x19a   :  { %7336 = vmatprep.subr.bf16.mxu1 %v8120_v23  ;;  %7350 = vmatprep.subr.bf16.mxu0 %v8125_v29  ;;  %v8157_v23 = vld [vmem:[%s10466_s1 + $0xc90] sm:$0xff]  }
 0x19c   :  { %5260 = vmatmul.mubr.bf16.vlgmr.msra.gmra.mxu0 %v8121_v26 }
 0x19d   :  { %7337 = vmatpush3.bf16.msra.mxu1 %v8124_v28  ;;  %7351 = vmatpush3.bf16.msra.mxu0 %v8129_v25  ;;  %v8159_v28 = vld [vmem:[%s10466_s1 + $0xc08] sm:$0xff]   ;;  %v8163_v25 = vld [vmem:[%s10466_s1 + $0xc00] sm:$0xff]  }
 0x19e   :  { %7378 = vmatprep.subr.bf16.mxu1 %v8130_v24  ;;  %7352 = vmatprep.subr.bf16.mxu0 %v8132_v35  ;;  %v8164_v24 = vld [vmem:[%s10466_s1 + $0xcc0] sm:$0xff]  }
 0x19f   :  { %5267 = vmatprep.mubr.bf16.mxu0 %v8135_v39  ;;  %v8167_v35 = vld [vmem:[%s10467_s0 + $0xc4] ss:$216 sps:$4 sm:$0xff]  }
 0x1a0   :  { %5309 = vmatmul.mubr.bf16.vlgmr.msra.gmra.mxu1 %v8126_v30  ;;  %v8161_v30 = vld [vmem:[%s10466_s1 + $0xc88] sm:$0xff]  }
 0x1a1   :  { %7379 = vmatpush3.bf16.msra.mxu1 %v8131_v34  ;;  %7353 = vmatpush3.bf16.msra.mxu0 %v8133_v36  ;;  %v8165_v34 = vld [vmem:[%s10467_s0 + $0xc0] ss:$216 sps:$4 sm:$0xff]   ;;  %v8172_v39 = vld [vmem:[%s10467_s0 + $0xcc] ss:$216 sps:$4 sm:$0xff]  }
 0x1a2   :  { %v7030_v37 = vpop.f32.mrf.mxu0  ;;  %7380 = vmatprep.subr.bf16.mxu1 %v8134_v38  ;;  %7354 = vmatprep.subr.bf16.mxu0 %v8139_v46  ;;  %v8168_v36 = vld [vmem:[%s10466_s1 + $0xc80] sm:$0xff]  }
 0x1a3   :  { %5316 = vmatprep.mubr.bf16.mxu1 %v8140_v40  ;;  %v8170_v38 = vld [vmem:[%s10467_s0 + $0xc8] ss:$216 sps:$4 sm:$0xff]   ;;  %v8180_v40 = vld [vmem:[%s10467_s0 + $0x27c] ss:$216 sps:$4 sm:$0xff]  }
 0x1a4   :  { %v7031_v32 = vpop.f32.mrf.mxu0  ;;  %v7058_v45 = vpop.f32.mrf.mxu1  ;;  %5268 = vmatmul.mubr.bf16.gmra.mxu0 %v8138_v43  ;;  %v8175_v43 = vld [vmem:[%s10466_s1 + $0xd30] sm:$0xff]  }
 0x1a5   :  { %v7032_v44 = vadd.f32 %v7031_v32, %v7030_v37  ;;  %7381 = vmatpush3.bf16.msra.mxu1 %v8137_v33  ;;  %7355 = vmatpush3.bf16.msra.mxu0 %v8142_v52  ;;  %v8169_v37 = vld [vmem:[%s10466_s1 + $0xd78] sm:$0xff]   ;;  %v8174_v33 = vld [vmem:[%s10466_s1 + $0xd70] sm:$0xff]  }
 0x1a6   :  { %v7033_v47 = vpop.f32.mrf.mxu0  ;;  %v7059_v49 = vpop.f32.mrf.mxu1  ;;  %7356 = vmatprep.subr.bf16.mxu0 %v8146_v62  ;;  %5357 = vmatprep.mubr.bf16.mxu0 %v8167_v35  ;;  %v8173_v32 = vld [vmem:[%s10466_s1 + $0xd38] sm:$0xff]   ;;  %v8188_v62 = vld [vmem:[%s10466_s1 + $0xd50] sm:$0xff]   ;;  %v5522_v35 = vld [vmem:[%s10469_s6 + $0x148] sm:$0xff] }
 0x1a7   :  { %v4772_v48 = vadd.f32 %v7032_v44, %v9683_v41  ;;  %v7060_v53 = vadd.f32 %v7059_v49, %v7058_v45  ;;  %v8144_v41 = vld [vmem:[%s10466_s1 + $0xce8] sm:$0xff]   ;;  %v8183_v52 = vld [vmem:[%s10467_s0 + $0x278] ss:$216 sps:$4 sm:$0xff]  }
 0x1a8   :  { %v7034_v54 = vpop.f32.mrf.mxu0  ;;  %v7061_v57 = vpop.f32.mrf.mxu1  ;;  %5317 = vmatmul.mubr.bf16.gmra.mxu1 %v8143_v55  ;;  %7382 = vmatprep.subr.bf16.mxu1 %v8144_v41  ;;  %v8176_v44 = vld [vmem:[%s10467_s0 + $0x274] ss:$216 sps:$4 sm:$0xff]   ;;  %v8178_v45 = vld [vmem:[%s10467_s0 + $0x270] ss:$216 sps:$4 sm:$0xff]  }
 0x1a9   :  { %v7035_v56 = vadd.f32 %v7034_v54, %v7033_v47  ;;  %v9812_v51 = vadd.f32 %v7060_v53, %v4772_v48  ;;  %7383 = vmatpush3.bf16.msra.mxu1 %v8145_v42  ;;  %7357 = vmatpush3.bf16.msra.mxu0 %v8147_v0  ;;  %v8179_v47 = vld [vmem:[%s10466_s1 + $0xd68] sm:$0xff]   ;;  %v8184_v54 = vld [vmem:[%s10466_s1 + $0xd60] sm:$0xff]   ;;  %v8186_v42 = vld [vmem:[%s10466_s1 + $0xd58] sm:$0xff]  }
 0x1aa   :  { %v7062_v61 = vpop.f32.mrf.mxu1  ;;  %v7036_v1 = vpop.f32.mrf.mxu0  ;;  %7384 = vmatprep.subr.bf16.mxu1 %v8148_v59  ;;  %7358 = vmatprep.subr.bf16.mxu0 %v8150_v5  ;;  %v8182_v49 = vld [vmem:[%s10466_s1 + $0xd28] sm:$0xff]  }
 0x1ab   :  { %v4775_v60 = vadd.f32 %v7035_v56, %v9698_v58  ;;  %v7063_v63 = vadd.f32 %v7062_v61, %v7061_v57  ;;  %v8149_v58 = vld [vmem:[%s10466_s1 + $0xca0] sm:$0xff]   ;;  %5406 = vmatprep.mubr.bf16.mxu1 %v8172_v39  ;;  %v8196_v59 = vld [vmem:[%s10467_s0 + $0xd4] ss:$216 sps:$4 sm:$0xff]   ;;  %v5512_v39 = vld [vmem:[%s10469_s6 + $0xf8] sm:$0xff] }
 0x1ac   :  { %v7037_v4 = vpop.f32.mrf.mxu0  ;;  %v7064_v7 = vpop.f32.mrf.mxu1  ;;  %v8185_v57 = vld [vmem:[%s10466_s1 + $0xd20] sm:$0xff]  }
 0x1ad   :  { %v9827_v50 = vadd.f32 %v7063_v63, %v4775_v60  ;;  %v7038_v6 = vadd.f32 %v7037_v4, %v7036_v1  ;;  %7385 = vmatpush3.bf16.msra.mxu1 %v8149_v58  ;;  %7359 = vmatpush3.bf16.msra.mxu0 %v8151_v8  ;;  %v8189_v1 = vld [vmem:[%s10466_s1 + $0xd10] sm:$0xff]   ;;  %v8190_v58 = vld [vmem:[%s10466_s1 + $0xd48] sm:$0xff]  }
 0x1ae   :  { %v7039_v9 = vpop.f32.mrf.mxu0  ;;  %v7065_v12 = vpop.f32.mrf.mxu1  ;;  %7386 = vmatprep.subr.bf16.mxu1 %v8152_v10  ;;  %7360 = vmatprep.subr.bf16.mxu0 %v8154_v17 }
 0x1af   :  { %v4780_v3 = vadd.f32 %v7038_v6, %v9719_v2  ;;  %v7066_v14 = vadd.f32 %v7065_v12, %v7064_v7  ;;  %v8155_v2 = vld [vmem:[%s10466_s1 + $0xc10] sm:$0xff]   ;;  %v8191_v7 = vld [vmem:[%s10466_s1 + $0xd08] sm:$0xff]  }
 0x1b0   :  { %v7040_v16 = vpop.f32.mrf.mxu0  ;;  %v7067_v19 = vpop.f32.mrf.mxu1  ;;  %v8194_v12 = vld [vmem:[%s10467_s0 + $0xd0] ss:$216 sps:$4 sm:$0xff]  }
 0x1b1   :  { %v7041_v18 = vadd.f32 %v7040_v16, %v7039_v9  ;;  %7387 = vmatpush3.bf16.msra.mxu1 %v8153_v13  ;;  %v9851_v11 = vadd.f32 %v7066_v14, %v4780_v3  ;;  %7361 = vmatpush3.bf16.msra.mxu0 %v8155_v2  ;;  %v8192_v9 = vld [vmem:[%s10466_s1 + $0xd40] sm:$0xff]  }
 0x1b2   :  { %v7068_v22 = vpop.f32.mrf.mxu1  ;;  %7388 = vmatprep.subr.bf16.mxu1 %v8156_v21  ;;  %7362 = vmatprep.subr.bf16.mxu0 %v8158_v27  ;;  %v8193_v3 = vld [vmem:[%s10466_s1 + $0xd00] sm:$0xff]   ;;  %v5526_v21 = vld [vmem:[%s10469_s6 + $0x168] sm:$0xff] }
 0x1b3   :  { %v4783_v15 = vadd.f32 %v7041_v18, %v9734_v20  ;;  %v7069_v26 = vadd.f32 %v7068_v22, %v7067_v19  ;;  %v8160_v20 = vld [vmem:[%s10466_s1 + $0xcc8] sm:$0xff]   ;;  %v8197_v13 = vld [vmem:[%s10467_s0 + $0x284] ss:$216 sps:$4 sm:$0xff]   ;;  %v8199_v14 = vld [vmem:[%s10467_s0 + $0x280] ss:$216 sps:$4 sm:$0xff]  }
 0x1b4   :  { %v5521_v27 = vld [vmem:[%s10469_s6 + $0x140] sm:$0xff] }
 0x1b5   :  { %7389 = vmatpush3.bf16.msra.mxu1 %v8157_v23  ;;  %v9866_v29 = vadd.f32 %v7069_v26, %v4783_v15  ;;  %7363 = vmatpush3.bf16.msra.mxu0 %v8159_v28  ;;  %v5524_v23 = vld [vmem:[%s10469_s6 + $0x158] sm:$0xff]  ;;  %v5523_v26 = vld [vmem:[%s10469_s6 + $0x150] sm:$0xff] }
 0x1b6   :  { %7390 = vmatprep.subr.bf16.mxu1 %v8160_v20  ;;  %7364 = vmatprep.subr.bf16.mxu0 %v8162_v31  ;;  %v5528_v28 = vld [vmem:[%s10469_s6 + $0x178] sm:$0xff]  ;;  %v5518_v31 = vld [vmem:[%s10469_s6 + $0x128] sm:$0xff] }
 0x1b9   :  { %7391 = vmatpush3.bf16.msra.mxu1 %v8161_v30  ;;  %7365 = vmatpush3.bf16.msra.mxu0 %v8163_v25  ;;  %v5525_v25 = vld [vmem:[%s10469_s6 + $0x160] sm:$0xff] }
 0x1ba   :  { %7392 = vmatprep.subr.bf16.mxu1 %v8164_v24  ;;  %7406 = vmatprep.subr.bf16.mxu0 %v8169_v37  ;;  %v5517_v24 = vld [vmem:[%s10469_s6 + $0x120] sm:$0xff] }
 0x1bc   :  { %5358 = vmatmul.mubr.bf16.vlgmr.msra.gmra.mxu0 %v8165_v34  ;;  %v5515_v34 = vld [vmem:[%s10469_s6 + $0x110] sm:$0xff] }
 0x1bd   :  { %7393 = vmatpush3.bf16.msra.mxu1 %v8168_v36  ;;  %7407 = vmatpush3.bf16.msra.mxu0 %v8173_v32  ;;  %v5514_v36 = vld [vmem:[%s10469_s6 + $0x108] sm:$0xff]  ;;  %v5519_v32 = vld [vmem:[%s10469_s6 + $0x130] sm:$0xff] }
 0x1be   :  { %7408 = vmatprep.subr.bf16.mxu0 %v8174_v33  ;;  %5365 = vmatprep.mubr.bf16.mxu0 %v8176_v44  ;;  %v5511_v33 = vld [vmem:[%s10469_s6 + $0xf0] sm:$0xff]  ;;  %v5516_v44 = vld [vmem:[%s10469_s6 + $0x118] sm:$0xff] }
 0x1c0   :  { %5407 = vmatmul.mubr.bf16.vlgmr.msra.gmra.mxu1 %v8170_v38 }
 0x1c1   :  { %7409 = vmatpush3.bf16.msra.mxu0 %v8175_v43  ;;  %5414 = vmatprep.mubr.bf16.mxu1 %v8180_v40  ;;  %v5509_v43 = vld [vmem:[%s10469_s6 + $0xe0] sm:$0xff] }
 0x1c2   :  { %7410 = vmatprep.subr.bf16.mxu0 %v8179_v47  ;;  %v5506_v47 = vld [vmem:[%s10469_s6 + $0xc8] sm:$0xff]  ;;  %v5513_v40 = vld [vmem:[%s10469_s6 + $0x100] sm:$0xff] }
 0x1c4   :  { %5366 = vmatmul.mubr.bf16.gmra.mxu0 %v8178_v45  ;;  %v5508_v45 = vld [vmem:[%s10469_s6 + $0xd8] sm:$0xff] }
 0x1c5   :  { %7411 = vmatpush3.bf16.msra.mxu0 %v8182_v49  ;;  %5455 = vmatprep.mubr.bf16.mxu0 %v8196_v59  ;;  %v5501_v59 = vld [vmem:[%s10469_s6 + $0xa0] sm:$0xff] }
 0x1c6   :  { %7412 = vmatprep.subr.bf16.mxu0 %v8184_v54  ;;  %v5502_v54 = vld [vmem:[%s10469_s6 + $0xa8] sm:$0xff] }
 0x1c8   :  { %5415 = vmatmul.mubr.bf16.gmra.mxu1 %v8183_v52  ;;  %v5503_v52 = vld [vmem:[%s10469_s6 + $0xb0] sm:$0xff] }
 0x1c9   :  { %7413 = vmatpush3.bf16.msra.mxu0 %v8185_v57  ;;  %v5500_v57 = vld [vmem:[%s10469_s6 + $0x98] sm:$0xff] }
 0x1ca   :  { %7414 = vmatprep.subr.bf16.mxu0 %v8186_v42  ;;  %v5499_v42 = vld [vmem:[%s10469_s6 + $0x90] sm:$0xff] }
 0x1d0   :  { %v9982_v16 = vpop.f32.mrf.mxu1 }
 0x1d2   :  { %v9984_v17 = vpop.f32.mrf.mxu1 }
 0x1d4   :  { %v9986_v18 = vpop.f32.mrf.mxu1 }
 0x1d5   :  { %v7086_v46 = vpop.f32.mrf.mxu0 }
 0x1d6   :  { %v9988_v19 = vpop.f32.mrf.mxu1 }
 0x1d7   :  { %v7087_v48 = vpop.f32.mrf.mxu0 }
 0x1d8   :  { %v7088_v53 = vadd.f32 %v7087_v48, %v7086_v46  ;;  %v9990_v2 = vpop.f32.mrf.mxu1  ;;  %v5505_v48 = vld [vmem:[%s10469_s6 + $0xc0] sm:$0xff] }
 0x1d9   :  { %v7089_v55 = vpop.f32.mrf.mxu0 }
 0x1da   :  { %v9932_v56 = vadd.f32 %v7088_v53, %v9812_v51  ;;  %v8187_v51 = vld [vmem:[%s10466_s1 + $0xd18] sm:$0xff]   ;;  %v9998_v15 = vpop.f32.mrf.mxu1  ;;  %v5510_v53 = vld [vmem:[%s10469_s6 + $0xe8] sm:$0xff] }
 0x1db   :  { %v7090_v41 = vpop.f32.mrf.mxu0  ;;  %7415 = vmatpush3.bf16.msra.mxu0 %v8187_v51  ;;  %v5497_v51 = vld [vmem:[%s10469_s6 + $0x80] sm:$0xff] }
 0x1dc   :  { %v7091_v60 = vadd.f32 %v7090_v41, %v7089_v55  ;;  %7416 = vmatprep.subr.bf16.mxu0 %v8188_v62  ;;  %v10017_v20 = vpop.f32.mrf.mxu1  ;;  %v5507_v41 = vld [vmem:[%s10469_s6 + $0xd0] sm:$0xff]  ;;  %v5504_v62 = vld [vmem:[%s10469_s6 + $0xb8] sm:$0xff] }
 0x1dd   :  { %v7092_v63 = vpop.f32.mrf.mxu0 }
 0x1de   :  { %v9941_v61 = vadd.f32 %v7091_v60, %v9827_v50  ;;  %v10039_v37 = vpop.f32.mrf.mxu1 }
 0x1df   :  { %v7093_v0 = vpop.f32.mrf.mxu0  ;;  %7417 = vmatpush3.bf16.msra.mxu0 %v8189_v1  ;;  %v5494_v1 = vld [vmem:[%s10469_s6 + $0x68] sm:$0xff] }
 0x1e0   :  { %v7094_v50 = vadd.f32 %v7093_v0, %v7092_v63  ;;  %7418 = vmatprep.subr.bf16.mxu0 %v8190_v58  ;;  %v5496_v63 = vld [vmem:[%s10469_s6 + $0x78] sm:$0xff]  ;;  %v5493_v58 = vld [vmem:[%s10469_s6 + $0x60] sm:$0xff] }
 0x1e1   :  { %v7095_v4 = vpop.f32.mrf.mxu0 }
 0x1e2   :  { %v9959_v5 = vadd.f32 %v7094_v50, %v9851_v11  ;;  %v5527_v11 = vld [vmem:[%s10469_s6 + $0x170] sm:$0xff] }
 0x1e3   :  { %v7096_v6 = vpop.f32.mrf.mxu0  ;;  %7419 = vmatpush3.bf16.msra.mxu0 %v8191_v7  ;;  %5567 = vmatprep.subr.mxu1 %v5527_v11  ;;  %v5498_v7 = vld [vmem:[%s10469_s6 + $0x88] sm:$0xff]  ;;  %v5485_v11 = vld [vmem:[%s10469_s6 + $0x20] sm:$0xff] }
 0x1e4   :  { %v7097_v8 = vadd.f32 %v7096_v6, %v7095_v4  ;;  %7420 = vmatprep.subr.bf16.mxu0 %v8192_v9  ;;  %5568 = vmatpush1.msra.mxu1 %v5526_v21  ;;  %v5491_v6 = vld [vmem:[%s10469_s6 + $0x50] sm:$0xff]  ;;  %v5492_v21 = vld [vmem:[%s10469_s6 + $0x58] sm:$0xff] }
 0x1e5   :  { %5569 = vmatprep.subr.mxu1 %v5524_v23  ;;  %v5484_v23 = vld [vmem:[%s10469_s6 + $0x18] sm:$0xff] }
 0x1e6   :  { %v9968_v10 = vadd.f32 %v7097_v8, %v9866_v29  ;;  %5570 = vmatpush1.msra.mxu1 %v5523_v26  ;;  %v5520_v29 = vld [vmem:[%s10469_s6 + $0x138] sm:$0xff]  ;;  %v5490_v8 = vld [vmem:[%s10469_s6 + $0x48] sm:$0xff] }
 0x1e7   :  { %7421 = vmatpush3.bf16.msra.mxu0 %v8193_v3  ;;  %5571 = vmatprep.subr.mxu1 %v5521_v27  ;;  %v5488_v3 = vld [vmem:[%s10469_s6 + $0x38] sm:$0xff]  ;;  %v5482_v27 = vld [vmem:[%s10469_s6 + $0x8] sm:$0xff] }
 0x1e8   :  { %7492 = vmatprep.subr.mxu0 %v5528_v28  ;;  %5572 = vmatpush1.msra.mxu1 %v5520_v29  ;;  %v5481_v29 = vld [vmem:[%s10469_s6] sm:$0xff] }
 0x1e9   :  { %5573 = vmatprep.subr.mxu1 %v5518_v31 }
 0x1ea   :  { %5456 = vmatmul.mubr.bf16.vlgmr.msra.gmra.mxu0 %v8194_v12  ;;  %5574 = vmatpush1.msra.mxu1 %v5517_v24  ;;  %v5495_v12 = vld [vmem:[%s10469_s6 + $0x70] sm:$0xff]  ;;  %v10477_v24 = vmov 0.0  }
 0x1eb   :  { %5463 = vmatprep.mubr.bf16.mxu0 %v8197_v13  ;;  %7493 = vmatpush3.msra.mxu0 %v5528_v28  ;;  %v5487_v13 = vld [vmem:[%s10469_s6 + $0x30] sm:$0xff]  ;;  %v5489_v28 = vld [vmem:[%s10469_s6 + $0x40] sm:$0xff] }
 0x1ec   :  { %7494 = vmatprep.subr.mxu0 %v5525_v25  ;;  %5575 = vmatprep.subr.mxu1 %v5515_v34  ;;  %v5486_v34 = vld [vmem:[%s10469_s6 + $0x28] sm:$0xff] }
 0x1ed   :  { %7495 = vmatpush3.msra.mxu0 %v5525_v25  ;;  %5576 = vmatpush1.msra.mxu1 %v5514_v36 }
 0x1ee   :  { %7496 = vmatprep.subr.mxu0 %v5522_v35  ;;  %5577 = vmatprep.subr.mxu1 %v5512_v39 }
 0x1ef   :  { %7497 = vmatpush3.msra.mxu0 %v5522_v35  ;;  %5578 = vmatpush1.msra.mxu1 %v5511_v33  ;;  %v5483_v35 = vld [vmem:[%s10469_s6 + $0x10] sm:$0xff] }
 0x1f0   :  { %7498 = vmatprep.subr.mxu0 %v5519_v32  ;;  %5579 = vmatprep.subr.mxu1 %v5509_v43 }
 0x1f1   :  { %7499 = vmatpush3.msra.mxu0 %v5519_v32  ;;  %5580 = vmatpush1.msra.mxu1 %v5508_v45 }
 0x1f2   :  { %5464 = vmatmul.mubr.bf16.gmra.mxu0 %v8199_v14  ;;  %7500 = vmatprep.subr.mxu0 %v5516_v44 }
 0x1f3   :  { %7501 = vmatpush3.msra.mxu0 %v5516_v44  ;;  %5581 = vmatprep.subr.mxu1 %v5506_v47 }
 0x1f4   :  { %7502 = vmatprep.subr.mxu0 %v5513_v40  ;;  %5582 = vmatpush1.msra.mxu1 %v5505_v48 }
 0x1f5   :  { %7503 = vmatpush3.msra.mxu0 %v5513_v40  ;;  %5583 = vmatprep.subr.mxu1 %v5503_v52 }
 0x1f6   :  { %7504 = vmatprep.subr.mxu0 %v5510_v53  ;;  %5584 = vmatpush1.msra.mxu1 %v5502_v54 }
 0x1f7   :  { %7505 = vmatpush3.msra.mxu0 %v5510_v53  ;;  %5585 = vmatprep.subr.mxu1 %v5500_v57 }
 0x1f8   :  { %7506 = vmatprep.subr.mxu0 %v5507_v41  ;;  %5586 = vmatpush1.msra.mxu1 %v5499_v42 }
 0x1f9   :  { %7507 = vmatpush3.msra.mxu0 %v5507_v41  ;;  %5587 = vmatprep.subr.mxu1 %v5497_v51 }
 0x1fa   :  { %7508 = vmatprep.subr.mxu0 %v5504_v62  ;;  %5588 = vmatpush1.msra.mxu1 %v5496_v63 }
 0x1fb   :  { %v10000_v22 = vpop.f32.mrf.mxu0  ;;  %7509 = vmatpush3.msra.mxu0 %v5504_v62  ;;  %5589 = vmatprep.subr.mxu1 %v5494_v1 }
 0x1fc   :  { %7510 = vmatprep.subr.mxu0 %v5501_v59  ;;  %5590 = vmatpush1.msra.mxu1 %v5493_v58 }
 0x1fd   :  { %v10019_v30 = vpop.f32.mrf.mxu0  ;;  %7511 = vmatpush3.msra.mxu0 %v5501_v59  ;;  %5591 = vmatprep.subr.mxu1 %v5491_v6 }
 0x1fe   :  { %7512 = vmatprep.subr.mxu0 %v5498_v7  ;;  %5592 = vmatpush1.msra.mxu1 %v5490_v8 }
 0x1ff   :  { %v10041_v38 = vpop.f32.mrf.mxu0  ;;  %7513 = vmatpush3.msra.mxu0 %v5498_v7  ;;  %5593 = vmatprep.subr.mxu1 %v5488_v3 }
 0x200   :  { %v10061_v46 = vpop.f32.mrf.mxu1  ;;  %7514 = vmatprep.subr.mxu0 %v5495_v12  ;;  %5594 = vmatpush1.msra.mxu1 %v5487_v13 }
 0x201   :  { %v10072_v49 = vpop.f32.mrf.mxu0  ;;  %7515 = vmatpush3.msra.mxu0 %v5495_v12  ;;  %5595 = vmatprep.subr.mxu1 %v5485_v11 }
 0x202   :  { %v10083_v55 = vpop.f32.mrf.mxu1  ;;  %7516 = vmatprep.subr.mxu0 %v5492_v21  ;;  %5596 = vmatpush1.msra.mxu1 %v5484_v23 }
 0x203   :  { %v10094_v60 = vpop.f32.mrf.mxu0  ;;  %7517 = vmatpush3.msra.mxu0 %v5492_v21  ;;  %5597 = vmatprep.subr.mxu1 %v5482_v27 }
 0x204   :  { %v10105_v0 = vpop.f32.mrf.mxu1  ;;  %7518 = vmatprep.subr.mxu0 %v5489_v28  ;;  %5598 = vmatpush1.msra.mxu1 %v5481_v29 }
 0x205   :  { %v10113_v50 = vpop.f32.mrf.mxu0  ;;  %5631 = vmatprep.mubr.f32.mxu1 %v10477_v24  ;;  %7519 = vmatpush3.msra.mxu0 %v5489_v28 }
 0x206   :  { %v10118_v4 = vpop.f32.mrf.mxu1  ;;  %7520 = vmatprep.subr.mxu0 %v5486_v34 }
 0x207   :  { %v10129_v9 = vpop.f32.mrf.mxu0  ;;  %7521 = vmatpush3.msra.mxu0 %v5486_v34 }
 0x208   :  { %v10140_v14 = vpop.f32.mrf.mxu1  ;;  %7522 = vmatprep.subr.mxu0 %v5483_v35 }
 0x209   :  { %v10151_v26 = vpop.f32.mrf.mxu0  ;;  %7523 = vmatpush3.msra.mxu0 %v5483_v35 }
 0x20a   :  { %v10162_v31 = vpop.f32.mrf.mxu1  ;;  %7569 = vmatprep.subr.mxu0 %v10477_v24 }
 0x20c   :  { %v10173_v36 = vpop.f32.mrf.mxu1 }
 0x20e   :  { %v10176_v32 = vpop.f32.mrf.mxu1 }
 0x21c   :  { %v10164_v25 = vpop.f32.mrf.mxu0 }
 0x21e   :  { %v7199_v39 = vpop.f32.mrf.mxu0 }
 0x220   :  { %v10178_v33 = vpop.f32.mrf.mxu0  ;;  %v10180_v43 = vpop.f32.mrf.mxu1 }
 0x222   :  { %v10182_v44 = vpop.f32.mrf.mxu0  ;;  %v10184_v45 = vpop.f32.mrf.mxu1 }
 0x224   :  { %v10186_v47 = vpop.f32.mrf.mxu0  ;;  %v10188_v40 = vpop.f32.mrf.mxu1 }
 0x226   :  { %v10190_v48 = vpop.f32.mrf.mxu0  ;;  %v10192_v52 = vpop.f32.mrf.mxu1 }
 0x228   :  { %v10194_v53 = vpop.f32.mrf.mxu0  ;;  %v10196_v54 = vpop.f32.mrf.mxu1 }
 0x22a   :  { %v10198_v57 = vpop.f32.mrf.mxu0  ;;  %v10200_v41 = vpop.f32.mrf.mxu1 }
 0x22c   :  { %v10202_v51 = vpop.f32.mrf.mxu1 }
 0x22d   :  { %10479 = vst [vmem:[#allocation3_spill] sm:$0xff] %v10202_v51 }
 0x22e   :  { %v10204_v63 = vpop.f32.mrf.mxu1 }
 0x22f   :  { %10480 = vst [vmem:[#allocation4_spill] sm:$0xff] %v10204_v63 }
 0x23c   :  { %v7254_v42 = vpop.f32.mrf.mxu0 }
 0x23e   :  { %v7255_v62 = vpop.f32.mrf.mxu0 }
 0x240   :  { %v10206_v1 = vpop.f32.mrf.mxu0  ;;  %v10208_v59 = vpop.f32.mrf.mxu1 }
 0x242   :  { %v10210_v58 = vpop.f32.mrf.mxu0  ;;  %v10212_v6 = vpop.f32.mrf.mxu1 }
 0x244   :  { %v10214_v7 = vpop.f32.mrf.mxu0  ;;  %v10216_v8 = vpop.f32.mrf.mxu1 }
 0x246   :  { %v10218_v3 = vpop.f32.mrf.mxu0  ;;  %v10220_v12 = vpop.f32.mrf.mxu1 }
 0x247   :  { %10481 = vst [vmem:[#allocation5_spill] sm:$0xff] %v10220_v12 }
 0x248   :  { %v10222_v13 = vpop.f32.mrf.mxu0  ;;  %v10224_v11 = vpop.f32.mrf.mxu1 }
 0x249   :  { %10482 = vst [vmem:[#allocation6_spill] sm:$0xff] %v10222_v13  ;;  %10483 = vst [vmem:[#allocation7_spill] sm:$0xff] %v10224_v11 }
 0x24a   :  { %v10226_v21 = vpop.f32.mrf.mxu0  ;;  %v10228_v23 = vpop.f32.mrf.mxu1 }
 0x24b   :  { %10484 = vst [vmem:[#allocation8_spill] sm:$0xff] %v10226_v21  ;;  %10485 = vst [vmem:[#allocation9_spill] sm:$0xff] %v10228_v23 }
 0x24c   :  { %v10232_v28 = vpop.f32.mrf.mxu1 }
 0x24d   :  { %10486 = vst [vmem:[#allocation10_spill] sm:$0xff] %v10232_v28 }
 0x24e   :  { %v10236_v34 = vpop.f32.mrf.mxu1 }
 0x24f   :  { %10487 = vst [vmem:[#allocation11_spill] sm:$0xff] %v10236_v34 }
 0x25c   :  { %v10230_v27 = vpop.f32.mrf.mxu0 }
 0x25e   :  { %v10234_v29 = vpop.f32.mrf.mxu0 }
 0x260   :  { %v10238_v35 = vpop.f32.mrf.mxu0  ;;  %v10240_v24 = vpop.f32.mrf.mxu1 }
 0x261   :  { %10488 = vst [vmem:[#allocation12_spill] sm:$0xff] %v10238_v35  ;;  %v7116_v35 = vadd.f32 %v9984_v17, %v9982_v16  ;;  %v7147_v16 = vadd.f32 %v10072_v49, %v10041_v38  ;;  %v7122_v17 = vadd.f32 %v9998_v15, %v9990_v2  ;;  %v7125_v2 = vadd.f32 %v10039_v37, %v10017_v20 }
 0x262   :  { %v10242_v63 = vpop.f32.mrf.mxu0  ;;  %v10244_v13 = vpop.f32.mrf.mxu1  ;;  %v7228_v49 = vadd.f32 %v10184_v45, %v10180_v43  ;;  %v7206_v37 = vadd.f32 %v10190_v48, %v10186_v47  ;;  %v7234_v48 = vadd.f32 %v10200_v41, %v10196_v54  ;;  %v10499_v41 = vld [vmem:[#allocation3_spill] sm:$0xff] }
 0x263   :  { %10489 = vst [vmem:[#allocation13_spill] sm:$0xff] %v10242_v63  ;;  %10490 = vst [vmem:[#allocation14_spill] sm:$0xff] %v10244_v13  ;;  %v4927_v38 = vadd.f32 %v7122_v17, %v9959_v5  ;;  %v4930_v20 = vadd.f32 %v7125_v2, %v9968_v10  ;;  %v7259_v10 = vadd.f32 %v10210_v58, %v10206_v1  ;;  %v10498_v1 = vld [vmem:[#allocation5_spill] sm:$0xff] }
 0x264   :  { %v10246_v11 = vpop.f32.mrf.mxu0  ;;  %v10248_v21 = vpop.f32.mrf.mxu1  ;;  %v7287_v58 = vadd.f32 %v10498_v1, %v10216_v8 }
 0x265   :  { %10491 = vst [vmem:[#allocation15_spill] sm:$0xff] %v10246_v11  ;;  %10492 = vst [vmem:[#allocation16_spill] sm:$0xff] %v10248_v21  ;;  %v7144_v21 = vadd.f32 %v10019_v30, %v10000_v22 }
 0x266   :  { %v10250_v23 = vpop.f32.mrf.mxu0  ;;  %v10252_v51 = vpop.f32.mrf.mxu1 }
 0x267   :  { %10493 = vst [vmem:[#allocation17_spill] sm:$0xff] %v10250_v23  ;;  %10494 = vst [vmem:[#allocation18_spill] sm:$0xff] %v10252_v51  ;;  %v4919_v23 = vadd.f32 %v7116_v35, %v9932_v56  ;;  %v7119_v51 = vadd.f32 %v9988_v19, %v9986_v18  ;;  %v7200_v56 = vadd.f32 %v7199_v39, %v10164_v25  ;;  %v10500_v35 = vld [vmem:[#allocation4_spill] sm:$0xff] }
 0x268   :  { %v10254_v28 = vpop.f32.mrf.mxu0  ;;  %v10256_v12 = vpop.f32.mrf.mxu1  ;;  %v7150_v18 = vadd.f32 %v10113_v50, %v10094_v60  ;;  %v7178_v50 = vadd.f32 %v10162_v31, %v10140_v14  ;;  %v7256_v25 = vadd.f32 %v7255_v62, %v7254_v42  ;;  %v7181_v14 = vadd.f32 %v10176_v32, %v10173_v36 }
 0x269   :  { %10495 = vst [vmem:[#allocation19_spill] sm:$0xff] %v10254_v28  ;;  %10496 = vst [vmem:[#allocation20_spill] sm:$0xff] %v10256_v12  ;;  %v4968_v11 = vadd.f32 %v7144_v21, %v4919_v23  ;;  %v4922_v22 = vadd.f32 %v7119_v51, %v9941_v61  ;;  %v7284_v31 = vadd.f32 %v10212_v6, %v10208_v59 }
 0x26a   :  { %v10258_v34 = vpop.f32.mrf.mxu0  ;;  %v10262_v63 = vpop.f32.mrf.mxu1  ;;  %v4976_v60 = vadd.f32 %v7150_v18, %v4927_v38  ;;  %v7312_v36 = vadd.f32 %v10234_v29, %v10230_v27  ;;  %v7262_v62 = vadd.f32 %v10218_v3, %v10214_v7  ;;  %v10501_v17 = vld [vmem:[#allocation14_spill] sm:$0xff]  ;;  %v10502_v29 = vld [vmem:[#allocation12_spill] sm:$0xff]  ;;  %v10504_v3 = vld [vmem:[#allocation7_spill] sm:$0xff] }
 0x26b   :  { %10497 = vst [vmem:[#allocation21_spill] sm:$0xff] %v10258_v34  ;;  %v7172_v34 = vadd.f32 %v10083_v55, %v10061_v46  ;;  %v4971_v23 = vadd.f32 %v7147_v16, %v4922_v22  ;;  %v7175_v46 = vadd.f32 %v10118_v4, %v10105_v0  ;;  %v7203_v55 = vadd.f32 %v10182_v44, %v10178_v33  ;;  %v10503_v22 = vld [vmem:[#allocation13_spill] sm:$0xff] }
 0x26c   :  { %v10271_v28 = vpop.f32.mrf.mxu1  ;;  %v7153_v0 = vadd.f32 %v10151_v26, %v10129_v9  ;;  %v7231_v33 = vadd.f32 %v10192_v52, %v10188_v40  ;;  %v5025_v44 = vadd.f32 %v7178_v50, %v4976_v60  ;;  %v7209_v40 = vadd.f32 %v10198_v57, %v10194_v53  ;;  %v10505_v18 = vld [vmem:[#allocation9_spill] sm:$0xff] }
 0x26d   :  { %v5017_v21 = vadd.f32 %v7172_v34, %v4968_v11  ;;  %v5020_v5 = vadd.f32 %v7175_v46, %v4971_v23  ;;  %v7237_v53 = vadd.f32 %v10500_v35, %v10499_v41  ;;  %v7340_v27 = vadd.f32 %v10501_v17, %v10240_v24  ;;  %v10506_v23 = vld [vmem:[#allocation6_spill] sm:$0xff]  ;;  %v10507_v46 = vld [vmem:[#allocation8_spill] sm:$0xff] }
 0x26e   :  { %v10283_v19 = vpop.f32.mrf.mxu1  ;;  %v4979_v51 = vadd.f32 %v7153_v0, %v4930_v20  ;;  %v5074_v47 = vadd.f32 %v7206_v37, %v5025_v44  ;;  %v7265_v8 = vadd.f32 %v10507_v46, %v10506_v23  ;;  %v10509_v60 = vld [vmem:[#allocation17_spill] sm:$0xff]  ;;  %v10511_v20 = vld [vmem:[#allocation18_spill] sm:$0xff]  ;;  %v10513_v44 = vld [vmem:[#allocation11_spill] sm:$0xff] }
 0x26f   :  { %v5066_v15 = vadd.f32 %v7200_v56, %v5017_v21  ;;  %v5069_v45 = vadd.f32 %v7203_v55, %v5020_v5  ;;  %v7315_v56 = vadd.f32 %v10503_v22, %v10502_v29  ;;  %v7290_v21 = vadd.f32 %v10505_v18, %v10504_v3  ;;  %v10508_v55 = vld [vmem:[#allocation15_spill] sm:$0xff] }
 0x270   :  { %v5028_v32 = vadd.f32 %v7181_v14, %v4979_v51  ;;  %v5123_v34 = vadd.f32 %v7234_v48, %v5074_v47  ;;  %v7318_v50 = vadd.f32 %v10509_v60, %v10508_v55  ;;  %v7349_v35 = vadd.f32 %v10283_v19, %v10271_v28 }
 0x271   :  { %v5115_v43 = vadd.f32 %v7228_v49, %v5066_v15  ;;  %v5118_v42 = vadd.f32 %v7231_v33, %v5069_v45  ;;  %v10512_v33 = vld [vmem:[#allocation10_spill] sm:$0xff]  ;;  %v10517_v19 = vmov 0.0  }
 0x272   :  { %v5077_v54 = vadd.f32 %v7209_v40, %v5028_v32  ;;  %v5172_v7 = vadd.f32 %v7262_v62, %v5123_v34  ;;  %v7293_v51 = vadd.f32 %v10513_v44, %v10512_v33  ;;  %v10516_v32 = vld [vmem:[#allocation21_spill] sm:$0xff] }
 0x273   :  { %v5164_v26 = vadd.f32 %v7256_v25, %v5115_v43  ;;  %v5167_v11 = vadd.f32 %v7259_v10, %v5118_v42  ;;  %v10510_v25 = vld [vmem:[#allocation16_spill] sm:$0xff] }
 0x274   :  { %v5126_v49 = vadd.f32 %v7237_v53, %v5077_v54  ;;  %v7343_v37 = vadd.f32 %v10511_v20, %v10510_v25  ;;  %v5221_v43 = vadd.f32 %v7290_v21, %v5172_v7  ;;  %v10514_v10 = vld [vmem:[#allocation20_spill] sm:$0xff]  ;;  %v5552_v25 = vlaneseq }
 0x275   :  { %v5213_v6 = vadd.f32 %v7284_v31, %v5164_v26  ;;  %v5216_v2 = vadd.f32 %v7287_v58, %v5167_v11  ;;  %v7346_v47 = vadd.f32 %v10262_v63, %v10514_v10 }
 0x276   :  { %v5175_v45 = vadd.f32 %v7265_v8, %v5126_v49  ;;  %v5553_v20 = vshrl.u32 %v5552_v25, 7 }
 0x277   :  { %v5262_v16 = vadd.f32 %v7312_v36, %v5213_v6  ;;  %v5265_v5 = vadd.f32 %v7315_v56, %v5216_v2  ;;  %v10515_v36 = vld [vmem:[#allocation19_spill] sm:$0xff]  ;;  %v5474_v2 = vld [vmem:[%s10470_s3 + $0x10] sm:$0xff] }
 0x278   :  { %v7321_v62 = vadd.f32 %v10516_v32, %v10515_v36  ;;  %v5224_v6 = vadd.f32 %v7293_v51, %v5175_v45  ;;  %v5473_v56 = vld [vmem:[%s10470_s3 + $0x8] sm:$0xff] }
 0x279   :  { %v5311_v24 = vadd.f32 %v7340_v27, %v5262_v16  ;;  %v5314_v42 = vadd.f32 %v7343_v37, %v5265_v5  ;;  %v5554_v37 = vsub.s32 0, %v5553_v20 }
 0x27c   :  { %v10264_v13 = vpop.f32.mrf.mxu0 }
 0x27e   :  { %v7367_v12 = vpop.f32.mrf.mxu0 }
 0x27f   :  { %v7368_v15 = vadd.f32 %v7367_v12, %v10264_v13  ;;  %v5270_v13 = vadd.f32 %v7318_v50, %v5221_v43  ;;  %v5529_v43 = vld [vmem:[%s10471_s7] sm:$0x7] }
 0x280   :  { %v10285_v30 = vpop.f32.mrf.mxu0  ;;  %v7394_v61 = vpop.f32.mrf.mxu1  ;;  %v5555_v45 = vrot.slane %v5529_v43, %v5554_v37 }
 0x281   :  { %v5360_v26 = vadd.f32 %v7368_v15, %v5311_v24 }
 0x282   :  { %v7370_v4 = vpop.f32.mrf.mxu0  ;;  %v7395_v39 = vpop.f32.mrf.mxu1 }
 0x283   :  { %v7396_v31 = vadd.f32 %v7395_v39, %v7394_v61  ;;  %v7371_v12 = vadd.f32 %v7370_v4, %v10285_v30  ;;  %v5319_v61 = vadd.f32 %v7346_v47, %v5270_v13  ;;  %v5472_v30 = vld [vmem:[%s10470_s3] sm:$0xff]  ;;  %v5273_v4 = vadd.f32 %v7321_v62, %v5224_v6 }
 0x284   :  { %v7372_v9 = vpop.f32.mrf.mxu0  ;;  %v7397_v52 = vpop.f32.mrf.mxu1  ;;  %v5562_v62 = vsub.s32 2, %v5553_v20 }
 0x285   :  { %v5409_v58 = vadd.f32 %v7396_v31, %v5360_v26  ;;  %v5363_v34 = vadd.f32 %v7371_v12, %v5314_v42  ;;  %v5322_v7 = vadd.f32 %v7349_v35, %v5273_v4  ;;  %v5558_v12 = vsub.s32 1, %v5553_v20 }
 0x286   :  { %v7373_v59 = vpop.f32.mrf.mxu0  ;;  %v7398_v57 = vpop.f32.mrf.mxu1 }
 0x287   :  { %v7374_v11 = vadd.f32 %v7373_v59, %v7372_v9  ;;  %v7399_v54 = vadd.f32 %v7398_v57, %v7397_v52  ;;  %v5559_v47 = vrot.slane %v5529_v43, %v5558_v12 }
 0x288   :  { %v7375_v38 = vpop.f32.mrf.mxu0  ;;  %v7400_v0 = vpop.f32.mrf.mxu1 }
 0x289   :  { %v5368_v16 = vadd.f32 %v7374_v11, %v5319_v61  ;;  %v5412_v59 = vadd.f32 %v7399_v54, %v5363_v34 }
 0x28a   :  { %v7376_v14 = vpop.f32.mrf.mxu0  ;;  %v7401_v48 = vpop.f32.mrf.mxu1 }
 0x28b   :  { %v7402_v17 = vadd.f32 %v7401_v48, %v7400_v0  ;;  %v7377_v27 = vadd.f32 %v7376_v14, %v7375_v38  ;;  %v5475_v0 = vld [vmem:[%s10470_s3 + $0x18] sm:$0xff] }
 0x28c   :  { %v7403_v39 = vpop.f32.mrf.mxu1 }
 0x28d   :  { %v5417_v18 = vadd.f32 %v7402_v17, %v5368_v16  ;;  %v5371_v21 = vadd.f32 %v7377_v27, %v5322_v7  ;;  %v5476_v16 = vld [vmem:[%s10472_s4] sm:$0xff]  ;;  %v5477_v27 = vld [vmem:[%s10472_s4 + $0x8] sm:$0xff] }
 0x28e   :  { %v7404_v57 = vpop.f32.mrf.mxu1 }
 0x28f   :  { %v7405_v23 = vadd.f32 %v7404_v57, %v7403_v39  ;;  %v5478_v57 = vld [vmem:[%s10472_s4 + $0x10] sm:$0xff] }
 0x291   :  { %v5420_v55 = vadd.f32 %v7405_v23, %v5371_v21 }
 0x2aa   :  { %v7422_v40 = vpop.f32.mrf.mxu0 }
 0x2ac   :  { %v7423_v1 = vpop.f32.mrf.mxu0 }
 0x2ad   :  { %v7424_v41 = vadd.f32 %v7423_v1, %v7422_v40 }
 0x2ae   :  { %v7425_v63 = vpop.f32.mrf.mxu0 }
 0x2af   :  { %v5458_v53 = vadd.f32 %v7424_v41, %v5409_v58  ;;  %v5563_v58 = vrot.slane %v5529_v43, %v5562_v62 }
 0x2b0   :  { %v7426_v9 = vpop.f32.mrf.mxu0 }
 0x2b1   :  { %v5547_v29 = vadd.f32 %v5472_v30, %v5458_v53  ;;  %v7427_v52 = vadd.f32 %v7426_v9, %v7425_v63 }
 0x2b2   :  { %v7428_v22 = vpop.f32.mrf.mxu0 }
 0x2b3   :  { %v5461_v3 = vadd.f32 %v7427_v52, %v5412_v59  ;;  %5632 = vmatmul.mubr.f32.vlgmr.msra.gmra.mxu1 %v5547_v29  ;;  %7524 = vmatprep.mubr.f32.mxu0 %v5547_v29 }
 0x2b4   :  { %v7429_v28 = vpop.f32.mrf.mxu0  ;;  %5637 = vmatprep.mubr.f32.mxu1 %v10517_v19 }
 0x2b5   :  { %v7430_v46 = vadd.f32 %v7429_v28, %v7428_v22  ;;  %v5548_v8 = vadd.f32 %v5473_v56, %v5461_v3 }
 0x2b6   :  { %v7431_v38 = vpop.f32.mrf.mxu0 }
 0x2b7   :  { %v5466_v15 = vadd.f32 %v7430_v46, %v5417_v18  ;;  %5638 = vmatmul.mubr.f32.gmra.mxu1 %v5548_v8  ;;  %7525 = vmatmul.mubr.f32.vlgmr.msra.gmra.mxu0 %v5548_v8  ;;  %v5479_v18 = vld [vmem:[%s10472_s4 + $0x18] sm:$0xff] }
 0x2b8   :  { %v7432_v49 = vpop.f32.mrf.mxu0  ;;  %5643 = vmatprep.mubr.f32.mxu1 %v10517_v19 }
 0x2b9   :  { %v7433_v60 = vadd.f32 %v7432_v49, %v7431_v38  ;;  %v5549_v50 = vadd.f32 %v5474_v2, %v5466_v15 }
 0x2bb   :  { %v5469_v24 = vadd.f32 %v7433_v60, %v5420_v55  ;;  %5644 = vmatmul.mubr.f32.gmra.mxu1 %v5549_v50  ;;  %7527 = vmatprep.mubr.f32.mxu0 %v5549_v50 }
 0x2bc   :  { %5649 = vmatprep.mubr.f32.mxu1 %v10517_v19 }
 0x2bd   :  { %v5550_v5 = vadd.f32 %v5475_v0, %v5469_v24 }
 0x2bf   :  { %5650 = vmatmul.mubr.f32.gmra.mxu1 %v5550_v5  ;;  %7528 = vmatmul.mubr.f32.gmra.mxu0 %v5550_v5 }
 0x2c0   :  { %7601 = vmatprep.mubr.msk.f32.mxu0 %vm8217_vm1, %v10517_v19 }
 0x373   :  { %v5633_v33 = vpop.f32.mrf.mxu1 }
 0x374   :  { %v5634_v44 = vadd.f32 %v5633_v33, %v5555_v45 }
 0x375   :  { %v5635_v51 = vpop.f32.mrf.mxu1 }
 0x376   :  { %7538 = vmatprep.mubr.f32.mxu1 %v5634_v44  ;;  %v5636_v11 = vadd.f32 %v5635_v51, %v5559_v47 }
 0x377   :  { %v5639_v14 = vpop.f32.mrf.mxu1  ;;  %v7526_v36 = vpop.f32.mrf.mxu0 }
 0x378   :  { %v5640_v41 = vadd.f32 %v5639_v14, %v5555_v45  ;;  %v5728_v30 = vadd.f32 %v7526_v36, %v5563_v58 }
 0x379   :  { %v5641_v26 = vpop.f32.mrf.mxu1  ;;  %v5722_v6 = vpop.f32.mrf.mxu0 }
 0x37a   :  { %v5642_v32 = vadd.f32 %v5641_v26, %v5559_v47  ;;  %v5723_v4 = vadd.f32 %v5722_v6, %v5563_v58 }
 0x37b   :  { %v5645_v31 = vpop.f32.mrf.mxu1 }
 0x37c   :  { %v5646_v61 = vadd.f32 %v5645_v31, %v5555_v45 }
 0x37d   :  { %v5647_v13 = vpop.f32.mrf.mxu1 }
 0x37e   :  { %v5648_v42 = vadd.f32 %v5647_v13, %v5559_v47 }
 0x37f   :  { %v5651_v10 = vpop.f32.mrf.mxu1  ;;  %v7529_v1 = vpop.f32.mrf.mxu0 }
 0x380   :  { %v5738_v34 = vadd.f32 %v7529_v1, %v5563_v58  ;;  %v5652_v63 = vadd.f32 %v5651_v10, %v5555_v45  ;;  %v5544_v1 = vld [vmem:[%s10473_s8 + $0x70] sm:$0xff] }
 0x381   :  { %v5653_v48 = vpop.f32.mrf.mxu1  ;;  %v5732_v54 = vpop.f32.mrf.mxu0 }
 0x382   :  { %v5654_v40 = vadd.f32 %v5653_v48, %v5559_v47  ;;  %v5733_v39 = vadd.f32 %v5732_v54, %v5563_v58  ;;  %v5543_v58 = vld [vmem:[%s10473_s8 + $0x68] sm:$0xff]  ;;  %v5541_v54 = vld [vmem:[%s10473_s8 + $0x58] sm:$0xff] }
 0x384   :  { %7530 = vmatprep.subr.mxu1 %v5654_v40 }
 0x385   :  { %7531 = vmatpush3.xpose.msra.mxu1 %v5654_v40 }
 0x386   :  { %7532 = vmatprep.subr.mxu1 %v5648_v42 }
 0x389   :  { %7533 = vmatpush3.xpose.msra.mxu1 %v5648_v42 }
 0x38a   :  { %7534 = vmatprep.subr.mxu1 %v5642_v32 }
 0x38d   :  { %7535 = vmatpush3.xpose.msra.mxu1 %v5642_v32 }
 0x38e   :  { %7536 = vmatprep.subr.mxu1 %v5636_v11 }
 0x391   :  { %7537 = vmatpush3.xpose.msra.mxu1 %v5636_v11  ;;  %v5545_v11 = vld [vmem:[%s10473_s8 + $0x78] sm:$0xff] }
 0x392   :  { %7544 = vmatprep.subr.mxu1 %v5738_v34  ;;  %7570 = vmatpush3.msra.mxu0 %v5545_v11 }
 0x393   :  { %7571 = vmatprep.subr.mxu0 %v10517_v19 }
 0x394   :  { %7539 = vmatmul.mubr.f32.vlgmr.msra.gmra.mxu1 %v5640_v41  ;;  %7572 = vmatpush3.msra.mxu0 %v5544_v1  ;;  %v5540_v41 = vld [vmem:[%s10473_s8 + $0x50] sm:$0xff] }
 0x395   :  { %7541 = vmatprep.mubr.f32.mxu1 %v5646_v61  ;;  %7545 = vmatpush3.msra.mxu1 %v5738_v34  ;;  %v5542_v34 = vld [vmem:[%s10473_s8 + $0x60] sm:$0xff]  ;;  %v5539_v61 = vld [vmem:[%s10473_s8 + $0x48] sm:$0xff] }
 0x396   :  { %7546 = vmatprep.subr.mxu1 %v5733_v39  ;;  %7573 = vmatprep.subr.mxu0 %v10517_v19 }
 0x397   :  { %7547 = vmatpush3.msra.mxu1 %v5733_v39  ;;  %7574 = vmatpush3.msra.mxu0 %v5543_v58  ;;  %v5538_v39 = vld [vmem:[%s10473_s8 + $0x40] sm:$0xff] }
 0x398   :  { %7542 = vmatmul.mubr.f32.gmra.mxu1 %v5652_v63  ;;  %7548 = vmatprep.subr.mxu1 %v5728_v30  ;;  %v5536_v63 = vld [vmem:[%s10473_s8 + $0x30] sm:$0xff] }
 0x399   :  { %7549 = vmatpush3.msra.mxu1 %v5728_v30  ;;  %7575 = vmatprep.subr.mxu0 %v10517_v19  ;;  %v5537_v30 = vld [vmem:[%s10473_s8 + $0x38] sm:$0xff] }
 0x39a   :  { %7550 = vmatprep.subr.mxu1 %v5723_v4  ;;  %7576 = vmatpush3.msra.mxu0 %v5542_v34 }
 0x39b   :  { %7551 = vmatpush3.msra.mxu1 %v5723_v4  ;;  %7577 = vmatprep.subr.mxu0 %v10517_v19  ;;  %v5535_v4 = vld [vmem:[%s10473_s8 + $0x28] sm:$0xff] }
 0x39c   :  { %7558 = vmatprep.subr.mxu1 %v10517_v19  ;;  %7578 = vmatpush3.msra.mxu0 %v5541_v54 }
 0x39d   :  { %7579 = vmatprep.subr.mxu0 %v10517_v19 }
 0x39e   :  { %7580 = vmatpush3.msra.mxu0 %v5540_v41 }
 0x39f   :  { %7581 = vmatprep.subr.mxu0 %v10517_v19 }
 0x3a0   :  { %7582 = vmatpush3.msra.mxu0 %v5539_v61 }
 0x3a1   :  { %7583 = vmatprep.subr.mxu0 %v10517_v19 }
 0x3a2   :  { %7584 = vmatpush3.msra.mxu0 %v5538_v39 }
 0x3a3   :  { %7585 = vmatprep.subr.mxu0 %v10517_v19 }
 0x3a4   :  { %7586 = vmatpush3.msra.mxu0 %v5537_v30 }
 0x3a5   :  { %7587 = vmatprep.subr.mxu0 %v10517_v19 }
 0x3a6   :  { %7588 = vmatpush3.msra.mxu0 %v5536_v63 }
 0x3a7   :  { %7589 = vmatprep.subr.mxu0 %v10517_v19 }
 0x3a8   :  { %7590 = vmatpush3.msra.mxu0 %v5535_v4 }
 0x3a9   :  { %7591 = vmatprep.subr.mxu0 %v10517_v19 }
 0x454   :  { %v7540_v35 = vpop.f32.mrf.mxu1 }
 0x455   :  { %v5827_v17 = vmul.f32 0.088388346, %v7540_v35  ;;  %v5534_v35 = vld [vmem:[%s10473_s8 + $0x20] sm:$0xff] }
 0x456   :  { %v5807_v53 = vpop.f32.mrf.mxu1  ;;  %7592 = vmatpush3.msra.mxu0 %v5534_v35 }
 0x457   :  { %v5826_v9 = vmul.f32 0.088388346, %v5807_v53  ;;  %v5831_v3 = vadd.f32 %v5827_v17, %v5477_v27  ;;  %v5533_v53 = vld [vmem:[%s10473_s8 + $0x18] sm:$0xff]  ;;  %7593 = vmatprep.subr.mxu0 %v10517_v19  ;;  %v5531_v17 = vld [vmem:[%s10473_s8 + $0x8] sm:$0xff] }
 0x458   :  { %v7543_v59 = vpop.f32.mrf.mxu1  ;;  %7594 = vmatpush3.msra.mxu0 %v5533_v53 }
 0x459   :  { %v5830_v29 = vadd.f32 %v5826_v9, %v5476_v16  ;;  %v5829_v22 = vmul.f32 0.088388346, %v7543_v59  ;;  %v5838_v21 = vsel %vm5834_vm0, %v5831_v3, -inf  ;;  %v5532_v16 = vld [vmem:[%s10473_s8 + $0x10] sm:$0xff]  ;;  %7595 = vmatprep.subr.mxu0 %v10517_v19 }
 0x45a   :  { %v5817_v52 = vpop.f32.mrf.mxu1  ;;  %7596 = vmatpush3.msra.mxu0 %v5532_v16 }
 0x45b   :  { %v5828_v56 = vmul.f32 0.088388346, %v5817_v52  ;;  %v5835_v7 = vsel %vm5834_vm0, %v5830_v29, -inf  ;;  %v5833_v46 = vadd.f32 %v5829_v22, %v5479_v18  ;;  %7597 = vmatprep.subr.mxu0 %v10517_v19  ;;  %v5480_v52 = vld [vmem:[%s10474_s5] sm:$0x3]  ;;  %v15_v22 = vstv %s10475_s9 }
 0x45c   :  { %5836 = vmax.xlane.f32.xlu0 %v5835_v7  ;;  %7598 = vmatpush3.msra.mxu0 %v5531_v17  ;;  %16 = vst [vmem:[#allocation2] sm:$0x1] %v15_v22 }
 0x45d   :  { %v5832_v28 = vadd.f32 %v5828_v56, %v5478_v57  ;;  %v5844_v8 = vsel %vm5834_vm0, %v5833_v46, -inf  ;;  %7599 = vmatprep.subr.mxu0 %v10517_v19  ;;  %v5530_v57 = vld [vmem:[%s10473_s8] sm:$0xff] }
 0x45e   :  { %7600 = vmatpush3.msra.mxu0 %v5530_v57 }
 0x45f   :  { %v5841_v23 = vsel %vm5834_vm0, %v5832_v28, -inf }
 0x460   :  { %5839 = vmax.xlane.f32.xlu0 %v5838_v21  ;;  %5842 = vmax.xlane.f32.xlu1 %v5841_v23 }
 0x464   :  { %5845 = vmax.xlane.f32.xlu1 %v5844_v8 }
 0x4e5   :  { %v5837_v38 = vpop.xlane.xlu0 %5836 }
 0x4e6   :  { %v5847_v2 = vsub.f32 %v5830_v29, %v5837_v38 }
 0x4e8   :  { %v5851_v15 = vmul.f32 1.442695, %v5847_v2 }
 0x4e9   :  { %v5840_v49 = vpop.xlane.xlu0 %5839  ;;  %v5843_v55 = vpop.xlane.xlu1 %5842 }
 0x4ea   :  { %8200 = vpow2.f32 %v5851_v15  ;;  %v5848_v60 = vsub.f32 %v5831_v3, %v5840_v49  ;;  %v5849_v50 = vsub.f32 %v5832_v28, %v5843_v55  ;;  %v6677_v3 = vld [vmem:[#allocation2] ss:$0 sm:$0xff] }
 0x4ec   :  { %v5853_v0 = vmul.f32 1.442695, %v5848_v60  ;;  %v5855_v24 = vmul.f32 1.442695, %v5849_v50 }
 0x4ed   :  { %v5846_v5 = vpop.xlane.xlu1 %5845 }
 0x4ee   :  { %8202 = vpow2.f32 %v5853_v0  ;;  %v5850_v25 = vsub.f32 %v5833_v46, %v5846_v5 }
 0x4ef   :  { %8204 = vpow2.f32 %v5855_v24 }
 0x4f0   :  { %v5857_v20 = vmul.f32 1.442695, %v5850_v25 }
 0x4f2   :  { %8206 = vpow2.f32 %v5857_v20 }
 0x4f7   :  { %v8201_v37 = vpop.eup %8200 }
 0x4f8   :  { %v5859_v43 = vsel %vm5834_vm0, %v8201_v37, 0.0 }
 0x4f9   :  { %5860 = vadd.xlane.f32.xlu0 %v5859_v43 }
 0x4fb   :  { %v8203_v45 = vpop.eup %8202 }
 0x4fc   :  { %v8205_v33 = vpop.eup %8204  ;;  %v5862_v44 = vsel %vm5834_vm0, %v8203_v45, 0.0 }
 0x4fd   :  { %5863 = vadd.xlane.f32.xlu1 %v5862_v44  ;;  %v5865_v51 = vsel %vm5834_vm0, %v8205_v33, 0.0 }
 0x4fe   :  { %5866 = vadd.xlane.f32.xlu0 %v5865_v51 }
 0x4ff   :  { %v8207_v14 = vpop.eup %8206 }
 0x500   :  { %v5868_v26 = vsel %vm5834_vm0, %v8207_v14, 0.0 }
 0x501   :  { %5869 = vadd.xlane.f32.xlu1 %v5868_v26 }
 0x582   :  { %v5861_v31 = vpop.xlane.xlu0 %5860 }
 0x583   :  { %8208 = vrcp.f32 %v5861_v31 }
 0x586   :  { %v5864_v12 = vpop.xlane.xlu1 %5863 }
 0x587   :  { %v5867_v13 = vpop.xlane.xlu0 %5866  ;;  %8210 = vrcp.f32 %v5864_v12 }
 0x588   :  { %8212 = vrcp.f32 %v5867_v13 }
 0x58a   :  { %v5870_v10 = vpop.xlane.xlu1 %5869 }
 0x58b   :  { %8214 = vrcp.f32 %v5870_v10 }
 0x590   :  { %v8209_v47 = vpop.eup %8208 }
 0x591   :  { %v5872_v48 = vmul.f32 %v8209_v47, %v8201_v37 }
 0x593   :  { %7552 = vmatprep.mubr.msk.f32.mxu1 %vm5834_vm0, %v5872_v48 }
 0x594   :  { %v8211_v40 = vpop.eup %8210 }
 0x595   :  { %v8213_v42 = vpop.eup %8212  ;;  %v5874_v36 = vmul.f32 %v8211_v40, %v8203_v45 }
 0x596   :  { %v5876_v32 = vmul.f32 %v8213_v42, %v8205_v33 }
 0x597   :  { %7553 = vmatmul.mubr.msk.f32.vlgmr.msra.gmra.mxu1 %vm5834_vm0, %v5874_v36 }
 0x598   :  { %v8215_v62 = vpop.eup %8214  ;;  %7555 = vmatprep.mubr.msk.f32.mxu1 %vm5834_vm0, %v5876_v32 }
 0x599   :  { %v5878_v6 = vmul.f32 %v8215_v62, %v8207_v14 }
 0x59b   :  { %7556 = vmatmul.mubr.msk.f32.gmra.mxu1 %vm5834_vm0, %v5878_v6 }
 0x59c   :  { %7566 = vmatprep.mubr.msk.f32.mxu1 %vm8217_vm1, %v10517_v19 }
 0x657   :  { %v7554_v9 = vpop.f32.mrf.mxu1 }
 0x659   :  { %v5957_v59 = vpop.f32.mrf.mxu1 }
 0x65b   :  { %v7557_v27 = vpop.f32.mrf.mxu1 }
 0x65c   :  { %7559 = vmatpush3.msra.mxu1 %v7557_v27 }
 0x65d   :  { %v5967_v29 = vpop.f32.mrf.mxu1  ;;  %7560 = vmatprep.subr.mxu1 %v10517_v19 }
 0x65e   :  { %7561 = vmatpush3.msra.mxu1 %v5967_v29 }
 0x65f   :  { %7562 = vmatprep.subr.mxu1 %v10517_v19 }
 0x660   :  { %7563 = vmatpush3.msra.mxu1 %v7554_v9 }
 0x661   :  { %7564 = vmatprep.subr.mxu1 %v10517_v19 }
 0x662   :  { %7565 = vmatpush3.msra.mxu1 %v5957_v59 }
 0x663   :  { %7567 = vmatmul.mubr.msk.f32.vlgmr.msra.gmra.mxu1 %vm5834_vm0, %v5480_v52 }
 0x723   :  { %v6045_v56 = vpop.f32.mrf.mxu1 }
 0x724   :  { %7602 = vmatmul.mubr.f32.vlgmr.msra.gmra.mxu0 %v6045_v56 }
 0x725   :  { %v7568_v7 = vpop.f32.mrf.mxu1 }
 0x7e4   :  { %v6121_v18 = vpop.f32.mrf.mxu0 }
 0x7e5   :  { %v6122_v19 = vadd.f32 %v6677_v3, %v6121_v18 }
 0x7e6   :  { %v7603_v28 = vpop.f32.mrf.mxu0 }
 0x7e7   :  { %6126 = vst.msk [vmem:[%s10476_s10] sm:$0x3] %vm6125_vm2, %v6122_v19 }

</bundles_post_ra>
